<compile_context>
chip_gen: v7x
topology: tpu7x:2x2x1
jax: 0.10.0
libtpu: 0.0.40
codegen_flags: <defaults>
</compile_context>

<pallas_src>
import functools

import numpy as np

import jax
import jax.numpy as jnp
from jax.experimental import pallas as pl
from jax.experimental.pallas import tpu as pltpu

NUM_CLASSES = 16
CALORIES_SCALE = 1000
PROTEIN_SCALE = 100
FEAT_DIM = 32          # backbone output channels (get_feature_dim stand-in)
FEAT_PAD = 128         # FEAT_DIM zero-padded to a full lane width
HIDDEN = 1024
CLS_HIDDEN = 512
NUT_PAD = 128          # nutrition head columns padded 4 -> 128
OUT_PAD = 128          # lane-dense padded output width
BN_EPS = 1e-5


# --------------------------------------------------------------------------
# Backbone kernel: 3x3 conv (pad=1, stride=1) -> ReLU -> global average pool,
# one whole image per grid step, in-kernel im2col via 9 shifted slices.
# --------------------------------------------------------------------------
def _backbone_kernel(n_bands, band, offsets,
                     x_ref, convw_ref, convb_ref, poolw_ref, feat_ref):
    # x_ref:     [1, flat_rows, C]  bf16 (padded image, rows = (hh*(W+2)+ww))
    # convw_ref: [9, C, FEAT_PAD]   bf16 (one [C, FEAT_PAD] tap per 3x3 offset)
    # convb_ref: [1, FEAT_PAD]      f32
    # poolw_ref: [n_bands, band]    f32 (junk-column / tail mask * 1/(H*W))
    # feat_ref:  [1, 1, FEAT_PAD]   f32 (pooled features for this image)
    pooled = jnp.zeros((1, FEAT_PAD), jnp.float32)
    for bi in range(n_bands):                       # static band loop (VMEM cap)
        row0 = bi * band
        acc = jnp.zeros((band, FEAT_PAD), jnp.float32)
        for s, off in enumerate(offsets):           # 9 static 3x3 shifts
            patch = x_ref[0, row0 + off:row0 + off + band, :]      # [band, C]
            acc = acc + jnp.dot(patch, convw_ref[s],
                                preferred_element_type=jnp.float32)
        act = jnp.maximum(acc + convb_ref[...], 0.0)               # [band, 128]
        # Masked global-average-pool as an MXU matmul: mask (junk columns from
        # the row-flattened layout + band tail) and 1/(H*W) are folded into
        # pool_w, so this is both the mask and the cross-row reduction.
        pooled = pooled + jnp.dot(poolw_ref[bi:bi + 1, :], act,
                                  preferred_element_type=jnp.float32)
    feat_ref[0] = pooled


# --------------------------------------------------------------------------
# Head kernel: shared_fc (BN folded) -> class head + nutrition head.
# Tiny single-step call; all operands fit whole-array in VMEM.
# --------------------------------------------------------------------------
def _head_kernel(feat_ref, fc1w_ref, fc1b_ref, headsw_ref, headsb_ref,
                 cls2w_ref, cls2b_ref, class_ref, nut_ref):
    feats = feat_ref[...].astype(jnp.bfloat16)                     # [B, 128]

    # shared_fc: Linear (BatchNorm folded in) -> ReLU -> Dropout(identity)
    h = jnp.dot(feats, fc1w_ref[...],
                preferred_element_type=jnp.float32) + fc1b_ref[...]
    h = jnp.maximum(h, 0.0)                                        # [B, 1024]

    # fused heads matmul: [cls1 (512) | nutrition (padded to 128)]
    u = jnp.dot(h.astype(jnp.bfloat16), headsw_ref[...],
                preferred_element_type=jnp.float32) + headsb_ref[...]

    # class head: ReLU -> Linear(512, num_classes) (N padded to 128)
    c = jnp.maximum(u[:, :CLS_HIDDEN], 0.0)
    class_ref[...] = (jnp.dot(c.astype(jnp.bfloat16), cls2w_ref[...],
                              preferred_element_type=jnp.float32)
                      + cls2b_ref[...])

    # nutrition head: clamp(min=0) (scales already folded into the weights),
    # then clamp cols >= 2 to <= 100 (cols 0/1 have no upper bound).
    n = jnp.maximum(u[:, CLS_HIDDEN:], 0.0)                        # [B, 128]
    col = jax.lax.broadcasted_iota(jnp.int32, (1, NUT_PAD), 1)
    nut_ref[...] = jnp.where(col >= 2, jnp.minimum(n, 100.0), n)


# --------------------------------------------------------------------------
# Parameters (PyTorch init semantics: kaiming_normal_ weights, bias = 0.01).
# --------------------------------------------------------------------------
def init_params(key, in_channels, num_classes=NUM_CLASSES,
                calories_scale=CALORIES_SCALE, protein_scale=PROTEIN_SCALE):
    # Scale folding in prepare_kernel_params() requires positive scales.
    assert calories_scale > 0 and protein_scale > 0
    ks = jax.random.split(key, 8)

    def kaiming(k, fan_in, shape):
        # kaiming_normal_ stand-in: N(0, sqrt(2/fan_in))
        return jax.random.normal(k, shape, jnp.float32) * jnp.sqrt(2.0 / fan_in)

    return dict(
        # conv weight stored per 3x3 tap: [9, C, FEAT_DIM], tap s = dh*3 + dw
        conv_w=kaiming(ks[0], 9 * in_channels, (9, in_channels, FEAT_DIM)),
        conv_b=jnp.full((1, FEAT_DIM), 0.01, jnp.float32),
        fc1_w=kaiming(ks[1], FEAT_DIM, (FEAT_DIM, HIDDEN)),
        fc1_b=jnp.full((1, HIDDEN), 0.01, jnp.float32),
        bn_g=jnp.ones((1, HIDDEN), jnp.float32),
        bn_b=jnp.zeros((1, HIDDEN), jnp.float32),
        bn_m=jnp.zeros((1, HIDDEN), jnp.float32),
        bn_v=jnp.ones((1, HIDDEN), jnp.float32),
        cls1_w=kaiming(ks[2], HIDDEN, (HIDDEN, CLS_HIDDEN)),
        cls1_b=jnp.full((1, CLS_HIDDEN), 0.01, jnp.float32),
        cls2_w=kaiming(ks[3], CLS_HIDDEN, (CLS_HIDDEN, num_classes)),
        cls2_b=jnp.full((1, num_classes), 0.01, jnp.float32),
        nut_w=kaiming(ks[4], HIDDEN, (HIDDEN, 4)),
        nut_b=jnp.full((1, 4), 0.01, jnp.float32),
        nut_scale=jnp.array(
            [[float(calories_scale), float(protein_scale), 1.0, 1.0]],
            jnp.float32),
    )


def prepare_kernel_params(params):
    """Fold BN + nutrition scales into weights, pad/fuse, cast matmul operands."""
    # BatchNorm1d (eval) folded into fc1: y = (xW + b1 - m)*s + bb, s = g*rsqrt(v+eps)
    s = params["bn_g"] * jax.lax.rsqrt(params["bn_v"] + BN_EPS)
    fc1_w = params["fc1_w"] * s
    fc1_b = (params["fc1_b"] - params["bn_m"]) * s + params["bn_b"]
    fc1_w = jnp.pad(fc1_w, ((0, FEAT_PAD - FEAT_DIM), (0, 0)))

    conv_w = jnp.pad(params["conv_w"], ((0, 0), (0, 0), (0, FEAT_PAD - FEAT_DIM)))
    conv_b = jnp.pad(params["conv_b"], ((0, 0), (0, FEAT_PAD - FEAT_DIM)))

    # Nutrition scales folded into weights/bias (valid: scales > 0, so
    # clamp(min=0) commutes with the multiply).  Fuse with cls1 into one matmul.
    nut_w = params["nut_w"] * params["nut_scale"]
    nut_b = params["nut_b"] * params["nut_scale"]
    heads_w = jnp.concatenate(
        [params["cls1_w"],
         jnp.pad(nut_w, ((0, 0), (0, NUT_PAD - nut_w.shape[1])))], axis=1)
    heads_b = jnp.concatenate(
        [params["cls1_b"],
         jnp.pad(nut_b, ((0, 0), (0, NUT_PAD - nut_b.shape[1])))], axis=1)

    n_cls = params["cls2_w"].shape[1]
    cls2_w = jnp.pad(params["cls2_w"], ((0, 0), (0, OUT_PAD - n_cls)))
    cls2_b = jnp.pad(params["cls2_b"], ((0, 0), (0, OUT_PAD - n_cls)))

    bf16 = jnp.bfloat16
    return dict(
        conv_w=conv_w.astype(bf16), conv_b=conv_b.astype(jnp.float32),
        fc1_w=fc1_w.astype(bf16), fc1_b=fc1_b.astype(jnp.float32),
        heads_w=heads_w.astype(bf16), heads_b=heads_b.astype(jnp.float32),
        cls2_w=cls2_w.astype(bf16), cls2_b=cls2_b.astype(jnp.float32),
        num_classes=n_cls,
    )


# --------------------------------------------------------------------------
# Sizing helpers.
# --------------------------------------------------------------------------
def _round_up(x, m):
    return ((x + m - 1) // m) * m


def _pick_band(p_ext, max_rows=8192):
    """Rows of ReLU(conv) processed per inner-loop band.

    Budget: the f32 [band, 128] conv temp costs 512 B/row, so 8192 rows keeps
    it at 4 MiB -- comfortable even on v7x's 64 MiB VMEM -- while staying far
    above the overhead-bound regime the review flagged at small tiles.
    """
    return min(_round_up(p_ext, 8), max_rows)


def _vmem_limit_bytes():
    """Generation-aware VMEM budget: ~48 MiB on v7x (64 MiB physical), ~96 MiB
    on v5e/v6e (128 MiB physical)."""
    try:
        cap = int(pltpu.get_tpu_info().vmem_capacity_bytes)
    except Exception:
        cap = 64 * 1024 * 1024
    return int(min(cap * 3 // 4, 100 * 1024 * 1024))


# --------------------------------------------------------------------------
# Forward wrapper.
# --------------------------------------------------------------------------
def multitask_foodnet_forward(x, params):
    B, C, H, W = x.shape
    kp = prepare_kernel_params(params)
    num_classes = kp["num_classes"]

    # ---- layout glue (NO im2col in HBM): channel-last, spatially padded,
    # row-flattened image.  Row index r = hh*(W+2) + ww, channel in the lanes.
    # For 3x3 tap (dh, dw), the operand for "extended" output pixel
    # p = h*(W+2) + w_ext is simply row (dh*(W+2) + dw + p): a contiguous
    # slice.  The two w_ext >= W columns per row are junk (row wrap) and get
    # masked out of the pool via pool_w.
    Wp = W + 2
    pad_pixels = (H + 2) * Wp
    p_ext = H * Wp                        # extended output pixels (incl. junk cols)
    band = _pick_band(p_ext)
    n_bands = pl.cdiv(p_ext, band)
    max_off = 2 * Wp + 2                  # largest (dh, dw) shift
    flat_rows = _round_up(max_off + n_bands * band, 16)

    xb = x.astype(jnp.bfloat16)                                   # cast first
    xcl = jnp.transpose(xb, (0, 2, 3, 1))                         # [B, H, W, C]
    xcl = jnp.pad(xcl, ((0, 0), (1, 1), (1, 1), (0, 0)))          # [B, H+2, W+2, C]
    x_flat = xcl.reshape(B, pad_pixels, C)
    x_flat = jnp.pad(x_flat, ((0, 0), (0, flat_rows - pad_pixels), (0, 0)))

    # Pool weights: zero for junk columns / band-tail rows, 1/(H*W) otherwise.
    ridx = np.arange(n_bands * band)
    valid = ((ridx % Wp) < W) & (ridx < p_ext)
    pool_w = jnp.asarray(
        (valid.astype(np.float32) / float(H * W)).reshape(n_bands, band))

    offsets = tuple(dh * Wp + dw for dh in range(3) for dw in range(3))
    backbone = functools.partial(_backbone_kernel, int(n_bands), band, offsets)

    # ---- backbone pallas_call: one image per grid step, batch axis parallel
    # (megacore-shardable on v7x; no cross-image carry).  Only the ~40 KiB of
    # conv weights are resident -- the FC weights live in the second call.
    feats = pl.pallas_call(
        backbone,
        out_shape=jax.ShapeDtypeStruct((B, 1, FEAT_PAD), jnp.float32),
        grid_spec=pltpu.PrefetchScalarGridSpec(
            num_scalar_prefetch=0,
            grid=(B,),
            in_specs=[
                pl.BlockSpec((1, flat_rows, C), lambda b: (b, 0, 0)),   # image
                pl.BlockSpec(kp["conv_w"].shape, lambda b: (0, 0, 0)),
                pl.BlockSpec(kp["conv_b"].shape, lambda b: (0, 0)),
                pl.BlockSpec(pool_w.shape, lambda b: (0, 0)),
            ],
            out_specs=pl.BlockSpec((1, 1, FEAT_PAD), lambda b: (b, 0, 0)),
        ),
        compiler_params=pltpu.CompilerParams(
            dimension_semantics=("parallel",),
            vmem_limit_bytes=_vmem_limit_bytes(),
        ),
    )(x_flat, kp["conv_w"], kp["conv_b"], pool_w)

    feats = feats.reshape(B, FEAT_PAD)

    # ---- head pallas_call: single step, whole arrays in VMEM (~1.7 MiB total).
    class_pad, nut_pad = pl.pallas_call(
        _head_kernel,
        out_shape=(jax.ShapeDtypeStruct((B, OUT_PAD), jnp.float32),
                   jax.ShapeDtypeStruct((B, OUT_PAD), jnp.float32)),
    )(feats, kp["fc1_w"], kp["fc1_b"], kp["heads_w"], kp["heads_b"],
      kp["cls2_w"], kp["cls2_b"])

    return {"class": class_pad[:, :num_classes],
            "nutrition": nut_pad[:, :4]}


if __name__ == "__main__":
    key = jax.random.PRNGKey(0)
    k_x, k_p = jax.random.split(key)

    B, C, H, W = 2, 4, 16, 16
    x = jax.random.normal(k_x, (B, C, H, W), jnp.float32)
    params = init_params(k_p, in_channels=C)

    out = jax.jit(multitask_foodnet_forward)(x, params)
    jax.block_until_ready(out)

    assert out["class"].shape == (B, NUM_CLASSES)
    assert out["nutrition"].shape == (B, 4)
    print("KERNEL_OK")
</pallas_src>

<mosaic_0001>
module attributes {stable_mosaic.version = 11 : i64} {
  func.func @_backbone_kernel(%arg0: i32, %arg1: memref<1x336x4xbf16, #tpu.memory_space<vmem>>, %arg2: memref<9x4x128xbf16, #tpu.memory_space<vmem>>, %arg3: memref<1x128xf32, #tpu.memory_space<vmem>>, %arg4: memref<1x288xf32, #tpu.memory_space<vmem>>, %arg5: memref<1x1x128xf32, #tpu.memory_space<vmem>>) attributes {dimension_semantics = [#tpu.dimension_semantics<parallel>], iteration_bounds = array<i64: 2>, scalar_prefetch = 0 : i64, scratch_operands = 0 : i64, tpu.core_type = #tpu.core_type<tc>, window_params = [{transform_indices = @transform_0, window_bounds = array<i64: 1, 336, 4>}, {pipeline_mode = #tpu.pipeline_mode<synchronous>, transform_indices = @transform_1, window_bounds = array<i64: 9, 4, 128>}, {pipeline_mode = #tpu.pipeline_mode<synchronous>, transform_indices = @transform_2, window_bounds = array<i64: 1, 128>}, {pipeline_mode = #tpu.pipeline_mode<synchronous>, transform_indices = @transform_3, window_bounds = array<i64: 1, 288>}, {transform_indices = @transform_4, window_bounds = array<i64: 1, 1, 128>}]} {
    %cst = arith.constant 0.000000e+00 : f32
    %0 = vector.broadcast %cst : f32 to vector<1x128xf32>
    %cst_0 = arith.constant 0.000000e+00 : f32
    %1 = vector.broadcast %cst_0 : f32 to vector<288x128xf32>
    %c0 = arith.constant 0 : index
    %c0_1 = arith.constant 0 : index
    %c0_2 = arith.constant 0 : index
    %2 = vector.load %arg1[%c0, %c0_1, %c0_2] : memref<1x336x4xbf16, #tpu.memory_space<vmem>>, vector<1x288x4xbf16>
    %3 = vector.shape_cast %2 : vector<1x288x4xbf16> to vector<288x4xbf16>
    %c0_3 = arith.constant 0 : index
    %c0_4 = arith.constant 0 : index
    %c0_5 = arith.constant 0 : index
    %4 = vector.load %arg2[%c0_3, %c0_4, %c0_5] : memref<9x4x128xbf16, #tpu.memory_space<vmem>>, vector<1x4x128xbf16>
    %5 = vector.shape_cast %4 : vector<1x4x128xbf16> to vector<4x128xbf16>
    %cst_6 = arith.constant dense<0.000000e+00> : vector<288x128xf32>
    %6 = tpu.matmul %3, %5, %cst_6 {dimension_numbers = #tpu.dot_dimension_numbers<[1], [0], [0], [1], [0, 0, 1, 1], [], []>} : vector<288x4xbf16>, vector<4x128xbf16>, vector<288x128xf32> -> vector<288x128xf32>
    %7 = arith.addf %1, %6 : vector<288x128xf32>
    %c0_7 = arith.constant 0 : index
    %c1 = arith.constant 1 : index
    %c0_8 = arith.constant 0 : index
    %8 = vector.load %arg1[%c0_7, %c1, %c0_8] : memref<1x336x4xbf16, #tpu.memory_space<vmem>>, vector<1x288x4xbf16>
    %9 = vector.shape_cast %8 : vector<1x288x4xbf16> to vector<288x4xbf16>
    %c1_9 = arith.constant 1 : index
    %c0_10 = arith.constant 0 : index
    %c0_11 = arith.constant 0 : index
    %10 = vector.load %arg2[%c1_9, %c0_10, %c0_11] : memref<9x4x128xbf16, #tpu.memory_space<vmem>>, vector<1x4x128xbf16>
    %11 = vector.shape_cast %10 : vector<1x4x128xbf16> to vector<4x128xbf16>
    %cst_12 = arith.constant dense<0.000000e+00> : vector<288x128xf32>
    %12 = tpu.matmul %9, %11, %cst_12 {dimension_numbers = #tpu.dot_dimension_numbers<[1], [0], [0], [1], [0, 0, 1, 1], [], []>} : vector<288x4xbf16>, vector<4x128xbf16>, vector<288x128xf32> -> vector<288x128xf32>
    %13 = arith.addf %7, %12 : vector<288x128xf32>
    %c0_13 = arith.constant 0 : index
    %c2 = arith.constant 2 : index
    %c0_14 = arith.constant 0 : index
    %14 = vector.load %arg1[%c0_13, %c2, %c0_14] : memref<1x336x4xbf16, #tpu.memory_space<vmem>>, vector<1x288x4xbf16>
    %15 = vector.shape_cast %14 : vector<1x288x4xbf16> to vector<288x4xbf16>
    %c2_15 = arith.constant 2 : index
    %c0_16 = arith.constant 0 : index
    %c0_17 = arith.constant 0 : index
    %16 = vector.load %arg2[%c2_15, %c0_16, %c0_17] : memref<9x4x128xbf16, #tpu.memory_space<vmem>>, vector<1x4x128xbf16>
    %17 = vector.shape_cast %16 : vector<1x4x128xbf16> to vector<4x128xbf16>
    %cst_18 = arith.constant dense<0.000000e+00> : vector<288x128xf32>
    %18 = tpu.matmul %15, %17, %cst_18 {dimension_numbers = #tpu.dot_dimension_numbers<[1], [0], [0], [1], [0, 0, 1, 1], [], []>} : vector<288x4xbf16>, vector<4x128xbf16>, vector<288x128xf32> -> vector<288x128xf32>
    %19 = arith.addf %13, %18 : vector<288x128xf32>
    %c0_19 = arith.constant 0 : index
    %c18 = arith.constant 18 : index
    %c0_20 = arith.constant 0 : index
    %20 = vector.load %arg1[%c0_19, %c18, %c0_20] : memref<1x336x4xbf16, #tpu.memory_space<vmem>>, vector<1x288x4xbf16>
    %21 = vector.shape_cast %20 : vector<1x288x4xbf16> to vector<288x4xbf16>
    %c3 = arith.constant 3 : index
    %c0_21 = arith.constant 0 : index
    %c0_22 = arith.constant 0 : index
    %22 = vector.load %arg2[%c3, %c0_21, %c0_22] : memref<9x4x128xbf16, #tpu.memory_space<vmem>>, vector<1x4x128xbf16>
    %23 = vector.shape_cast %22 : vector<1x4x128xbf16> to vector<4x128xbf16>
    %cst_23 = arith.constant dense<0.000000e+00> : vector<288x128xf32>
    %24 = tpu.matmul %21, %23, %cst_23 {dimension_numbers = #tpu.dot_dimension_numbers<[1], [0], [0], [1], [0, 0, 1, 1], [], []>} : vector<288x4xbf16>, vector<4x128xbf16>, vector<288x128xf32> -> vector<288x128xf32>
    %25 = arith.addf %19, %24 : vector<288x128xf32>
    %c0_24 = arith.constant 0 : index
    %c19 = arith.constant 19 : index
    %c0_25 = arith.constant 0 : index
    %26 = vector.load %arg1[%c0_24, %c19, %c0_25] : memref<1x336x4xbf16, #tpu.memory_space<vmem>>, vector<1x288x4xbf16>
    %27 = vector.shape_cast %26 : vector<1x288x4xbf16> to vector<288x4xbf16>
    %c4 = arith.constant 4 : index
    %c0_26 = arith.constant 0 : index
    %c0_27 = arith.constant 0 : index
    %28 = vector.load %arg2[%c4, %c0_26, %c0_27] : memref<9x4x128xbf16, #tpu.memory_space<vmem>>, vector<1x4x128xbf16>
    %29 = vector.shape_cast %28 : vector<1x4x128xbf16> to vector<4x128xbf16>
    %cst_28 = arith.constant dense<0.000000e+00> : vector<288x128xf32>
    %30 = tpu.matmul %27, %29, %cst_28 {dimension_numbers = #tpu.dot_dimension_numbers<[1], [0], [0], [1], [0, 0, 1, 1], [], []>} : vector<288x4xbf16>, vector<4x128xbf16>, vector<288x128xf32> -> vector<288x128xf32>
    %31 = arith.addf %25, %30 : vector<288x128xf32>
    %c0_29 = arith.constant 0 : index
    %c20 = arith.constant 20 : index
    %c0_30 = arith.constant 0 : index
    %32 = vector.load %arg1[%c0_29, %c20, %c0_30] : memref<1x336x4xbf16, #tpu.memory_space<vmem>>, vector<1x288x4xbf16>
    %33 = vector.shape_cast %32 : vector<1x288x4xbf16> to vector<288x4xbf16>
    %c5 = arith.constant 5 : index
    %c0_31 = arith.constant 0 : index
    %c0_32 = arith.constant 0 : index
    %34 = vector.load %arg2[%c5, %c0_31, %c0_32] : memref<9x4x128xbf16, #tpu.memory_space<vmem>>, vector<1x4x128xbf16>
    %35 = vector.shape_cast %34 : vector<1x4x128xbf16> to vector<4x128xbf16>
    %cst_33 = arith.constant dense<0.000000e+00> : vector<288x128xf32>
    %36 = tpu.matmul %33, %35, %cst_33 {dimension_numbers = #tpu.dot_dimension_numbers<[1], [0], [0], [1], [0, 0, 1, 1], [], []>} : vector<288x4xbf16>, vector<4x128xbf16>, vector<288x128xf32> -> vector<288x128xf32>
    %37 = arith.addf %31, %36 : vector<288x128xf32>
    %c0_34 = arith.constant 0 : index
    %c36 = arith.constant 36 : index
    %c0_35 = arith.constant 0 : index
    %38 = vector.load %arg1[%c0_34, %c36, %c0_35] : memref<1x336x4xbf16, #tpu.memory_space<vmem>>, vector<1x288x4xbf16>
    %39 = vector.shape_cast %38 : vector<1x288x4xbf16> to vector<288x4xbf16>
    %c6 = arith.constant 6 : index
    %c0_36 = arith.constant 0 : index
    %c0_37 = arith.constant 0 : index
    %40 = vector.load %arg2[%c6, %c0_36, %c0_37] : memref<9x4x128xbf16, #tpu.memory_space<vmem>>, vector<1x4x128xbf16>
    %41 = vector.shape_cast %40 : vector<1x4x128xbf16> to vector<4x128xbf16>
    %cst_38 = arith.constant dense<0.000000e+00> : vector<288x128xf32>
    %42 = tpu.matmul %39, %41, %cst_38 {dimension_numbers = #tpu.dot_dimension_numbers<[1], [0], [0], [1], [0, 0, 1, 1], [], []>} : vector<288x4xbf16>, vector<4x128xbf16>, vector<288x128xf32> -> vector<288x128xf32>
    %43 = arith.addf %37, %42 : vector<288x128xf32>
    %c0_39 = arith.constant 0 : index
    %c37 = arith.constant 37 : index
    %c0_40 = arith.constant 0 : index
    %44 = vector.load %arg1[%c0_39, %c37, %c0_40] : memref<1x336x4xbf16, #tpu.memory_space<vmem>>, vector<1x288x4xbf16>
    %45 = vector.shape_cast %44 : vector<1x288x4xbf16> to vector<288x4xbf16>
    %c7 = arith.constant 7 : index
    %c0_41 = arith.constant 0 : index
    %c0_42 = arith.constant 0 : index
    %46 = vector.load %arg2[%c7, %c0_41, %c0_42] : memref<9x4x128xbf16, #tpu.memory_space<vmem>>, vector<1x4x128xbf16>
    %47 = vector.shape_cast %46 : vector<1x4x128xbf16> to vector<4x128xbf16>
    %cst_43 = arith.constant dense<0.000000e+00> : vector<288x128xf32>
    %48 = tpu.matmul %45, %47, %cst_43 {dimension_numbers = #tpu.dot_dimension_numbers<[1], [0], [0], [1], [0, 0, 1, 1], [], []>} : vector<288x4xbf16>, vector<4x128xbf16>, vector<288x128xf32> -> vector<288x128xf32>
    %49 = arith.addf %43, %48 : vector<288x128xf32>
    %c0_44 = arith.constant 0 : index
    %c38 = arith.constant 38 : index
    %c0_45 = arith.constant 0 : index
    %50 = vector.load %arg1[%c0_44, %c38, %c0_45] : memref<1x336x4xbf16, #tpu.memory_space<vmem>>, vector<1x288x4xbf16>
    %51 = vector.shape_cast %50 : vector<1x288x4xbf16> to vector<288x4xbf16>
    %c8 = arith.constant 8 : index
    %c0_46 = arith.constant 0 : index
    %c0_47 = arith.constant 0 : index
    %52 = vector.load %arg2[%c8, %c0_46, %c0_47] : memref<9x4x128xbf16, #tpu.memory_space<vmem>>, vector<1x4x128xbf16>
    %53 = vector.shape_cast %52 : vector<1x4x128xbf16> to vector<4x128xbf16>
    %cst_48 = arith.constant dense<0.000000e+00> : vector<288x128xf32>
    %54 = tpu.matmul %51, %53, %cst_48 {dimension_numbers = #tpu.dot_dimension_numbers<[1], [0], [0], [1], [0, 0, 1, 1], [], []>} : vector<288x4xbf16>, vector<4x128xbf16>, vector<288x128xf32> -> vector<288x128xf32>
    %55 = arith.addf %49, %54 : vector<288x128xf32>
    %c0_49 = arith.constant 0 : index
    %c0_50 = arith.constant 0 : index
    %56 = vector.load %arg3[%c0_49, %c0_50] : memref<1x128xf32, #tpu.memory_space<vmem>>, vector<1x128xf32>
    %57 = vector.broadcast %56 : vector<1x128xf32> to vector<288x128xf32>
    %58 = arith.addf %55, %57 : vector<288x128xf32>
    %cst_51 = arith.constant 0.000000e+00 : f32
    %59 = vector.broadcast %cst_51 : f32 to vector<288x128xf32>
    %60 = arith.maximumf %58, %59 : vector<288x128xf32>
    %c0_52 = arith.constant 0 : index
    %c0_53 = arith.constant 0 : index
    %61 = vector.load %arg4[%c0_52, %c0_53] : memref<1x288xf32, #tpu.memory_space<vmem>>, vector<1x288xf32>
    %cst_54 = arith.constant dense<0.000000e+00> : vector<1x128xf32>
    %62 = tpu.matmul %61, %60, %cst_54 {dimension_numbers = #tpu.dot_dimension_numbers<[1], [0], [0], [1], [0, 0, 1, 1], [], []>} : vector<1x288xf32>, vector<288x128xf32>, vector<1x128xf32> -> vector<1x128xf32>
    %63 = arith.addf %0, %62 : vector<1x128xf32>
    %c0_55 = arith.constant 0 : index
    %c0_56 = arith.constant 0 : index
    %c0_57 = arith.constant 0 : index
    %64 = vector.load %arg5[%c0_55, %c0_56, %c0_57] : memref<1x1x128xf32, #tpu.memory_space<vmem>>, vector<1x1x128xf32>
    %65 = vector.shape_cast %64 : vector<1x1x128xf32> to vector<1x128xf32>
    %66 = vector.shape_cast %63 : vector<1x128xf32> to vector<1x1x128xf32>
    tpu.vector_store %arg5[%c0_55, %c0_56, %c0_57], %66 {strides = array<i32>} : memref<1x1x128xf32, #tpu.memory_space<vmem>>, vector<1x1x128xf32>,
    return
  }
  func.func @transform_0(%arg0: i32) -> (i32, i32, i32) {
    %c0_i32 = arith.constant 0 : i32
    %c0_i32_0 = arith.constant 0 : i32
    %c0_i32_1 = arith.constant 0 : i32
    return %arg0, %c0_i32, %c0_i32_0 : i32, i32, i32
  }
  func.func @transform_1(%arg0: i32) -> (i32, i32, i32) {
    %c0_i32 = arith.constant 0 : i32
    %c0_i32_0 = arith.constant 0 : i32
    %c0_i32_1 = arith.constant 0 : i32
    %c0_i32_2 = arith.constant 0 : i32
    return %c0_i32, %c0_i32_0, %c0_i32_1 : i32, i32, i32
  }
  func.func @transform_2(%arg0: i32) -> (i32, i32) {
    %c0_i32 = arith.constant 0 : i32
    %c0_i32_0 = arith.constant 0 : i32
    %c0_i32_1 = arith.constant 0 : i32
    return %c0_i32, %c0_i32_0 : i32, i32
  }
  func.func @transform_3(%arg0: i32) -> (i32, i32) {
    %c0_i32 = arith.constant 0 : i32
    %c0_i32_0 = arith.constant 0 : i32
    %c0_i32_1 = arith.constant 0 : i32
    return %c0_i32, %c0_i32_0 : i32, i32
  }
  func.func @transform_4(%arg0: i32) -> (i32, i32, i32) {
    %c0_i32 = arith.constant 0 : i32
    %c0_i32_0 = arith.constant 0 : i32
    %c0_i32_1 = arith.constant 0 : i32
    return %arg0, %c0_i32, %c0_i32_0 : i32, i32, i32
  }
}

module attributes {stable_mosaic.version = 11 : i64} {
  func.func @_head_kernel(%arg0: memref<2x128xf32, #tpu.memory_space<vmem>>, %arg1: memref<128x1024xbf16, #tpu.memory_space<vmem>>, %arg2: memref<1x1024xf32, #tpu.memory_space<vmem>>, %arg3: memref<1024x640xbf16, #tpu.memory_space<vmem>>, %arg4: memref<1x640xf32, #tpu.memory_space<vmem>>, %arg5: memref<512x128xbf16, #tpu.memory_space<vmem>>, %arg6: memref<1x128xf32, #tpu.memory_space<vmem>>, %arg7: memref<2x128xf32, #tpu.memory_space<vmem>>, %arg8: memref<2x128xf32, #tpu.memory_space<vmem>>) attributes {dimension_semantics = [], scalar_prefetch = 0 : i64, scratch_operands = 0 : i64, tpu.core_type = #tpu.core_type<tc>} {
    %c0 = arith.constant 0 : index
    %c0_0 = arith.constant 0 : index
    %0 = vector.load %arg0[%c0, %c0_0] : memref<2x128xf32, #tpu.memory_space<vmem>>, vector<2x128xf32>
    %1 = arith.truncf %0 : vector<2x128xf32> to vector<2x128xbf16>
    %c0_1 = arith.constant 0 : index
    %c0_2 = arith.constant 0 : index
    %2 = vector.load %arg1[%c0_1, %c0_2] : memref<128x1024xbf16, #tpu.memory_space<vmem>>, vector<128x1024xbf16>
    %cst = arith.constant dense<0.000000e+00> : vector<2x1024xf32>
    %3 = tpu.matmul %1, %2, %cst {dimension_numbers = #tpu.dot_dimension_numbers<[1], [0], [0], [1], [0, 0, 1, 1], [], []>} : vector<2x128xbf16>, vector<128x1024xbf16>, vector<2x1024xf32> -> vector<2x1024xf32>
    %c0_3 = arith.constant 0 : index
    %c0_4 = arith.constant 0 : index
    %4 = vector.load %arg2[%c0_3, %c0_4] : memref<1x1024xf32, #tpu.memory_space<vmem>>, vector<1x1024xf32>
    %5 = vector.broadcast %4 : vector<1x1024xf32> to vector<2x1024xf32>
    %6 = arith.addf %3, %5 : vector<2x1024xf32>
    %cst_5 = arith.constant 0.000000e+00 : f32
    %7 = vector.broadcast %cst_5 : f32 to vector<2x1024xf32>
    %8 = arith.maximumf %6, %7 : vector<2x1024xf32>
    %9 = arith.truncf %8 : vector<2x1024xf32> to vector<2x1024xbf16>
    %c0_6 = arith.constant 0 : index
    %c0_7 = arith.constant 0 : index
    %10 = vector.load %arg3[%c0_6, %c0_7] : memref<1024x640xbf16, #tpu.memory_space<vmem>>, vector<1024x640xbf16>
    %cst_8 = arith.constant dense<0.000000e+00> : vector<2x640xf32>
    %11 = tpu.matmul %9, %10, %cst_8 {dimension_numbers = #tpu.dot_dimension_numbers<[1], [0], [0], [1], [0, 0, 1, 1], [], []>} : vector<2x1024xbf16>, vector<1024x640xbf16>, vector<2x640xf32> -> vector<2x640xf32>
    %c0_9 = arith.constant 0 : index
    %c0_10 = arith.constant 0 : index
    %12 = vector.load %arg4[%c0_9, %c0_10] : memref<1x640xf32, #tpu.memory_space<vmem>>, vector<1x640xf32>
    %13 = vector.broadcast %12 : vector<1x640xf32> to vector<2x640xf32>
    %14 = arith.addf %11, %13 : vector<2x640xf32>
    %15 = vector.extract_strided_slice %14 {offsets = [0, 0], sizes = [2, 512], strides = [1, 1]} : vector<2x640xf32> to vector<2x512xf32>
    %cst_11 = arith.constant 0.000000e+00 : f32
    %16 = vector.broadcast %cst_11 : f32 to vector<2x512xf32>
    %17 = arith.maximumf %15, %16 : vector<2x512xf32>
    %18 = arith.truncf %17 : vector<2x512xf32> to vector<2x512xbf16>
    %c0_12 = arith.constant 0 : index
    %c0_13 = arith.constant 0 : index
    %19 = vector.load %arg5[%c0_12, %c0_13] : memref<512x128xbf16, #tpu.memory_space<vmem>>, vector<512x128xbf16>
    %cst_14 = arith.constant dense<0.000000e+00> : vector<2x128xf32>
    %20 = tpu.matmul %18, %19, %cst_14 {dimension_numbers = #tpu.dot_dimension_numbers<[1], [0], [0], [1], [0, 0, 1, 1], [], []>} : vector<2x512xbf16>, vector<512x128xbf16>, vector<2x128xf32> -> vector<2x128xf32>
    %c0_15 = arith.constant 0 : index
    %c0_16 = arith.constant 0 : index
    %21 = vector.load %arg6[%c0_15, %c0_16] : memref<1x128xf32, #tpu.memory_space<vmem>>, vector<1x128xf32>
    %22 = vector.broadcast %21 : vector<1x128xf32> to vector<2x128xf32>
    %23 = arith.addf %20, %22 : vector<2x128xf32>
    %c0_17 = arith.constant 0 : index
    %c0_18 = arith.constant 0 : index
    %24 = vector.load %arg7[%c0_17, %c0_18] : memref<2x128xf32, #tpu.memory_space<vmem>>, vector<2x128xf32>
    tpu.vector_store %arg7[%c0_17, %c0_18], %23 {strides = array<i32>} : memref<2x128xf32, #tpu.memory_space<vmem>>, vector<2x128xf32>,
    %25 = vector.extract_strided_slice %14 {offsets = [0, 512], sizes = [2, 128], strides = [1, 1]} : vector<2x640xf32> to vector<2x128xf32>
    %cst_19 = arith.constant 0.000000e+00 : f32
    %26 = vector.broadcast %cst_19 : f32 to vector<2x128xf32>
    %27 = arith.maximumf %25, %26 : vector<2x128xf32>
    %28 = tpu.iota {dimensions = array<i32: 1>} : vector<1x128xi32>
    %c2_i32 = arith.constant 2 : i32
    %29 = vector.broadcast %c2_i32 : i32 to vector<1x128xi32>
    %30 = arith.cmpi sge, %28, %29 : vector<1x128xi32>
    %cst_20 = arith.constant 1.000000e+02 : f32
    %31 = vector.broadcast %cst_20 : f32 to vector<2x128xf32>
    %32 = arith.minimumf %27, %31 : vector<2x128xf32>
    %33 = vector.shape_cast %30 : vector<1x128xi1> to vector<1x128xi1>
    %34 = vector.broadcast %33 : vector<1x128xi1> to vector<2x128xi1>
    %35 = arith.select %34, %32, %27 : vector<2x128xi1>, vector<2x128xf32>
    %c0_21 = arith.constant 0 : index
    %c0_22 = arith.constant 0 : index
    %36 = vector.load %arg8[%c0_21, %c0_22] : memref<2x128xf32, #tpu.memory_space<vmem>>, vector<2x128xf32>
    tpu.vector_store %arg8[%c0_21, %c0_22], %35 {strides = array<i32>} : memref<2x128xf32, #tpu.memory_space<vmem>>, vector<2x128xf32>,
    return
  }
}

</mosaic_0001>

<bundles_post_ra>
// kernel: mul.21
= control target key start
LH: loop header
LB: loop body
LE: loop exit
PB: predicated region body
PF: predicated region fallthrough
CT: control target
= control target key end

     0   :  { %s34_s0 = inlined_call_operand.vmem [shape: f32[1,4], index: 0, kind: input, shape index: {}]   ;;  %s35_s1 = inlined_call_operand.vmem [shape: f32[1,4], index: 1, kind: input, shape index: {}]   ;;  %s36_s2 = inlined_call_operand.vmem [shape: f32[1,4], index: 2, kind: output, shape index: {}]  }
   0x1   :  { %v3_v0 = vld [vmem:[%s34_s0] sm:$0x1] }
   0x2   :  { %v4_v1 = vld [vmem:[%s35_s1] sm:$0x1] }
   0x3   :  { %v7_v2 = vmul.f32 %v4_v1, %v3_v0 }
   0x5   :  { %9 = vst [vmem:[%s36_s2] sm:$0x1] %v7_v2 }

// kernel: multitask_foodnet_forward.2
= control target key start
LH: loop header
LB: loop body
LE: loop exit
PB: predicated region body
PF: predicated region fallthrough
CT: control target
= control target key end

     0   :  { %s5193_s15 = smov 0   ;;  %s6171_s0 = inlined_call_operand.vmem [shape: bf16[2,336,4], index: 0, kind: input, shape index: {}]   ;;  %s6172_s1 = inlined_call_operand.vmem [shape: bf16[9,4,128], index: 1, kind: input, shape index: {}]   ;;  %s6173_s2 = inlined_call_operand.vmem [shape: f32[1,128], index: 2, kind: input, shape index: {}]   ;;  %s6174_s3 = inlined_call_operand.vmem [shape: f32[1,288], index: 3, kind: input, shape index: {}]   ;;  %s6175_s4 = inlined_call_operand.vmem [shape: f32[2,1,128], index: 4, kind: output, shape index: {}]  }
   0x1 LB: > { %s3929_s16 = sadd.s32 4294967295, %s5163_s15   ;;  %p3933_p0 = scmp.ge.s32.totalorder %s5163_s15, 1  ;;  %s5163_s15 = sphi %s5193_s15, %s14_s15  }
   0x2   : > { %p162_p1 = scmp.lt.s32.totalorder %s5163_s15, 3 }
   0x4   : > { %p163_p2 = pnand %p3933_p0, %p162_p1 }
   0x6   : > { %166 = sbr.rel (%p163_p2) target bundleno = 831 (0x33f), region = 36 }
   0xd   : > { %v3935_v0 = vld [vmem:[%s6172_s1 + $0x2] sm:$0x3]  ;;  %vm532_vm0 = vcmask 1041408   ;;  %v4049_v1 = vld [vmem:[%s6172_s1 + $0x8] sm:$0x3]  ;;  %p186_p3 = scmp.lt.s32.totalorder %s3929_s16, 1 }
   0xe   : > { %5061 = vmatprep.subr.msk.bf16.mxu1 %vm532_vm0, %v3935_v0  ;;  %5065 = vmatprep.subr.msk.bf16.mxu0 %vm532_vm0, %v4049_v1  ;;  %v534_v2 = vsel %vm532_vm0, %v3935_v0, 0  ;;  %v1914_v3 = vsel %vm532_vm0, %v4049_v1, 0  ;;  %v4069_v4 = vld [vmem:[%s6172_s1 + $0xa] sm:$0x3]  ;;  %v231_v5 = vld [vmem:[%s6172_s1] sm:$0x3] }
   0xf   : > { %4383 = vmatpush3.bf16.msra.mxu1 %v534_v2  ;;  %4535 = vmatpush3.bf16.msra.mxu0 %v1914_v3  ;;  %s6191_s16 = smov (!%p186_p3, %s3929_s16), 1  ;;  %vm328_vm1 = vsmask.f32 7424  ;;  %vm477_vm2 = vcmask 31744   ;;  %v5228_v6 = vsel %vm532_vm0, %v4069_v4, 0  ;;  %v750_v12 = vsel %vm532_vm0, %v231_v5, 0 }
  0x10   : > { %5066 = vmatprep.subr.msk.bf16.mxu0 %vm532_vm0, %v4069_v4  ;;  %s5070_s25 = smul.u32 168, %s6191_s16  ;;  %5062 = vmatprep.subr.msk.bf16.mxu1 %vm532_vm0, %v231_v5  ;;  %vm1688_vm3 = vsmask.f32 6400  ;;  %v5305_v0 = vld [vmem:[%s6172_s1 + $0xc] sm:$0x3]  ;;  %vm2135_vm4 = vcmask 1045504   ;;  %s193_s21 = scalar_lea.vmem %s6175_s4, %s6191_s16 }
  0x11   : > { %vm935_vm5 = vcmask 1046528   ;;  %vm2888_vm6 = vsmask.f32 5376  ;;  %vm3335_vm7 = vcmask 1044480   ;;  %vm5166_vm8 = vmmov 0  }
  0x12   : > { %s5225_s28 = scalar_lea.vmem %s6171_s0, %s5070_s25  ;;  %vm3738_vm9 = vcmask 261120  }
  0x13   : > { %v195_v7 = vld [vmem:[%s5225_s28] sm:$0xf]  ;;  %v5232_v8 = vld [vmem:[%s5225_s28 + $0x4] sm:$0xf]  ;;  %v5238_v10 = vld [vmem:[%s5225_s28 + $0x8] sm:$0xff]  }
  0x14   : > { %6182 = vst [vmem:[#allocation2_spill] sm:$0xff] %v5232_v8  ;;  %v5235_v9 = vcombine.low %v195_v7, %v5232_v8  ;;  %v1243_v11 = vld [vmem:[%s5225_s28 + $0x8] sm:$0xe]  ;;  %v5243_v13 = vld [vmem:[%s5225_s28 + $0xc] sm:$0xf]  ;;  %v337_v16 = vshll.u32 %v5238_v10, 16 }
  0x15   : > { %v341_v17 = vshrl.u32 %v5238_v10, 16  ;;  %v5250_v18 = vld [vmem:[%s5225_s28 + $0x10] sm:$0xff]   ;;  %v5256_v20 = vcombine.low %v1243_v11, %v5243_v13  ;;  %v5264_v28 = vld [vmem:[%s5225_s28 + $0x18] sm:$0xff]   ;;  %v5270_v34 = vld [vmem:[%s5225_s28 + $0x20] sm:$0xff]  }
  0x16   : > { %v330_v14 = vshrl.u32 %v5235_v9, 16  ;;  %v332_v15 = vshll.u32 %v5235_v9, 16  ;;  %v5253_v19 = vld [vmem:[%s5225_s28 + $0x10] sm:$0xff]   ;;  %v339_v22 = vrot.slane %v337_v16, 1  ;;  %v1698_v23 = vshrl.u32 %v5250_v18, 16  ;;  %v5267_v33 = vld [vmem:[%s5225_s28 + $0x18] sm:$0xff]  }
  0x17   : > { %6183 = vst [vmem:[#allocation3_spill] sm:$0xff] %v5256_v20  ;;  %v1701_v24 = vshll.u32 %v5250_v18, 16  ;;  %v1690_v25 = vshrl.u32 %v5256_v20, 16  ;;  %v1693_v26 = vshll.u32 %v5256_v20, 16  ;;  %v345_v27 = vshll.u32 %v5253_v19, 16  ;;  %v5280_v47 = vld [vmem:[%s5225_s28 + $0x20] sm:$0xff]  }
  0x18   : > { %v334_v21 = vrot.slane %v332_v15, 1  ;;  %v343_v30 = vor.u32 %v341_v17, %v339_v22  ;;  %v1700_v31 = vrot.slane %v1698_v23, 1  ;;  %v1707_v38 = vshrl.u32 %v5264_v28, 16  ;;  %v5283_v48 = vld [vmem:[%s5225_s28 + $0x28] sm:$0xff]   ;;  %v5295_v58 = vld [vmem:[%s5225_s28 + $0x30] sm:$0xff]  }
  0x19   : > { %v1703_v32 = vrot.slane %v1701_v24, 2  ;;  %v1692_v35 = vrot.slane %v1690_v25, 1  ;;  %v1695_v36 = vrot.slane %v1693_v26, 2  ;;  %v347_v37 = vrot.slane %v345_v27, 1  ;;  %v5289_v53 = vld [vmem:[%s5225_s28 + $0x28] sm:$0xff]   ;;  %v5300_v63 = vld [vmem:[%s5225_s28 + $0x30] sm:$0xff]  }
  0x1a   : > { %v335_v29 = vor.u32 %v334_v21, %v330_v14  ;;  %v1710_v41 = vshll.u32 %v5264_v28, 16  ;;  %v349_v42 = vshrl.u32 %v5253_v19, 16  ;;  %v1709_v45 = vrot.slane %v1707_v38, 1  ;;  %v5317_v21 = vld [vmem:[%s5225_s28 + $0x38] sm:$0xff]  }
  0x1b   : > { %v1704_v40 = vor.u32 %v1703_v32, %v1700_v31  ;;  %v1696_v43 = vor.u32 %v1695_v36, %v1692_v35  ;;  %v348_v44 = vsel %vm328_vm1, %v343_v30, %v347_v37  ;;  %v353_v46 = vshll.u32 %v5267_v33, 16  ;;  %v5326_v31 = vld [vmem:[%s5225_s28 + $0x38] sm:$0xff]  }
  0x1c   : > { %v340_v39 = vsel %vm328_vm1, %v335_v29, %v339_v22  ;;  %v1712_v49 = vrot.slane %v1710_v41, 2  ;;  %v351_v50 = vor.u32 %v349_v42, %v347_v37  ;;  %v1716_v51 = vshrl.u32 %v5270_v34, 16  ;;  %v5337_v41 = vld [vmem:[%s5225_s28 + $0x40] sm:$0xff]  }
  0x1d   : > { %4384 = vmatprep.mubr.msk.bf16.mxu1 %vm477_vm2, %v340_v39  ;;  %v1719_v52 = vshll.u32 %v5270_v34, 16  ;;  %v1705_v54 = vsel %vm1688_vm3, %v1696_v43, %v1704_v40  ;;  %v355_v55 = vrot.slane %v353_v46, 1  ;;  %v357_v56 = vshrl.u32 %v5267_v33, 16  ;;  %v5342_v46 = vld [vmem:[%s5225_s28 + $0x40] sm:$0xff]  }
  0x1e   : > { %4385 = vmatmul.mubr.msk.bf16.vlgmr.msra.gmra.mrb[0].mxu1 %vm477_vm2, %v348_v44  ;;  %v361_v57 = vshll.u32 %v5280_v47, 16  ;;  %4536 = vmatprep.mubr.msk.bf16.mxu0 %vm477_vm2, %v1705_v54  ;;  %v1713_v59 = vor.u32 %v1712_v49, %v1709_v45  ;;  %v1718_v60 = vrot.slane %v1716_v51, 1  ;;  %v1725_v62 = vshrl.u32 %v5283_v48, 16 }
  0x1f   : > { %4421 = vmatpush3.bf16.msra.mxu1 %v750_v12  ;;  %v1721_v61 = vrot.slane %v1719_v52, 2  ;;  %v356_v1 = vsel %vm328_vm1, %v351_v50, %v355_v55  ;;  %v359_v2 = vor.u32 %v357_v56, %v355_v55  ;;  %v1728_v4 = vshll.u32 %v5283_v48, 16 }
  0x20   : > { %v363_v3 = vrot.slane %v361_v57, 1  ;;  %v1714_v5 = vsel %vm1688_vm3, %v1704_v40, %v1713_v59  ;;  %4388 = vmatprep.mubr.msk.bf16.mxu1 %vm477_vm2, %v356_v1  ;;  %v1727_v11 = vrot.slane %v1725_v62, 1  ;;  %v365_v12 = vshrl.u32 %v5280_v47, 16 }
  0x21   : > { %v1722_v7 = vor.u32 %v1721_v61, %v1718_v60  ;;  %4537 = vmatmul.mubr.msk.bf16.vlgmr.msra.gmra.mrb[0].mxu0 %vm477_vm2, %v1714_v5  ;;  %v1730_v15 = vrot.slane %v1728_v4, 2  ;;  %v369_v16 = vshll.u32 %v5289_v53, 16  ;;  %v1734_v17 = vshrl.u32 %v5295_v58, 16  ;;  %v5353_v60 = vld [vmem:[%s5225_s28 + $0x48] sm:$0xff]   ;;  %v5362_v5 = vld [vmem:[%s5225_s28 + $0x50] sm:$0xff]  }
  0x22   : > { %v364_v14 = vsel %vm328_vm1, %v359_v2, %v363_v3  ;;  %v367_v23 = vor.u32 %v365_v12, %v363_v3  ;;  %v1737_v24 = vshll.u32 %v5295_v58, 16  ;;  %v373_v25 = vshrl.u32 %v5289_v53, 16  ;;  %4573 = vmatpush3.bf16.msra.mxu0 %v5228_v6 }
  0x23   : > { %v1723_v22 = vsel %vm1688_vm3, %v1713_v59, %v1722_v7  ;;  %v1731_v26 = vor.u32 %v1730_v15, %v1727_v11  ;;  %v371_v27 = vrot.slane %v369_v16, 1  ;;  %v1736_v29 = vrot.slane %v1734_v17, 1  ;;  %5067 = vmatprep.subr.msk.bf16.mxu0 %vm532_vm0, %v5305_v0  ;;  %v5350_v59 = vld [vmem:[%s5225_s28 + $0x48] sm:$0xff]   ;;  %v5370_v17 = vld [vmem:[%s5225_s28 + $0x50] sm:$0xff]  }
  0x24   : > { %4540 = vmatprep.mubr.msk.bf16.mxu0 %vm477_vm2, %v1723_v22  ;;  %v377_v30 = vshll.u32 %v5300_v63, 16  ;;  %v1739_v32 = vrot.slane %v1737_v24, 2  ;;  %v1743_v35 = vshrl.u32 %v5317_v21, 16  ;;  %v1746_v6 = vshll.u32 %v5317_v21, 16  ;;  %v5375_v24 = vld [vmem:[%s5225_s28 + $0x58] sm:$0xff]  }
  0x25   : > { %v381_v36 = vshrl.u32 %v5300_v63, 16  ;;  %v1732_v37 = vsel %vm1688_vm3, %v1722_v7, %v1731_v26  ;;  %v372_v38 = vsel %vm328_vm1, %v367_v23, %v371_v27  ;;  %v375_v39 = vor.u32 %v373_v25, %v371_v27 }
  0x26   : > { %4389 = vmatmul.mubr.msk.bf16.gmra.mrb[4].mxu1 %vm477_vm2, %v364_v14  ;;  %v379_v40 = vrot.slane %v377_v30, 1  ;;  %v1740_v42 = vor.u32 %v1739_v32, %v1736_v29  ;;  %v1745_v43 = vrot.slane %v1743_v35, 1  ;;  %v1748_v44 = vrot.slane %v1746_v6, 2 }
  0x27   : > { %4392 = vmatprep.mubr.msk.bf16.mxu1 %vm477_vm2, %v372_v38  ;;  %v385_v45 = vshll.u32 %v5326_v31, 16  ;;  %v1752_v51 = vshrl.u32 %v5337_v41, 16  ;;  %v1755_v52 = vshll.u32 %v5337_v41, 16  ;;  %v389_v57 = vshrl.u32 %v5326_v31, 16 }
  0x28   : > { %v380_v49 = vsel %vm328_vm1, %v375_v39, %v379_v40  ;;  %v383_v50 = vor.u32 %v381_v36, %v379_v40  ;;  %v1741_v54 = vsel %vm1688_vm3, %v1731_v26, %v1740_v42  ;;  %v1749_v55 = vor.u32 %v1748_v44, %v1745_v43  ;;  %v5380_v36 = vld [vmem:[%s5225_s28 + $0x58] sm:$0xff]  }
  0x29   : > { %v387_v56 = vrot.slane %v385_v45, 1  ;;  %4541 = vmatmul.mubr.msk.bf16.gmra.mrb[4].mxu0 %vm477_vm2, %v1732_v37  ;;  %v1754_v61 = vrot.slane %v1752_v51, 1  ;;  %v1757_v62 = vrot.slane %v1755_v52, 2  ;;  %v393_v1 = vshll.u32 %v5342_v46, 16 }
  0x2a   : > { %v397_v2 = vshrl.u32 %v5342_v46, 16  ;;  %4544 = vmatprep.mubr.msk.bf16.mxu0 %vm477_vm2, %v1741_v54  ;;  %v1761_v4 = vshrl.u32 %v5350_v59, 16  ;;  %v1764_v11 = vshll.u32 %v5350_v59, 16  ;;  %v401_v12 = vshll.u32 %v5353_v60, 16 }
  0x2b   : > { %v388_v3 = vsel %vm328_vm1, %v383_v50, %v387_v56  ;;  %v1758_v7 = vor.u32 %v1757_v62, %v1754_v61  ;;  %v395_v14 = vrot.slane %v393_v1, 1  ;;  %v1770_v15 = vshrl.u32 %v5362_v5, 16 }
  0x2c   : > { %v1773_v16 = vshll.u32 %v5362_v5, 16  ;;  %v1750_v22 = vsel %vm1688_vm3, %v1740_v42, %v1749_v55  ;;  %v391_v23 = vor.u32 %v389_v57, %v387_v56  ;;  %v1763_v25 = vrot.slane %v1761_v4, 1  ;;  %v5388_v42 = vld [vmem:[%s5225_s28 + $0x60] sm:$0xff]   ;;  %v5401_v56 = vld [vmem:[%s5225_s28 + $0x68] sm:$0xff]  }
  0x2d   : > { %v1766_v26 = vrot.slane %v1764_v11, 2  ;;  %v399_v27 = vor.u32 %v397_v2, %v395_v14  ;;  %v403_v29 = vrot.slane %v401_v12, 1  ;;  %v1759_v30 = vsel %vm1688_vm3, %v1749_v55, %v1758_v7  ;;  %v5398_v55 = vld [vmem:[%s5225_s28 + $0x60] sm:$0xff]   ;;  %v5406_v4 = vld [vmem:[%s5225_s28 + $0x68] sm:$0xff]  }
  0x2e   : > { %4393 = vmatmul.mubr.msk.bf16.gmra.mrb[8].mxu1 %vm477_vm2, %v380_v49  ;;  %v1772_v32 = vrot.slane %v1770_v15, 1  ;;  %v1775_v35 = vrot.slane %v1773_v16, 2  ;;  %v409_v6 = vshll.u32 %v5370_v17, 16  ;;  %v396_v37 = vsel %vm328_vm1, %v391_v23, %v395_v14  ;;  %v5410_v15 = vld [vmem:[%s5225_s28 + $0x70] sm:$0xff]  }
  0x2f   : > { %4396 = vmatprep.mubr.msk.bf16.mxu1 %vm477_vm2, %v388_v3  ;;  %v405_v38 = vshrl.u32 %v5353_v60, 16  ;;  %v1779_v39 = vshrl.u32 %v5375_v24, 16  ;;  %v1782_v40 = vshll.u32 %v5375_v24, 16  ;;  %v1767_v43 = vor.u32 %v1766_v26, %v1763_v25 }
  0x30   : > { %v404_v44 = vsel %vm328_vm1, %v399_v27, %v403_v29  ;;  %v413_v45 = vshrl.u32 %v5370_v17, 16  ;;  %v417_v49 = vshll.u32 %v5380_v36, 16  ;;  %v1776_v50 = vor.u32 %v1775_v35, %v1772_v32 }
  0x31   : > { %4545 = vmatmul.mubr.msk.bf16.gmra.mrb[8].mxu0 %vm477_vm2, %v1750_v22  ;;  %v1788_v51 = vshrl.u32 %v5388_v42, 16  ;;  %v1791_v52 = vshll.u32 %v5388_v42, 16  ;;  %v411_v54 = vrot.slane %v409_v6, 1  ;;  %v407_v57 = vor.u32 %v405_v38, %v403_v29 }
  0x32   : > { %4548 = vmatprep.mubr.msk.bf16.mxu0 %vm477_vm2, %v1759_v30  ;;  %v1781_v61 = vrot.slane %v1779_v39, 1  ;;  %v1784_v62 = vrot.slane %v1782_v40, 2  ;;  %v1768_v1 = vsel %vm1688_vm3, %v1758_v7, %v1767_v43  ;;  %v419_v3 = vrot.slane %v417_v49, 1  ;;  %v5426_v39 = vld [vmem:[%s5225_s28 + $0x70] sm:$0xff]  }
  0x33   : > { %v415_v2 = vor.u32 %v413_v45, %v411_v54  ;;  %v1777_v11 = vsel %vm1688_vm3, %v1767_v43, %v1776_v50  ;;  %v1790_v12 = vrot.slane %v1788_v51, 1  ;;  %v1793_v14 = vrot.slane %v1791_v52, 2  ;;  %v5434_v52 = vld [vmem:[%s5225_s28 + $0x78] sm:$0xff]  }
  0x34   : > { %v425_v16 = vshll.u32 %v5398_v55, 16  ;;  %v1797_v22 = vshrl.u32 %v5401_v56, 16  ;;  %v412_v23 = vsel %vm328_vm1, %v407_v57, %v411_v54  ;;  %v421_v7 = vshrl.u32 %v5380_v36, 16  ;;  %6184 = vst [vmem:[#allocation4_spill] sm:$0xff] %v5434_v52 }
  0x35   : > { %v1800_v25 = vshll.u32 %v5401_v56, 16  ;;  %v1785_v26 = vor.u32 %v1784_v62, %v1781_v61  ;;  %v420_v27 = vsel %vm328_vm1, %v415_v2, %v419_v3  ;;  %v429_v29 = vshrl.u32 %v5398_v55, 16  ;;  %v5438_v62 = vld [vmem:[%s5225_s28 + $0x80] sm:$0xff]  }
  0x36   : > { %4397 = vmatmul.mubr.msk.bf16.gmra.mrb[12].mxu1 %vm477_vm2, %v396_v37  ;;  %v433_v30 = vshll.u32 %v5406_v4, 16  ;;  %v1794_v32 = vor.u32 %v1793_v14, %v1790_v12  ;;  %v1806_v35 = vshrl.u32 %v5410_v15, 16  ;;  %v1809_v6 = vshll.u32 %v5410_v15, 16 }
  0x37   : > { %4400 = vmatprep.mubr.msk.bf16.mxu1 %vm477_vm2, %v404_v44  ;;  %v427_v37 = vrot.slane %v425_v16, 1  ;;  %v1799_v38 = vrot.slane %v1797_v22, 1  ;;  %v423_v40 = vor.u32 %v421_v7, %v419_v3  ;;  %v1802_v43 = vrot.slane %v1800_v25, 2  ;;  %v5430_v44 = vld [vmem:[%s5225_s28 + $0x78] sm:$0xff]  }
  0x38   : > { %v1786_v45 = vsel %vm1688_vm3, %v1776_v50, %v1785_v26  ;;  %v435_v51 = vrot.slane %v433_v30, 1  ;;  %v1795_v54 = vsel %vm1688_vm3, %v1785_v26, %v1794_v32  ;;  %v1808_v57 = vrot.slane %v1806_v35, 1  ;;  %v5459_v35 = vld [vmem:[%s5225_s28 + $0x88] sm:$0xff]  }
  0x39   : > { %4549 = vmatmul.mubr.msk.bf16.gmra.mrb[12].mxu0 %vm477_vm2, %v1768_v1  ;;  %v431_v49 = vor.u32 %v429_v29, %v427_v37  ;;  %v1811_v61 = vrot.slane %v1809_v6, 2  ;;  %v441_v1 = vshll.u32 %v5426_v39, 16  ;;  %v428_v2 = vsel %vm328_vm1, %v423_v40, %v427_v37 }
  0x3a   : > { %4552 = vmatprep.mubr.msk.bf16.mxu0 %vm477_vm2, %v1777_v11  ;;  %v1803_v3 = vor.u32 %v1802_v43, %v1799_v38  ;;  %v437_v50 = vshrl.u32 %v5406_v4, 16  ;;  %v1815_v11 = vshrl.u32 %v5430_v44, 16  ;;  %v1818_v14 = vshll.u32 %v5430_v44, 16  ;;  %v5462_v43 = vld [vmem:[%s5225_s28 + $0x88] sm:$0xff]  }
  0x3b   : > { %v436_v12 = vsel %vm328_vm1, %v431_v49, %v435_v51  ;;  %v445_v16 = vshrl.u32 %v5426_v39, 16  ;;  %v449_v22 = vshll.u32 %v5434_v52, 16  ;;  %v1824_v7 = vshrl.u32 %v5438_v62, 16 }
  0x3c   : > { %v1827_v25 = vshll.u32 %v5438_v62, 16  ;;  %v443_v26 = vrot.slane %v441_v1, 1  ;;  %v1804_v29 = vsel %vm1688_vm3, %v1794_v32, %v1803_v3  ;;  %v439_v30 = vor.u32 %v437_v50, %v435_v51 }
  0x3d   : > { %v1817_v6 = vrot.slane %v1815_v11, 1  ;;  %v1820_v37 = vrot.slane %v1818_v14, 2  ;;  %v451_v40 = vrot.slane %v449_v22, 1  ;;  %v1826_v32 = vrot.slane %v1824_v7, 1 }
  0x3e   : > { %4401 = vmatmul.mubr.msk.bf16.gmra.mrb[16].mxu1 %vm477_vm2, %v412_v23  ;;  %v1812_v23 = vor.u32 %v1811_v61, %v1808_v57  ;;  %v447_v38 = vor.u32 %v445_v16, %v443_v26  ;;  %v5471_v57 = vld [vmem:[%s5225_s28 + $0x90] sm:$0xff]   ;;  %v444_v61 = vsel %vm328_vm1, %v439_v30, %v443_v26  ;;  %v453_v1 = vshrl.u32 %v5434_v52, 16  ;;  %v5119_v26 = vld [vmem:[%s5225_s28 + $0x98] ss:$0 sps:$4 sm:$0x33]  }
  0x3f   : > { %4404 = vmatprep.mubr.msk.bf16.mxu1 %vm477_vm2, %v420_v27  ;;  %v5454_v27 = vld [vmem:[%s5225_s28 + $0x80] sm:$0xff]   ;;  %v1821_v50 = vor.u32 %v1820_v37, %v1817_v6  ;;  %v465_v14 = vshll.u32 %v5462_v43, 16  ;;  %v5486_v16 = vld [vmem:[%s5225_s28 + $0x90] ss:$0 sps:$4 sm:$0x11]   ;;  %v1842_v7 = vshrl.u32 %v5471_v57, 16 }
  0x40   : > { %6185 = vst [vmem:[#allocation5_spill] sm:$0xff] %v5454_v27  ;;  %v1813_v49 = vsel %vm1688_vm3, %v1803_v3, %v1812_v23  ;;  %v457_v51 = vshll.u32 %v5454_v27, 16  ;;  %v1836_v3 = vshll.u32 %v5459_v35, 16  ;;  %v452_v11 = vsel %vm328_vm1, %v447_v38, %v451_v40 }
  0x41   : > { %4553 = vmatmul.mubr.msk.bf16.gmra.mrb[16].mxu0 %vm477_vm2, %v1786_v45  ;;  %v5467_v45 = vld [vmem:[%s6172_s1 + $0x4] sm:$0x3]  ;;  %v455_v30 = vor.u32 %v453_v1, %v451_v40  ;;  %v1822_v37 = vsel %vm1688_vm3, %v1812_v23, %v1821_v50  ;;  %v467_v20 = vrot.slane %v465_v14, 1  ;;  %v469_v52 = vshrl.u32 %v5462_v43, 16 }
  0x42   : > { %4556 = vmatprep.mubr.msk.bf16.mxu0 %vm477_vm2, %v1795_v54  ;;  %v1829_v54 = vrot.slane %v1827_v25, 2  ;;  %5063 = vmatprep.subr.msk.bf16.mxu1 %vm532_vm0, %v5467_v45  ;;  %v1845_v25 = vshll.u32 %v5471_v57, 16  ;;  %v1838_v38 = vrot.slane %v1836_v3, 2  ;;  %v473_v8 = vshll.u32 %v5486_v16, 16 }
  0x43   : > { %v2169_v23 = vrot.slane %v5471_v57, 2  ;;  %v2171_v3 = vrot.slane %v5119_v26, 2  ;;  %v471_v14 = vor.u32 %v469_v52, %v467_v20  ;;  %v1028_v52 = vsel %vm532_vm0, %v5467_v45, 0 }
  0x44   : > { %v1830_v22 = vor.u32 %v1829_v54, %v1826_v32  ;;  %v1844_v32 = vrot.slane %v1842_v7, 1  ;;  %v1847_v54 = vrot.slane %v1845_v25, 2  ;;  %v475_v7 = vrot.slane %v473_v8, 1 }
  0x45   : > { %v2145_v45 = vrot.slane %v5295_v58, 2  ;;  %v2147_v58 = vrot.slane %v5317_v21, 2  ;;  %v2151_v21 = vrot.slane %v5350_v59, 2  ;;  %v2157_v59 = vrot.slane %v5388_v42, 2 }
  0x46   : > { %4405 = vmatmul.mubr.msk.bf16.gmra.mrb[20].mxu1 %vm477_vm2, %v428_v2  ;;  %v1833_v2 = vshrl.u32 %v5459_v35, 16 }
  0x47   : > { %4408 = vmatprep.mubr.msk.bf16.mxu1 %vm477_vm2, %v436_v12  ;;  %v461_v12 = vshrl.u32 %v5454_v27, 16  ;;  %v1831_v27 = vsel %vm1688_vm3, %v1821_v50, %v1830_v22  ;;  %v1848_v50 = vor.u32 %v1847_v54, %v1844_v32  ;;  %v2667_v32 = vsel %vm532_vm0, %v5305_v0, 0 }
  0x48   : > { %v1835_v6 = vrot.slane %v1833_v2, 1  ;;  %v1854_v2 = vshll.u32 %v5119_v26, 16 }
  0x49   : > { %4557 = vmatmul.mubr.msk.bf16.gmra.mrb[20].mxu0 %vm477_vm2, %v1804_v29  ;;  %v459_v29 = vrot.slane %v457_v51, 1  ;;  %v1851_v51 = vshrl.u32 %v5119_v26, 16 }
  0x4a   : > { %4560 = vmatprep.mubr.msk.bf16.mxu0 %vm477_vm2, %v1813_v49 }
  0x4b   : > { %v463_v49 = vor.u32 %v461_v12, %v459_v29  ;;  %v460_v40 = vsel %vm328_vm1, %v455_v30, %v459_v29  ;;  %v5507_v12 = vsel %vm2135_vm4, %v2169_v23, %v2171_v3  ;;  %v1853_v25 = vrot.slane %v1851_v51, 1 }
  0x4c   : > { %v1856_v29 = vrot.slane %v1854_v2, 2  ;;  %v2148_v51 = vsel %vm2135_vm4, %v2145_v45, %v2147_v58  ;;  %v2155_v3 = vrot.slane %v5375_v24, 2  ;;  %v2161_v24 = vrot.slane %v5410_v15, 2 }
  0x4d   : > { %v468_v1 = vsel %vm328_vm1, %v463_v49, %v467_v20  ;;  %v2137_v49 = vrot.slane %v5250_v18, 2  ;;  %v2139_v20 = vrot.slane %v5264_v28, 2  ;;  %v2141_v18 = vrot.slane %v5270_v34, 2  ;;  %v5539_v28 = vld [vmem:[%s6172_s1 + $0xe] sm:$0x3] }
  0x4e   : > { %4409 = vmatmul.mubr.msk.bf16.gmra.mrb[24].mxu1 %vm477_vm2, %v444_v61  ;;  %v1839_v61 = vor.u32 %v1838_v38, %v1835_v6  ;;  %v476_v6 = vsel %vm328_vm1, %v471_v14, %v475_v7  ;;  %v2143_v34 = vrot.slane %v5283_v48, 2  ;;  %v5557_v48 = vld [vmem:[%s6172_s1 + $0x6] sm:$0x3]  ;;  %v2165_v15 = vrot.slane %v5438_v62, 2 }
  0x4f   : > { %4412 = vmatprep.mubr.msk.bf16.mxu1 %vm477_vm2, %v452_v11  ;;  %v2129_v11 = vld [vmem:[%s5225_s28 + $0x8] sm:$0xc] }
  0x50   : > { %v4070_v30 = vcombine.low %v2129_v11, %v5243_v13  ;;  %v1849_v26 = vsel %vm1688_vm3, %v1839_v61, %v1848_v50  ;;  %v2144_v0 = vsel %vm2135_vm4, %v2141_v18, %v2143_v34  ;;  %v2146_v54 = vsel %vm2135_vm4, %v2143_v34, %v2145_v45  ;;  %v5644_v34 = vld [vmem:[%s5225_s28 + $0x20] sm:$0xff]  }
  0x51   : > { %4561 = vmatmul.mubr.msk.bf16.gmra.mrb[24].mxu0 %vm477_vm2, %v1822_v37  ;;  %v1857_v37 = vor.u32 %v1856_v29, %v1853_v25  ;;  %v2159_v11 = vrot.slane %v5401_v56, 2  ;;  %v2163_v56 = vrot.slane %v5430_v44, 2  ;;  %v929_v25 = vld [vmem:[%s5225_s28] sm:$0xe]  ;;  %v2167_v29 = vrot.slane %v5459_v35, 2 }
  0x52   : > { %4564 = vmatprep.mubr.msk.bf16.mxu0 %vm477_vm2, %v1831_v27  ;;  %v1840_v27 = vsel %vm1688_vm3, %v1830_v22, %v1839_v61  ;;  %v2136_v38 = vrot.slane %v4070_v30, 2  ;;  %v2142_v22 = vsel %vm2135_vm4, %v2139_v20, %v2141_v18  ;;  %v6186_v30 = vld [vmem:[#allocation2_spill] sm:$0xff]  ;;  %v941_v45 = vrot.slane %v5267_v33, 1 }
  0x53   : > { %v1858_v8 = vsel %vm1688_vm3, %v1848_v50, %v1857_v37  ;;  %v2158_v50 = vsel %vm2135_vm4, %v2155_v3, %v2157_v59  ;;  %v2160_v42 = vsel %vm2135_vm4, %v2157_v59, %v2159_v11  ;;  %v2162_v14 = vsel %vm2135_vm4, %v2159_v11, %v2161_v24  ;;  %v2443_v37 = vld [vmem:[%s5225_s28 + $0x10] sm:$0xc]  ;;  %v5692_v11 = vld [vmem:[%s5225_s28 + $0x40] sm:$0xff]  }
  0x54   : > { %v2138_v13 = vsel %vm2135_vm4, %v2136_v38, %v2137_v49  ;;  %v2164_v7 = vsel %vm2135_vm4, %v2161_v24, %v2163_v56  ;;  %v5619_v38 = vld [vmem:[%s5225_s28 + $0x14] sm:$0xf]  ;;  %v949_v24 = vrot.slane %v5326_v31, 1 }
  0x55   : > { %v5629_v18 = vcombine.low %v2443_v37, %v5619_v38 }
  0x56   : > { %4413 = vmatmul.mubr.msk.bf16.gmra.mrb[28].mxu1 %vm477_vm2, %v460_v40  ;;  %v2149_v40 = vrot.slane %v5337_v41, 2 }
  0x57   : > { %4416 = vmatprep.mubr.msk.bf16.mxu1 %vm477_vm2, %v468_v1  ;;  %v2153_v1 = vrot.slane %v5362_v5, 2 }
  0x58   : > { %v2150_v61 = vsel %vm2135_vm4, %v2147_v58, %v2149_v40  ;;  %v2152_v41 = vsel %vm2135_vm4, %v2149_v40, %v2151_v21  ;;  %v2578_v40 = vrot.slane %v5644_v34, 2 }
  0x59   : > { %4565 = vmatmul.mubr.msk.bf16.gmra.mrb[28].mxu0 %vm477_vm2, %v1840_v27  ;;  %v2154_v2 = vsel %vm2135_vm4, %v2151_v21, %v2153_v1  ;;  %v2156_v5 = vsel %vm2135_vm4, %v2153_v1, %v2155_v3  ;;  %v2166_v27 = vsel %vm2135_vm4, %v2163_v56, %v2165_v15  ;;  %v5665_v21 = vld [vmem:[%s5225_s28 + $0x30] sm:$0xff]   ;;  %v945_v1 = vrot.slane %v5289_v53, 1 }
  0x5a   : > { %4568 = vmatprep.mubr.msk.bf16.mxu0 %vm477_vm2, %v1849_v26  ;;  %v3992_v26 = vcombine.low %v929_v25, %v6186_v30  ;;  %v5677_v3 = vld [vmem:[%s6172_s1 + $0x10] sm:$0x3] }
  0x5b   : > { %v5710_v25 = vld [vmem:[%s5225_s28 + $0x50] sm:$0xff]  }
  0x5e   : > { %4417 = vmatmul.mubr.msk.bf16.gmra.mrb[32].mxu1 %vm477_vm2, %v476_v6  ;;  %v6187_v6 = vld [vmem:[#allocation4_spill] sm:$0xff] }
  0x5f   : > { %4422 = vmatprep.mubr.msk.bf16.mxu1 %vm477_vm2, %v5235_v9  ;;  %v2140_v9 = vsel %vm2135_vm4, %v2137_v49, %v2139_v20  ;;  %v6188_v49 = vld [vmem:[#allocation5_spill] sm:$0xff]  ;;  %v937_v20 = vrot.slane %v5238_v10, 1 }
  0x61   : > { %4569 = vmatmul.mubr.msk.bf16.gmra.mrb[32].mxu0 %vm477_vm2, %v1858_v8  ;;  %v2168_v8 = vsel %vm2135_vm4, %v2165_v15, %v2167_v29 }
  0x62   : > { %4574 = vmatprep.mubr.msk.bf16.mxu0 %vm477_vm2, %v2138_v13  ;;  %v936_v13 = vrot.slane %v3992_v26, 1  ;;  %v5715_v26 = vld [vmem:[%s5225_s28 + $0x58] sm:$0xff]  }
  0x66   : > { %4423 = vmatmul.mubr.msk.bf16.vlgmr.msra.gmra.mrb[0].mxu1 %vm477_vm2, %v5238_v10 }
  0x67   : > { %4426 = vmatprep.mubr.msk.bf16.mxu1 %vm477_vm2, %v5253_v19  ;;  %4459 = vmatpush3.bf16.msra.mxu1 %v1028_v52  ;;  %v2170_v52 = vsel %vm2135_vm4, %v2167_v29, %v2169_v23  ;;  %v939_v23 = vrot.slane %v5253_v19, 1  ;;  %v953_v29 = vrot.slane %v5353_v60, 1 }
  0x68   : > { %5064 = vmatprep.subr.msk.bf16.mxu1 %vm532_vm0, %v5557_v48 }
  0x69   : > { %4575 = vmatmul.mubr.msk.bf16.vlgmr.msra.gmra.mrb[0].mxu0 %vm477_vm2, %v2140_v9  ;;  %v5632_v9 = vld [vmem:[%s5225_s28 + $0x18] sm:$0xff]   ;;  %v940_v58 = vsel %vm935_vm5, %v937_v20, %v939_v23  ;;  %v942_v19 = vsel %vm935_vm5, %v939_v23, %v941_v45 }
  0x6a   : > { %4578 = vmatprep.mubr.msk.bf16.mxu0 %vm477_vm2, %v2142_v22  ;;  %4611 = vmatpush3.bf16.msra.mxu0 %v2667_v32  ;;  %v938_v22 = vsel %vm935_vm5, %v936_v13, %v937_v20  ;;  %v2575_v32 = vrot.slane %v5629_v18, 2  ;;  %v2576_v10 = vrot.slane %v5632_v9, 2  ;;  %v2592_v13 = vrot.slane %v5715_v26, 2 }
  0x6b   : > { %5068 = vmatprep.subr.msk.bf16.mxu0 %vm532_vm0, %v5539_v28 }
  0x6e   : > { %4427 = vmatmul.mubr.msk.bf16.gmra.mrb[4].mxu1 %vm477_vm2, %v5267_v33 }
  0x6f   : > { %4430 = vmatprep.mubr.msk.bf16.mxu1 %vm477_vm2, %v5280_v47 }
  0x71   : > { %4579 = vmatmul.mubr.msk.bf16.gmra.mrb[4].mxu0 %vm477_vm2, %v2144_v0  ;;  %v2577_v0 = vsel %vm2135_vm4, %v2575_v32, %v2576_v10 }
  0x72   : > { %4582 = vmatprep.mubr.msk.bf16.mxu0 %vm477_vm2, %v2146_v54  ;;  %v5649_v54 = vld [vmem:[%s5225_s28 + $0x28] sm:$0xff]  }
  0x73   : > { %v2580_v33 = vrot.slane %v5649_v54, 2 }
  0x76   : > { %4431 = vmatmul.mubr.msk.bf16.gmra.mrb[8].mxu1 %vm477_vm2, %v5289_v53  ;;  %v2582_v53 = vrot.slane %v5665_v21, 2 }
  0x77   : > { %4434 = vmatprep.mubr.msk.bf16.mxu1 %vm477_vm2, %v5300_v63 }
  0x79   : > { %4583 = vmatmul.mubr.msk.bf16.gmra.mrb[8].mxu0 %vm477_vm2, %v2148_v51  ;;  %v1467_v51 = vsel %vm532_vm0, %v5557_v48, 0  ;;  %v3114_v48 = vsel %vm532_vm0, %v5539_v28, 0  ;;  %v947_v28 = vrot.slane %v5300_v63, 1  ;;  %v2586_v63 = vrot.slane %v5692_v11, 2 }
  0x7a   : > { %4586 = vmatprep.mubr.msk.bf16.mxu0 %vm477_vm2, %v2150_v61  ;;  %v943_v61 = vrot.slane %v5280_v47, 1 }
  0x7b   : > { %v948_v56 = vsel %vm935_vm5, %v945_v1, %v947_v28  ;;  %v950_v15 = vsel %vm935_vm5, %v947_v28, %v949_v24 }
  0x7c   : > { %v944_v47 = vsel %vm935_vm5, %v941_v45, %v943_v61  ;;  %v946_v59 = vsel %vm935_vm5, %v943_v61, %v945_v1 }
  0x7e   : > { %4435 = vmatmul.mubr.msk.bf16.gmra.mrb[12].mxu1 %vm477_vm2, %v5326_v31  ;;  %v951_v31 = vrot.slane %v5342_v46, 1 }
  0x7f   : > { %4438 = vmatprep.mubr.msk.bf16.mxu1 %vm477_vm2, %v5342_v46  ;;  %v2590_v46 = vrot.slane %v5710_v25, 2 }
  0x80   : > { %v952_v37 = vsel %vm935_vm5, %v949_v24, %v951_v31 }
  0x81   : > { %4587 = vmatmul.mubr.msk.bf16.gmra.mrb[12].mxu0 %vm477_vm2, %v2152_v41  ;;  %v2581_v41 = vsel %vm2135_vm4, %v2578_v40, %v2580_v33  ;;  %v2593_v32 = vsel %vm2135_vm4, %v2590_v46, %v2592_v13 }
  0x82   : > { %4590 = vmatprep.mubr.msk.bf16.mxu0 %vm477_vm2, %v2154_v2  ;;  %v5670_v2 = vld [vmem:[%s5225_s28 + $0x38] sm:$0xff]  }
  0x86   : > { %4439 = vmatmul.mubr.msk.bf16.gmra.mrb[16].mxu1 %vm477_vm2, %v5353_v60  ;;  %v955_v60 = vrot.slane %v5370_v17, 1 }
  0x87   : > { %4442 = vmatprep.mubr.msk.bf16.mxu1 %vm477_vm2, %v5370_v17 }
  0x88   : > { %v956_v23 = vsel %vm935_vm5, %v953_v29, %v955_v60 }
  0x89   : > { %4591 = vmatmul.mubr.msk.bf16.gmra.mrb[16].mxu0 %vm477_vm2, %v2156_v5  ;;  %v2584_v5 = vrot.slane %v5670_v2, 2 }
  0x8a   : > { %4594 = vmatprep.mubr.msk.bf16.mxu0 %vm477_vm2, %v2158_v50  ;;  %v2583_v50 = vsel %vm2135_vm4, %v2580_v33, %v2582_v53  ;;  %v5751_v33 = vld [vmem:[%s5225_s28 + $0x78] sm:$0xff]  }
  0x8b   : > { %v2600_v1 = vrot.slane %v5751_v33, 2 }
  0x8e   : > { %4443 = vmatmul.mubr.msk.bf16.gmra.mrb[20].mxu1 %vm477_vm2, %v5380_v36 }
  0x8f   : > { %4446 = vmatprep.mubr.msk.bf16.mxu1 %vm477_vm2, %v5398_v55 }
  0x91   : > { %4595 = vmatmul.mubr.msk.bf16.gmra.mrb[20].mxu0 %vm477_vm2, %v2160_v42  ;;  %v2585_v42 = vsel %vm2135_vm4, %v2582_v53, %v2584_v5 }
  0x92   : > { %4598 = vmatprep.mubr.msk.bf16.mxu0 %vm477_vm2, %v2162_v14  ;;  %v5697_v14 = vld [vmem:[%s5225_s28 + $0x48] sm:$0xff]  }
  0x96   : > { %4447 = vmatmul.mubr.msk.bf16.gmra.mrb[24].mxu1 %vm477_vm2, %v5406_v4 }
  0x97   : > { %4450 = vmatprep.mubr.msk.bf16.mxu1 %vm477_vm2, %v5426_v39 }
  0x99   : > { %4599 = vmatmul.mubr.msk.bf16.gmra.mrb[24].mxu0 %vm477_vm2, %v2164_v7  ;;  %v2588_v7 = vrot.slane %v5697_v14, 2 }
  0x9a   : > { %4602 = vmatprep.mubr.msk.bf16.mxu0 %vm477_vm2, %v2166_v27  ;;  %v2587_v27 = vsel %vm2135_vm4, %v2584_v5, %v2586_v63 }
  0x9b   : > { %v2589_v30 = vsel %vm2135_vm4, %v2586_v63, %v2588_v7  ;;  %v2591_v20 = vsel %vm2135_vm4, %v2588_v7, %v2590_v46  ;;  %v5786_v63 = vld [vmem:[%s5225_s28 + $0x98] sm:$0xff]   ;;  %v971_v46 = vrot.slane %v5486_v16, 1 }
  0x9e   : > { %4451 = vmatmul.mubr.msk.bf16.gmra.mrb[28].mxu1 %vm477_vm2, %v6187_v6 }
  0x9f   : > { %4454 = vmatprep.mubr.msk.bf16.mxu1 %vm477_vm2, %v6188_v49 }
  0xa1   : > { %4603 = vmatmul.mubr.msk.bf16.gmra.mrb[28].mxu0 %vm477_vm2, %v2168_v8  ;;  %v954_v8 = vsel %vm935_vm5, %v951_v31, %v953_v29  ;;  %v2893_v29 = vshll.u32 %v5629_v18, 16 }
  0xa2   : > { %4606 = vmatprep.mubr.msk.bf16.mxu0 %vm477_vm2, %v2170_v52  ;;  %v5728_v52 = vld [vmem:[%s5225_s28 + $0x60] sm:$0xff]  }
  0xa3   : > { %v2594_v17 = vrot.slane %v5728_v52, 2 }
  0xa6   : > { %4455 = vmatmul.mubr.msk.bf16.gmra.mrb[32].mxu1 %vm477_vm2, %v5462_v43 }
  0xa7   : > { %4460 = vmatprep.mubr.msk.bf16.mxu1 %vm477_vm2, %v938_v22  ;;  %v957_v22 = vrot.slane %v5380_v36, 1  ;;  %v959_v36 = vrot.slane %v5398_v55, 1 }
  0xa9   : > { %4607 = vmatmul.mubr.msk.bf16.gmra.mrb[32].mxu0 %vm477_vm2, %v5507_v12  ;;  %v2579_v12 = vsel %vm2135_vm4, %v2576_v10, %v2578_v40  ;;  %v5733_v10 = vld [vmem:[%s5225_s28 + $0x68] sm:$0xff]   ;;  %v958_v45 = vsel %vm935_vm5, %v955_v60, %v957_v22  ;;  %v5746_v40 = vld [vmem:[%s5225_s28 + $0x70] sm:$0xff]   ;;  %v960_v61 = vsel %vm935_vm5, %v957_v22, %v959_v36  ;;  %v5140_v60 = vld [vmem:[%s5225_s28 + $0xa0] ss:$0 sps:$4 sm:$0x33]  }
  0xaa   : > { %4612 = vmatprep.mubr.msk.bf16.mxu0 %vm477_vm2, %v2577_v0  ;;  %v2596_v0 = vrot.slane %v5733_v10, 2  ;;  %v2598_v55 = vrot.slane %v5746_v40, 2  ;;  %v2610_v16 = vrot.slane %v5140_v60, 2  ;;  %v5148_v60 = vld [vmem:[%s5225_s28 + $0x30] sm:$0xff]  }
  0xac   : > { %v2601_v53 = vsel %vm2135_vm4, %v2598_v55, %v2600_v1 }
  0xae   : > { %4461 = vmatmul.mubr.msk.bf16.vlgmr.msra.gmra.mrb[0].mxu1 %vm477_vm2, %v940_v58  ;;  %v2595_v58 = vsel %vm2135_vm4, %v2592_v13, %v2594_v17 }
  0xaf   : > { %4464 = vmatprep.mubr.msk.bf16.mxu1 %vm477_vm2, %v942_v19  ;;  %4497 = vmatpush3.bf16.msra.mxu1 %v1467_v51  ;;  %v961_v19 = vrot.slane %v5406_v4, 1  ;;  %v2597_v51 = vsel %vm2135_vm4, %v2594_v17, %v2596_v0  ;;  %v963_v4 = vrot.slane %v5426_v39, 1  ;;  %v2895_v17 = vrot.slane %v2893_v29, 3 }
  0xb0   : > { %v2937_v29 = vshll.u32 %v5670_v2, 16 }
  0xb1   : > { %4613 = vmatmul.mubr.msk.bf16.vlgmr.msra.gmra.mrb[0].mxu0 %vm477_vm2, %v2579_v12  ;;  %v962_v12 = vsel %vm935_vm5, %v959_v36, %v961_v19  ;;  %v964_v5 = vsel %vm935_vm5, %v961_v19, %v963_v4  ;;  %v2907_v19 = vshrl.u32 %v5644_v34, 16 }
  0xb2   : > { %4616 = vmatprep.mubr.msk.bf16.mxu0 %vm477_vm2, %v2581_v41  ;;  %4649 = vmatpush3.bf16.msra.mxu0 %v3114_v48  ;;  %v2599_v41 = vsel %vm2135_vm4, %v2596_v0, %v2598_v55  ;;  %v5764_v48 = vld [vmem:[%s5225_s28 + $0x80] sm:$0xff]  }
  0xb3   : > { %5069 = vmatprep.subr.msk.bf16.mxu0 %vm532_vm0, %v5677_v3  ;;  %v2602_v39 = vrot.slane %v5764_v48, 2 }
  0xb5   : > { %v2603_v24 = vsel %vm2135_vm4, %v2600_v1, %v2602_v39  ;;  %v2919_v1 = vshll.u32 %v5649_v54, 16 }
  0xb6   : > { %4465 = vmatmul.mubr.msk.bf16.gmra.mrb[4].mxu1 %vm477_vm2, %v944_v47  ;;  %v965_v47 = vrot.slane %v6187_v6, 1  ;;  %v967_v6 = vrot.slane %v6188_v49, 1 }
  0xb7   : > { %4468 = vmatprep.mubr.msk.bf16.mxu1 %vm477_vm2, %v946_v59  ;;  %v5769_v59 = vld [vmem:[%s5225_s28 + $0x88] sm:$0xff]  }
  0xb8   : > { %v966_v28 = vsel %vm935_vm5, %v963_v4, %v965_v47  ;;  %v968_v7 = vsel %vm935_vm5, %v965_v47, %v967_v6  ;;  %v5145_v4 = vld [vmem:[%s5225_s28 + $0x18] sm:$0xff]  }
  0xb9   : > { %4617 = vmatmul.mubr.msk.bf16.gmra.mrb[4].mxu0 %vm477_vm2, %v2583_v50  ;;  %v2604_v50 = vrot.slane %v5769_v59, 2 }
  0xba   : > { %4620 = vmatprep.mubr.msk.bf16.mxu0 %vm477_vm2, %v2585_v42  ;;  %v5782_v42 = vld [vmem:[%s5225_s28 + $0x90] sm:$0xff]  }
  0xbb   : > { %v2606_v49 = vrot.slane %v5782_v42, 2 }
  0xbe   : > { %4469 = vmatmul.mubr.msk.bf16.gmra.mrb[8].mxu1 %vm477_vm2, %v948_v56  ;;  %v969_v56 = vrot.slane %v5462_v43, 1  ;;  %v2890_v43 = vshrl.u32 %v5629_v18, 16 }
  0xbf   : > { %4472 = vmatprep.mubr.msk.bf16.mxu1 %vm477_vm2, %v950_v15  ;;  %v2605_v15 = vsel %vm2135_vm4, %v2602_v39, %v2604_v50  ;;  %v5146_v39 = vld [vmem:[%s5225_s28 + $0x20] sm:$0xff]  }
  0xc0   : > { %v970_v31 = vsel %vm935_vm5, %v967_v6, %v969_v56  ;;  %v2892_v18 = vrot.slane %v2890_v43, 2  ;;  %v972_v36 = vsel %vm935_vm5, %v969_v56, %v971_v46  ;;  %v2934_v43 = vshrl.u32 %v5670_v2, 16 }
  0xc1   : > { %4621 = vmatmul.mubr.msk.bf16.gmra.mrb[8].mxu0 %vm477_vm2, %v2587_v27  ;;  %v2608_v27 = vrot.slane %v5786_v63, 2 }
  0xc2   : > { %4624 = vmatprep.mubr.msk.bf16.mxu0 %vm477_vm2, %v2589_v30  ;;  %v2898_v30 = vshrl.u32 %v5632_v9, 16 }
  0xc3   : > { %v2609_v13 = vsel %vm2135_vm4, %v2606_v49, %v2608_v27  ;;  %v2611_v47 = vsel %vm2135_vm4, %v2608_v27, %v2610_v16  ;;  %v2946_v16 = vshll.u32 %v5692_v11, 16 }
  0xc6   : > { %4473 = vmatmul.mubr.msk.bf16.gmra.mrb[12].mxu1 %vm477_vm2, %v952_v37  ;;  %v2901_v37 = vshll.u32 %v5632_v9, 16 }
  0xc7   : > { %4476 = vmatprep.mubr.msk.bf16.mxu1 %vm477_vm2, %v954_v8  ;;  %v2607_v8 = vsel %vm2135_vm4, %v2604_v50, %v2606_v49  ;;  %v2925_v49 = vshrl.u32 %v5665_v21, 16 }
  0xc8   : > { %v2903_v0 = vrot.slane %v2901_v37, 3 }
  0xc9   : > { %4625 = vmatmul.mubr.msk.bf16.gmra.mrb[12].mxu0 %vm477_vm2, %v2591_v20  ;;  %v6189_v20 = vld [vmem:[#allocation3_spill] sm:$0xff] }
  0xca   : > { %4628 = vmatprep.mubr.msk.bf16.mxu0 %vm477_vm2, %v2593_v32  ;;  %v1375_v22 = vrot.slane %v6189_v20, 1  ;;  %v5144_v32 = vld [vmem:[%s5225_s28 + $0x10] sm:$0xff]   ;;  %v1384_v20 = vrot.slane %v5148_v60, 1 }
  0xce   : > { %4477 = vmatmul.mubr.msk.bf16.gmra.mrb[16].mxu1 %vm477_vm2, %v956_v23  ;;  %v1376_v23 = vrot.slane %v5144_v32, 1  ;;  %v2936_v32 = vrot.slane %v2934_v43, 2 }
  0xcf   : > { %4480 = vmatprep.mubr.msk.bf16.mxu1 %vm477_vm2, %v958_v45  ;;  %v2900_v45 = vrot.slane %v2898_v30, 2  ;;  %v5147_v30 = vld [vmem:[%s5225_s28 + $0x28] sm:$0xff]  }
  0xd0   : > { %v1382_v37 = vrot.slane %v5147_v30, 1  ;;  %v5152_v30 = vld [vmem:[%s5225_s28 + $0x50] sm:$0xff]  }
  0xd1   : > { %4629 = vmatmul.mubr.msk.bf16.gmra.mrb[16].mxu0 %vm477_vm2, %v2595_v58  ;;  %v1377_v58 = vsel %vm935_vm5, %v1375_v22, %v1376_v23  ;;  %v2904_v55 = vor.u32 %v2903_v0, %v2900_v45 }
  0xd2   : > { %4632 = vmatprep.mubr.msk.bf16.mxu0 %vm477_vm2, %v2597_v51  ;;  %v2910_v51 = vshll.u32 %v5644_v34, 16  ;;  %v1385_v0 = vsel %vm935_vm5, %v1382_v37, %v1384_v20 }
  0xd6   : > { %4481 = vmatmul.mubr.msk.bf16.gmra.mrb[20].mxu1 %vm477_vm2, %v960_v61  ;;  %v2896_v61 = vor.u32 %v2895_v17, %v2892_v18  ;;  %v3428_v18 = vsel %vm532_vm0, %v5677_v3, 0  ;;  %v2955_v3 = vshll.u32 %v5697_v14, 16 }
  0xd7   : > { %4484 = vmatprep.mubr.msk.bf16.mxu1 %vm477_vm2, %v962_v12  ;;  %v2916_v12 = vshrl.u32 %v5649_v54, 16 }
  0xd8   : > { %v2905_v50 = vsel %vm2888_vm6, %v2896_v61, %v2904_v55 }
  0xd9   : > { %4633 = vmatmul.mubr.msk.bf16.gmra.mrb[20].mxu0 %vm477_vm2, %v2599_v41  ;;  %v1378_v41 = vrot.slane %v5145_v4, 1  ;;  %v2918_v6 = vrot.slane %v2916_v12, 2  ;;  %v5150_v4 = vld [vmem:[%s5225_s28 + $0x40] sm:$0xff]  }
  0xda   : > { %4636 = vmatprep.mubr.msk.bf16.mxu0 %vm477_vm2, %v2601_v53  ;;  %v2909_v53 = vrot.slane %v2907_v19, 2  ;;  %v2952_v19 = vshrl.u32 %v5697_v14, 16 }
  0xdb   : > { %v1379_v56 = vsel %vm935_vm5, %v1376_v23, %v1378_v41  ;;  %v2939_v23 = vrot.slane %v2937_v29, 3 }
  0xde   : > { %4485 = vmatmul.mubr.msk.bf16.gmra.mrb[24].mxu1 %vm477_vm2, %v964_v5  ;;  %v2912_v5 = vrot.slane %v2910_v51, 3  ;;  %v5149_v51 = vld [vmem:[%s5225_s28 + $0x38] sm:$0xff]  }
  0xdf   : > { %4488 = vmatprep.mubr.msk.bf16.mxu1 %vm477_vm2, %v966_v28  ;;  %v1380_v28 = vrot.slane %v5146_v39, 1  ;;  %v1386_v61 = vrot.slane %v5149_v51, 1 }
  0xe1   : > { %4637 = vmatmul.mubr.msk.bf16.gmra.mrb[24].mxu0 %vm477_vm2, %v2603_v24  ;;  %v2921_v24 = vrot.slane %v2919_v1, 3  ;;  %v1383_v17 = vsel %vm935_vm5, %v1380_v28, %v1382_v37  ;;  %v2948_v1 = vrot.slane %v2946_v16, 3  ;;  %v1387_v39 = vsel %vm935_vm5, %v1384_v20, %v1386_v61 }
  0xe2   : > { %4640 = vmatprep.mubr.msk.bf16.mxu0 %vm477_vm2, %v2605_v15  ;;  %v2913_v15 = vor.u32 %v2912_v5, %v2909_v53  ;;  %v2954_v53 = vrot.slane %v2952_v19, 2  ;;  %v2957_v5 = vrot.slane %v2955_v3, 3  ;;  %v1392_v37 = vrot.slane %v5152_v30, 1  ;;  %v5154_v3 = vld [vmem:[%s5225_s28 + $0x60] sm:$0xff]  }
  0xe3   : > { %v2922_v27 = vor.u32 %v2921_v24, %v2918_v6  ;;  %v2961_v6 = vshrl.u32 %v5710_v25, 16  ;;  %v2964_v24 = vshll.u32 %v5710_v25, 16  ;;  %v1396_v51 = vrot.slane %v5154_v3, 1 }
  0xe4   : > { %v2914_v46 = vsel %vm2888_vm6, %v2904_v55, %v2913_v15  ;;  %v3036_v3 = vshll.u32 %v5782_v42, 16 }
  0xe5   : > { %v2923_v22 = vsel %vm2888_vm6, %v2913_v15, %v2922_v27  ;;  %v2970_v15 = vshrl.u32 %v5715_v26, 16  ;;  %v2963_v43 = vrot.slane %v2961_v6, 2  ;;  %v2966_v29 = vrot.slane %v2964_v24, 3 }
  0xe6   : > { %4489 = vmatmul.mubr.msk.bf16.gmra.mrb[28].mxu1 %vm477_vm2, %v968_v7  ;;  %v1381_v7 = vsel %vm935_vm5, %v1378_v41, %v1380_v28  ;;  %v1388_v41 = vrot.slane %v5150_v4, 1 }
  0xe7   : > { %4492 = vmatprep.mubr.msk.bf16.mxu1 %vm477_vm2, %v970_v31  ;;  %v2928_v31 = vshll.u32 %v5665_v21, 16  ;;  %v2967_v20 = vor.u32 %v2966_v29, %v2963_v43 }
  0xe9   : > { %4641 = vmatmul.mubr.msk.bf16.gmra.mrb[28].mxu0 %vm477_vm2, %v2607_v8  ;;  %v2927_v8 = vrot.slane %v2925_v49, 2  ;;  %v5151_v49 = vld [vmem:[%s5225_s28 + $0x48] sm:$0xff]  }
  0xea   : > { %4644 = vmatprep.mubr.msk.bf16.mxu0 %vm477_vm2, %v2609_v13  ;;  %v2930_v13 = vrot.slane %v2928_v31, 3  ;;  %v1390_v31 = vrot.slane %v5151_v49, 1 }
  0xec   : > { %v2931_v45 = vor.u32 %v2930_v13, %v2927_v8  ;;  %v2972_v8 = vrot.slane %v2970_v15, 2  ;;  %v1391_v60 = vsel %vm935_vm5, %v1388_v41, %v1390_v31 }
  0xee   : > { %4493 = vmatmul.mubr.msk.bf16.gmra.mrb[32].mxu1 %vm477_vm2, %v972_v36  ;;  %v2943_v36 = vshrl.u32 %v5692_v11, 16  ;;  %v2932_v55 = vsel %vm2888_vm6, %v2922_v27, %v2931_v45 }
  0xef   : > { %4498 = vmatprep.mubr.msk.bf16.mxu1 %vm477_vm2, %v1377_v58  ;;  %v2940_v58 = vor.u32 %v2939_v23, %v2936_v32  ;;  %v2979_v32 = vshrl.u32 %v5728_v52, 16  ;;  %v2982_v23 = vshll.u32 %v5728_v52, 16 }
  0xf0   : > { %v2945_v12 = vrot.slane %v2943_v36, 2 }
  0xf1   : > { %4645 = vmatmul.mubr.msk.bf16.gmra.mrb[32].mxu0 %vm477_vm2, %v2611_v47  ;;  %v2941_v47 = vsel %vm2888_vm6, %v2931_v45, %v2940_v58  ;;  %v2991_v45 = vshll.u32 %v5733_v10, 16  ;;  %v2984_v19 = vrot.slane %v2982_v23, 3 }
  0xf2   : > { %4650 = vmatprep.mubr.msk.bf16.mxu0 %vm477_vm2, %v2905_v50  ;;  %v2949_v28 = vor.u32 %v2948_v1, %v2945_v12  ;;  %v1389_v50 = vsel %vm935_vm5, %v1386_v61, %v1388_v41 }
  0xf3   : > { %v2993_v12 = vrot.slane %v2991_v45, 3 }
  0xf4   : > { %v2950_v27 = vsel %vm2888_vm6, %v2940_v58, %v2949_v28  ;;  %v2981_v58 = vrot.slane %v2979_v32, 2 }
  0xf6   : > { %4499 = vmatmul.mubr.msk.bf16.vlgmr.msra.gmra.mrb[0].mxu1 %vm477_vm2, %v1379_v56  ;;  %v2958_v56 = vor.u32 %v2957_v5, %v2954_v53  ;;  %v2985_v4 = vor.u32 %v2984_v19, %v2981_v58  ;;  %v3000_v53 = vshll.u32 %v5746_v40, 16  ;;  %v3033_v19 = vshrl.u32 %v5782_v42, 16 }
  0xf7   : > { %4502 = vmatprep.mubr.msk.bf16.mxu1 %vm477_vm2, %v1381_v7  ;;  %v2973_v7 = vshll.u32 %v5715_v26, 16 }
  0xf8   : > { %v2968_v16 = vsel %vm2888_vm6, %v2958_v56, %v2967_v20  ;;  %v3002_v15 = vrot.slane %v3000_v53, 3 }
  0xf9   : > { %4651 = vmatmul.mubr.msk.bf16.vlgmr.msra.gmra.mrb[0].mxu0 %vm477_vm2, %v2914_v46  ;;  %v2959_v46 = vsel %vm2888_vm6, %v2949_v28, %v2958_v56  ;;  %v2975_v13 = vrot.slane %v2973_v7, 3  ;;  %v3009_v28 = vshll.u32 %v5751_v33, 16  ;;  %v5156_v7 = vld [vmem:[%s5225_s28 + $0x70] sm:$0xff]  }
  0xfa   : > { %4654 = vmatprep.mubr.msk.bf16.mxu0 %vm477_vm2, %v2923_v22  ;;  %4687 = vmatpush3.bf16.msra.mxu0 %v3428_v18  ;;  %v1393_v22 = vsel %vm935_vm5, %v1390_v31, %v1392_v37  ;;  %v1400_v49 = vrot.slane %v5156_v7, 1 }
  0xfb   : > { %v2976_v18 = vor.u32 %v2975_v13, %v2972_v8  ;;  %v3011_v43 = vrot.slane %v3009_v28, 3  ;;  %v3018_v8 = vshll.u32 %v5764_v48, 16 }
  0xfd   : > { %v2977_v61 = vsel %vm2888_vm6, %v2967_v20, %v2976_v18  ;;  %v2986_v24 = vsel %vm2888_vm6, %v2976_v18, %v2985_v4  ;;  %v3027_v20 = vshll.u32 %v5769_v59, 16  ;;  %v3020_v18 = vrot.slane %v3018_v8, 3 }
  0xfe   : > { %4503 = vmatmul.mubr.msk.bf16.gmra.mrb[4].mxu1 %vm477_vm2, %v1383_v17  ;;  %v2988_v17 = vshrl.u32 %v5733_v10, 16  ;;  %v3337_v8 = vrot.slane %v5632_v9, 3  ;;  %v3343_v9 = vrot.slane %v5665_v21, 3  ;;  %v3351_v21 = vrot.slane %v5710_v25, 3 }
  0xff   : > { %4506 = vmatprep.mubr.msk.bf16.mxu1 %vm477_vm2, %v1385_v0  ;;  %v5153_v0 = vld [vmem:[%s5225_s28 + $0x58] sm:$0xff]   ;;  %v3359_v25 = vrot.slane %v5746_v40, 3 }
 0x100   : > { %v1394_v36 = vrot.slane %v5153_v0, 1 }
 0x101   : > { %4655 = vmatmul.mubr.msk.bf16.gmra.mrb[4].mxu0 %vm477_vm2, %v2932_v55  ;;  %v2990_v55 = vrot.slane %v2988_v17, 2  ;;  %v1404_v17 = vrot.slane %v5438_v62, 1  ;;  %v3042_v62 = vshrl.u32 %v5786_v63, 16 }
 0x102   : > { %4658 = vmatprep.mubr.msk.bf16.mxu0 %vm477_vm2, %v2941_v47  ;;  %v1395_v1 = vsel %vm935_vm5, %v1392_v37, %v1394_v36  ;;  %v1397_v41 = vsel %vm935_vm5, %v1394_v36, %v1396_v51  ;;  %v2997_v47 = vshrl.u32 %v5746_v40, 16  ;;  %v3029_v36 = vrot.slane %v3027_v20, 3 }
 0x103   : > { %v2994_v5 = vor.u32 %v2993_v12, %v2990_v55  ;;  %v1406_v55 = vrot.slane %v5459_v35, 1  ;;  %v3341_v20 = vrot.slane %v5649_v54, 3  ;;  %v3349_v54 = vrot.slane %v5697_v14, 3 }
 0x104   : > { %v2999_v56 = vrot.slane %v2997_v47, 2  ;;  %v5921_v47 = vld [vmem:[%s5225_s28 + $0xa0] ss:$0 sps:$4 sm:$0x77]   ;;  %v3357_v14 = vrot.slane %v5733_v10, 3  ;;  %v3365_v10 = vrot.slane %v5769_v59, 3 }
 0x105   : > { %v2995_v31 = vsel %vm2888_vm6, %v2985_v4, %v2994_v5  ;;  %v3038_v4 = vrot.slane %v3036_v3, 3  ;;  %v1407_v28 = vsel %vm935_vm5, %v1404_v17, %v1406_v55  ;;  %v3367_v40 = vrot.slane %v5782_v42, 3 }
 0x106   : > { %4507 = vmatmul.mubr.msk.bf16.gmra.mrb[8].mxu1 %vm477_vm2, %v1387_v39  ;;  %v3006_v39 = vshrl.u32 %v5751_v33, 16  ;;  %v3003_v30 = vor.u32 %v3002_v15, %v2999_v56  ;;  %v3329_v15 = vld [vmem:[%s5225_s28 + $0x10] sm:$0x8] }
 0x107   : > { %4510 = vmatprep.mubr.msk.bf16.mxu1 %vm477_vm2, %v1389_v50  ;;  %v5155_v50 = vld [vmem:[%s5225_s28 + $0x68] sm:$0xff]  }
 0x108   : > { %v1398_v6 = vrot.slane %v5155_v50, 1  ;;  %v3004_v32 = vsel %vm2888_vm6, %v2994_v5, %v3003_v30  ;;  %v3044_v5 = vrot.slane %v3042_v62, 2  ;;  %v5141_v50 = vld [vmem:[%s5225_s28 + $0x98] ss:$0 sps:$4 sm:$0x11]  }
 0x109   : > { %4659 = vmatmul.mubr.msk.bf16.gmra.mrb[8].mxu0 %vm477_vm2, %v2950_v27  ;;  %v3008_v27 = vrot.slane %v3006_v39, 2  ;;  %v1410_v7 = vrot.slane %v5141_v50, 1 }
 0x10a   : > { %4662 = vmatprep.mubr.msk.bf16.mxu0 %vm477_vm2, %v2959_v46  ;;  %v1399_v29 = vsel %vm935_vm5, %v1396_v51, %v1398_v6  ;;  %v1401_v37 = vsel %vm935_vm5, %v1398_v6, %v1400_v49  ;;  %v3015_v46 = vshrl.u32 %v5764_v48, 16 }
 0x10b   : > { %v3012_v13 = vor.u32 %v3011_v43, %v3008_v27 }
 0x10c   : > { %v3017_v23 = vrot.slane %v3015_v46, 2 }
 0x10d   : > { %v3013_v45 = vsel %vm2888_vm6, %v3003_v30, %v3012_v13 }
 0x10e   : > { %4511 = vmatmul.mubr.msk.bf16.gmra.mrb[12].mxu1 %vm477_vm2, %v1391_v60  ;;  %v3024_v60 = vshrl.u32 %v5769_v59, 16  ;;  %v3021_v58 = vor.u32 %v3020_v18, %v3017_v23  ;;  %v3345_v23 = vrot.slane %v5670_v2, 3  ;;  %v3344_v18 = vsel %vm3335_vm7, %v3341_v20, %v3343_v9 }
 0x10f   : > { %4514 = vmatprep.mubr.msk.bf16.mxu1 %vm477_vm2, %v1393_v22  ;;  %v1402_v22 = vrot.slane %v5430_v44, 1  ;;  %v3353_v2 = vrot.slane %v5715_v26, 3  ;;  %v3361_v26 = vrot.slane %v5751_v33, 3  ;;  %v3369_v33 = vrot.slane %v5786_v63, 3 }
 0x110   : > { %v3026_v0 = vrot.slane %v3024_v60, 2  ;;  %v3022_v12 = vsel %vm2888_vm6, %v3012_v13, %v3021_v58 }
 0x111   : > { %4663 = vmatmul.mubr.msk.bf16.gmra.mrb[12].mxu0 %vm477_vm2, %v2968_v16  ;;  %v1403_v16 = vsel %vm935_vm5, %v1400_v49, %v1402_v22  ;;  %v1405_v44 = vsel %vm935_vm5, %v1402_v22, %v1404_v17  ;;  %v3346_v17 = vsel %vm3335_vm7, %v3343_v9, %v3345_v23  ;;  %v3362_v3 = vsel %vm3335_vm7, %v3359_v25, %v3361_v26 }
 0x112   : > { %4666 = vmatprep.mubr.msk.bf16.mxu0 %vm477_vm2, %v2977_v61  ;;  %v3030_v51 = vor.u32 %v3029_v36, %v3026_v0  ;;  %v3045_v61 = vshll.u32 %v5786_v63, 16  ;;  %v3352_v36 = vsel %vm3335_vm7, %v3349_v54, %v3351_v21 }
 0x114   : > { %v3031_v53 = vsel %vm2888_vm6, %v3021_v58, %v3030_v51  ;;  %v3047_v39 = vrot.slane %v3045_v61, 3  ;;  %v3368_v61 = vsel %vm3335_vm7, %v3365_v10, %v3367_v40 }
 0x116   : > { %4515 = vmatmul.mubr.msk.bf16.gmra.mrb[16].mxu1 %vm477_vm2, %v1395_v1  ;;  %v3035_v1 = vrot.slane %v3033_v19, 2  ;;  %v3048_v56 = vor.u32 %v3047_v39, %v3044_v5  ;;  %v3360_v19 = vsel %vm3335_vm7, %v3357_v14, %v3359_v25 }
 0x117   : > { %4518 = vmatprep.mubr.msk.bf16.mxu1 %vm477_vm2, %v1397_v41  ;;  %v1408_v41 = vrot.slane %v5471_v57, 1  ;;  %v3054_v57 = vshll.u32 %v5921_v47, 16 }
 0x118   : > { %v3039_v35 = vor.u32 %v3038_v4, %v3035_v1 }
 0x119   : > { %4667 = vmatmul.mubr.msk.bf16.gmra.mrb[16].mxu0 %vm477_vm2, %v2986_v24  ;;  %v1409_v6 = vsel %vm935_vm5, %v1406_v55, %v1408_v41  ;;  %v3051_v24 = vshrl.u32 %v5921_v47, 16  ;;  %v3056_v27 = vrot.slane %v3054_v57, 3  ;;  %v1411_v30 = vsel %vm935_vm5, %v1408_v41, %v1410_v7  ;;  %v3722_v57 = vld [vmem:[%s6174_s3] sm:$0x7] }
 0x11a   : > { %4670 = vmatprep.mubr.msk.bf16.mxu0 %vm477_vm2, %v2995_v31  ;;  %v3040_v49 = vsel %vm2888_vm6, %v3030_v51, %v3039_v35  ;;  %v3049_v43 = vsel %vm2888_vm6, %v3039_v35, %v3048_v56  ;;  %v3370_v55 = vsel %vm3335_vm7, %v3367_v40, %v3369_v33 }
 0x11b   : > { %v3053_v31 = vrot.slane %v3051_v24, 2 }
 0x11e   : > { %4519 = vmatmul.mubr.msk.bf16.gmra.mrb[20].mxu1 %vm477_vm2, %v1399_v29  ;;  %v4148_v29 = vcombine.low %v3329_v15, %v5619_v38  ;;  %v3339_v38 = vrot.slane %v5644_v34, 3  ;;  %v3347_v34 = vrot.slane %v5692_v11, 3  ;;  %v3355_v11 = vrot.slane %v5728_v52, 3 }
 0x11f   : > { %4522 = vmatprep.mubr.msk.bf16.mxu1 %vm477_vm2, %v1401_v37  ;;  %v3057_v37 = vor.u32 %v3056_v27, %v3053_v31  ;;  %v3363_v52 = vrot.slane %v5764_v48, 3  ;;  %v3371_v48 = vrot.slane %v5921_v47, 3 }
 0x120   : > { %v3336_v46 = vrot.slane %v4148_v29, 3  ;;  %v3340_v22 = vsel %vm3335_vm7, %v3337_v8, %v3339_v38  ;;  %v3350_v0 = vsel %vm3335_vm7, %v3347_v34, %v3349_v54  ;;  %v3356_v58 = vsel %vm3335_vm7, %v3353_v2, %v3355_v11 }
 0x121   : > { %4671 = vmatmul.mubr.msk.bf16.gmra.mrb[20].mxu0 %vm477_vm2, %v3004_v32  ;;  %v3058_v13 = vsel %vm2888_vm6, %v3048_v56, %v3057_v37  ;;  %v3342_v32 = vsel %vm3335_vm7, %v3339_v38, %v3341_v20  ;;  %v3364_v51 = vsel %vm3335_vm7, %v3361_v26, %v3363_v52  ;;  %v3366_v62 = vsel %vm3335_vm7, %v3363_v52, %v3365_v10 }
 0x122   : > { %4674 = vmatprep.mubr.msk.bf16.mxu0 %vm477_vm2, %v3013_v45  ;;  %v3338_v60 = vsel %vm3335_vm7, %v3336_v46, %v3337_v8  ;;  %v3348_v45 = vsel %vm3335_vm7, %v3345_v23, %v3347_v34  ;;  %v3372_v59 = vsel %vm3335_vm7, %v3369_v33, %v3371_v48 }
 0x126   : > { %4523 = vmatmul.mubr.msk.bf16.gmra.mrb[24].mxu1 %vm477_vm2, %v1403_v16  ;;  %v3354_v16 = vsel %vm3335_vm7, %v3351_v21, %v3353_v2 }
 0x127   : > { %4526 = vmatprep.mubr.msk.bf16.mxu1 %vm477_vm2, %v1405_v44  ;;  %v3358_v44 = vsel %vm3335_vm7, %v3355_v11, %v3357_v14  ;;  %v6069_v11 = vld [vmem:[%s6173_s2] ss:$0 sm:$0xff] }
 0x129   : > { %4675 = vmatmul.mubr.msk.bf16.gmra.mrb[24].mxu0 %vm477_vm2, %v3022_v12 }
 0x12a   : > { %4678 = vmatprep.mubr.msk.bf16.mxu0 %vm477_vm2, %v3031_v53 }
 0x12e   : > { %4527 = vmatmul.mubr.msk.bf16.gmra.mrb[28].mxu1 %vm477_vm2, %v1407_v28  ;;  %v3724_v28 = vlaneseq }
 0x12f   : > { %4530 = vmatprep.mubr.msk.bf16.mxu1 %vm477_vm2, %v1409_v6 }
 0x130   : > { %v3725_v35 = vshrl.u32 %v3724_v28, 7 }
 0x131   : > { %4679 = vmatmul.mubr.msk.bf16.gmra.mrb[28].mxu0 %vm477_vm2, %v3040_v49 }
 0x132   : > { %4682 = vmatprep.mubr.msk.bf16.mxu0 %vm477_vm2, %v3049_v43  ;;  %v3730_v24 = vsub.s32 1, %v3725_v35  ;;  %v3726_v56 = vsub.s32 0, %v3725_v35  ;;  %v3734_v49 = vsub.s32 2, %v3725_v35 }
 0x134   : > { %v3731_v15 = vrot.slane %v3722_v57, %v3730_v24  ;;  %v6014_v7 = vrot.slane %v3722_v57, %v3726_v56  ;;  %v6020_v43 = vrot.slane %v3722_v57, %v3734_v49 }
 0x136   : > { %4531 = vmatmul.mubr.msk.bf16.gmra.mrb[32].mxu1 %vm477_vm2, %v1411_v30 }
 0x137   : > { %3805 = vmatprep.mubr.f32.mxu1 %v3731_v15 }
 0x139   : > { %4683 = vmatmul.mubr.msk.bf16.gmra.mrb[32].mxu0 %vm477_vm2, %v3058_v13 }
 0x13a   : > { %4688 = vmatprep.mubr.msk.bf16.mxu0 %vm477_vm2, %v3338_v60 }
 0x141   : > { %4689 = vmatmul.mubr.msk.bf16.vlgmr.msra.gmra.mrb[0].mxu0 %vm477_vm2, %v3340_v22 }
 0x142   : > { %4692 = vmatprep.mubr.msk.bf16.mxu0 %vm477_vm2, %v3342_v32 }
 0x149   : > { %4693 = vmatmul.mubr.msk.bf16.gmra.mrb[4].mxu0 %vm477_vm2, %v3344_v18 }
 0x14a   : > { %4696 = vmatprep.mubr.msk.bf16.mxu0 %vm477_vm2, %v3346_v17 }
 0x151   : > { %4697 = vmatmul.mubr.msk.bf16.gmra.mrb[8].mxu0 %vm477_vm2, %v3348_v45 }
 0x152   : > { %4700 = vmatprep.mubr.msk.bf16.mxu0 %vm477_vm2, %v3350_v0 }
 0x159   : > { %4701 = vmatmul.mubr.msk.bf16.gmra.mrb[12].mxu0 %vm477_vm2, %v3352_v36 }
 0x15a   : > { %4704 = vmatprep.mubr.msk.bf16.mxu0 %vm477_vm2, %v3354_v16 }
 0x161   : > { %4705 = vmatmul.mubr.msk.bf16.gmra.mrb[16].mxu0 %vm477_vm2, %v3356_v58 }
 0x162   : > { %4708 = vmatprep.mubr.msk.bf16.mxu0 %vm477_vm2, %v3358_v44 }
 0x169   : > { %4709 = vmatmul.mubr.msk.bf16.gmra.mrb[20].mxu0 %vm477_vm2, %v3360_v19 }
 0x16a   : > { %4712 = vmatprep.mubr.msk.bf16.mxu0 %vm477_vm2, %v3362_v3 }
 0x171   : > { %4713 = vmatmul.mubr.msk.bf16.gmra.mrb[24].mxu0 %vm477_vm2, %v3364_v51 }
 0x172   : > { %4716 = vmatprep.mubr.msk.bf16.mxu0 %vm477_vm2, %v3366_v62 }
 0x179   : > { %4717 = vmatmul.mubr.msk.bf16.gmra.mrb[28].mxu0 %vm477_vm2, %v3368_v61 }
 0x17a   : > { %4720 = vmatprep.mubr.msk.bf16.mxu0 %vm477_vm2, %v3370_v55 }
 0x181   : > { %4721 = vmatmul.mubr.msk.bf16.gmra.mrb[32].mxu0 %vm477_vm2, %v3372_v59 }
 0x1c9   : > { %v4500_v12 = vpop.f32.mrb[0].mxu1 }
 0x1ca   : > { %v1503_v1 = vpop.f32.mrb[1].mxu1 }
 0x1cb   : > { %v4501_v4 = vpop.f32.mrb[2].mxu1 }
 0x1cc   : > { %v1506_v42 = vpop.f32.mrb[3].mxu1 }
 0x1d1   : > { %v4504_v41 = vpop.f32.mrb[4].mxu1 }
 0x1d2   : > { %v5997_v63 = vpop.f32.mrb[5].mxu1 }
 0x1d3   : > { %v5999_v53 = vpop.f32.mrb[6].mxu1 }
 0x1d4   : > { %v6001_v5 = vpop.f32.mrb[7].mxu1 }
 0x1d9   : > { %v6003_v39 = vpop.f32.mrb[8].mxu1 }
 0x1da   : > { %v6005_v50 = vpop.f32.mrb[9].mxu1 }
 0x1db   : > { %v6007_v47 = vpop.f32.mrb[10].mxu1 }
 0x1dc   : > { %v6009_v6 = vpop.f32.mrb[11].mxu1 }
 0x1e1   : > { %v6016_v31 = vpop.f32.mrb[12].mxu1 }
 0x1e2   : > { %v6018_v27 = vpop.f32.mrb[13].mxu1 }
 0x1e3   : > { %v6022_v29 = vpop.f32.mrb[14].mxu1 }
 0x1e4   : > { %v6024_v30 = vpop.f32.mrb[15].mxu1 }
 0x1e9   : > { %v6026_v37 = vpop.f32.mrb[16].mxu1 }
 0x1ea   : > { %v6028_v46 = vpop.f32.mrb[17].mxu1 }
 0x1eb   : > { %v6030_v8 = vpop.f32.mrb[18].mxu1 }
 0x1ec   : > { %v6032_v13 = vpop.f32.mrb[19].mxu1 }
 0x1f1   : > { %v6034_v60 = vpop.f32.mrb[20].mxu1 }
 0x1f2   : > { %v6036_v38 = vpop.f32.mrb[21].mxu1 }
 0x1f3   : > { %v6038_v20 = vpop.f32.mrb[22].mxu1 }
 0x1f4   : > { %v6040_v22 = vpop.f32.mrb[23].mxu1 }
 0x1f9   : > { %v6042_v32 = vpop.f32.mrb[24].mxu1 }
 0x1fa   : > { %v6044_v9 = vpop.f32.mrb[25].mxu1 }
 0x1fb   : > { %v6046_v23 = vpop.f32.mrb[26].mxu1 }
 0x1fc   : > { %v6048_v18 = vpop.f32.mrb[27].mxu1 }
 0x201   : > { %v6050_v17 = vpop.f32.mrb[28].mxu1 }
 0x202   : > { %v6052_v34 = vpop.f32.mrb[29].mxu1 }
 0x203   : > { %v6054_v54 = vpop.f32.mrb[30].mxu1 }
 0x204   : > { %v6056_v45 = vpop.f32.mrb[31].mxu1 }
 0x209   : > { %v6058_v0 = vpop.f32.mrb[32].mxu1 }
 0x20a   : > { %v6060_v21 = vpop.f32.mrb[33].mxu1 }
 0x20b   : > { %v6062_v2 = vpop.f32.mrb[34].mxu1 }
 0x20c   : > { %v6064_v36 = vpop.f32.mrb[35].mxu1 }
 0x214   : > { %v4690_v16 = vpop.f32.mrb[0].mxu0 }
 0x215   : > { %v4773_v14 = vadd.f32 %v4690_v16, %v4500_v12  ;;  %v3464_v58 = vpop.f32.mrb[1].mxu0 }
 0x216   : > { %v4774_v44 = vadd.f32 %v3464_v58, %v1503_v1  ;;  %v4691_v25 = vpop.f32.mrb[2].mxu0 }
 0x217   : > { %v3652_v26 = vadd.f32 %v4773_v14, %v6069_v11  ;;  %v4775_v19 = vadd.f32 %v4691_v25, %v4501_v4  ;;  %v3467_v3 = vpop.f32.mrb[3].mxu0 }
 0x218   : > { %v3650_v52 = vadd.f32 %v4774_v44, %v6069_v11  ;;  %v4776_v10 = vadd.f32 %v3467_v3, %v1506_v42 }
 0x219   : > { %v3653_v51 = vadd.f32 %v4775_v19, %v6069_v11  ;;  %v3688_v40 = vmax.f32 %v3652_v26, 0.0 }
 0x21a   : > { %v3651_v62 = vadd.f32 %v4776_v10, %v6069_v11  ;;  %v3686_v61 = vmax.f32 %v3650_v52, 0.0 }
 0x21b   : > { %v3689_v33 = vmax.f32 %v3653_v51, 0.0 }
 0x21c   : > { %v3687_v55 = vmax.f32 %v3651_v62, 0.0  ;;  %v4694_v48 = vpop.f32.mrb[4].mxu0 }
 0x21d   : > { %v6075_v59 = vpack.c.bf16 %v3689_v33, %v3688_v40  ;;  %v4777_v12 = vadd.f32 %v4694_v48, %v4504_v41  ;;  %v3480_v1 = vpop.f32.mrb[5].mxu0 }
 0x21e   : > { %v6077_v28 = vpack.c.bf16 %v3687_v55, %v3686_v61  ;;  %v4778_v4 = vadd.f32 %v3480_v1, %v5997_v63  ;;  %v4695_v35 = vpop.f32.mrb[6].mxu0 }
 0x21f   : > { %v3656_v42 = vadd.f32 %v4777_v12, %v6069_v11  ;;  %v4779_v24 = vadd.f32 %v4695_v35, %v5999_v53  ;;  %v3483_v57 = vpop.f32.mrb[7].mxu0 }
 0x220   : > { %v3654_v56 = vadd.f32 %v4778_v4, %v6069_v11  ;;  %v4780_v15 = vadd.f32 %v3483_v57, %v6001_v5 }
 0x221   : > { %v3657_v49 = vadd.f32 %v4779_v24, %v6069_v11  ;;  %v3692_v41 = vmax.f32 %v3656_v42, 0.0 }
 0x222   : > { %v3655_v16 = vadd.f32 %v4780_v15, %v6069_v11  ;;  %v3690_v58 = vmax.f32 %v3654_v56, 0.0 }
 0x223   : > { %v3693_v14 = vmax.f32 %v3657_v49, 0.0 }
 0x224   : > { %v3691_v44 = vmax.f32 %v3655_v16, 0.0  ;;  %v4698_v25 = vpop.f32.mrb[8].mxu0 }
 0x225   : > { %v6086_v63 = vpack.c.bf16 %v3693_v14, %v3692_v41  ;;  %v4781_v26 = vadd.f32 %v4698_v25, %v6003_v39  ;;  %v3496_v19 = vpop.f32.mrb[9].mxu0 }
 0x226   : > { %v6089_v53 = vpack.c.bf16 %v3691_v44, %v3690_v58  ;;  %v4782_v3 = vadd.f32 %v3496_v19, %v6005_v50  ;;  %v4699_v52 = vpop.f32.mrb[10].mxu0 }
 0x227   : > { %v3660_v5 = vadd.f32 %v4781_v26, %v6069_v11  ;;  %v4783_v10 = vadd.f32 %v4699_v52, %v6007_v47  ;;  %v3499_v51 = vpop.f32.mrb[11].mxu0 }
 0x228   : > { %v3658_v62 = vadd.f32 %v4782_v3, %v6069_v11  ;;  %v4784_v40 = vadd.f32 %v3499_v51, %v6009_v6 }
 0x229   : > { %v3661_v33 = vadd.f32 %v4783_v10, %v6069_v11  ;;  %v3696_v39 = vmax.f32 %v3660_v5, 0.0 }
 0x22a   : > { %v3659_v61 = vadd.f32 %v4784_v40, %v6069_v11  ;;  %v3694_v48 = vmax.f32 %v3658_v62, 0.0 }
 0x22b   : > { %v3697_v55 = vmax.f32 %v3661_v33, 0.0 }
 0x22c   : > { %v3695_v12 = vmax.f32 %v3659_v61, 0.0  ;;  %v4702_v1 = vpop.f32.mrb[12].mxu0 }
 0x22d   : > { %v6098_v50 = vpack.c.bf16 %v3697_v55, %v3696_v39  ;;  %v4785_v4 = vadd.f32 %v4702_v1, %v6016_v31  ;;  %v3512_v35 = vpop.f32.mrb[13].mxu0 }
 0x22e   : > { %v6101_v47 = vpack.c.bf16 %v3695_v12, %v3694_v48  ;;  %v4786_v42 = vadd.f32 %v3512_v35, %v6018_v27  ;;  %v4703_v24 = vpop.f32.mrb[14].mxu0 }
 0x22f   : > { %v3664_v6 = vadd.f32 %v4785_v4, %v6069_v11  ;;  %v4787_v57 = vadd.f32 %v4703_v24, %v6022_v29  ;;  %v3515_v56 = vpop.f32.mrb[15].mxu0 }
 0x230   : > { %v3662_v15 = vadd.f32 %v4786_v42, %v6069_v11  ;;  %v4788_v49 = vadd.f32 %v3515_v56, %v6024_v30 }
 0x231   : > { %v3665_v16 = vadd.f32 %v4787_v57, %v6069_v11  ;;  %v3700_v31 = vmax.f32 %v3664_v6, 0.0 }
 0x232   : > { %v3663_v41 = vadd.f32 %v4788_v49, %v6069_v11  ;;  %v3698_v58 = vmax.f32 %v3662_v15, 0.0 }
 0x233   : > { %v3701_v14 = vmax.f32 %v3665_v16, 0.0 }
 0x234   : > { %v3699_v44 = vmax.f32 %v3663_v41, 0.0  ;;  %v4706_v25 = vpop.f32.mrb[16].mxu0 }
 0x235   : > { %v6110_v27 = vpack.c.bf16 %v3701_v14, %v3700_v31  ;;  %v4789_v26 = vadd.f32 %v4706_v25, %v6026_v37  ;;  %v3528_v19 = vpop.f32.mrb[17].mxu0 }
 0x236   : > { %v6113_v29 = vpack.c.bf16 %v3699_v44, %v3698_v58  ;;  %v4790_v3 = vadd.f32 %v3528_v19, %v6028_v46  ;;  %v4707_v52 = vpop.f32.mrb[18].mxu0 }
 0x237   : > { %v3668_v30 = vadd.f32 %v4789_v26, %v6069_v11  ;;  %v4791_v5 = vadd.f32 %v4707_v52, %v6030_v8  ;;  %v3531_v10 = vpop.f32.mrb[19].mxu0 }
 0x238   : > { %v3666_v51 = vadd.f32 %v4790_v3, %v6069_v11  ;;  %v4792_v62 = vadd.f32 %v3531_v10, %v6032_v13 }
 0x239   : > { %v3669_v40 = vadd.f32 %v4791_v5, %v6069_v11  ;;  %v3704_v37 = vmax.f32 %v3668_v30, 0.0 }
 0x23a   : > { %v3667_v33 = vadd.f32 %v4792_v62, %v6069_v11  ;;  %v3702_v39 = vmax.f32 %v3666_v51, 0.0 }
 0x23b   : > { %v3705_v61 = vmax.f32 %v3669_v40, 0.0 }
 0x23c   : > { %v3703_v55 = vmax.f32 %v3667_v33, 0.0  ;;  %v4710_v48 = vpop.f32.mrb[20].mxu0 }
 0x23d   : > { %v4793_v46 = vadd.f32 %v4710_v48, %v6034_v60  ;;  %v3544_v12 = vpop.f32.mrb[21].mxu0  ;;  %v4739_v1 = vpack.c.bf16 %v3705_v61, %v3704_v37 }
 0x23e   : > { %v4794_v8 = vadd.f32 %v3544_v12, %v6036_v38  ;;  %v4711_v4 = vpop.f32.mrb[22].mxu0  ;;  %v4735_v35 = vpack.c.bf16 %v3703_v55, %v3702_v39 }
 0x23f   : > { %v3672_v42 = vadd.f32 %v4793_v46, %v6069_v11  ;;  %v4795_v13 = vadd.f32 %v4711_v4, %v6038_v20  ;;  %v3547_v24 = vpop.f32.mrb[23].mxu0 }
 0x240   : > { %v3670_v6 = vadd.f32 %v4794_v8, %v6069_v11  ;;  %v4796_v57 = vadd.f32 %v3547_v24, %v6040_v22  ;;  %4736 = vmatprep.subr.bf16.mxu1 %v4735_v35 }
 0x241   : > { %v3673_v56 = vadd.f32 %v4795_v13, %v6069_v11  ;;  %4738 = vmatpush3.bf16.msra.mxu1 %v6077_v28  ;;  %v3708_v38 = vmax.f32 %v3672_v42, 0.0 }
 0x242   : > { %v3671_v60 = vadd.f32 %v4796_v57, %v6069_v11  ;;  %4740 = vmatprep.subr.bf16.mxu1 %v4739_v1  ;;  %v3706_v49 = vmax.f32 %v3670_v6, 0.0 }
 0x243   : > { %v3709_v15 = vmax.f32 %v3673_v56, 0.0 }
 0x244   : > { %v3707_v16 = vmax.f32 %v3671_v60, 0.0  ;;  %v4714_v41 = vpop.f32.mrb[24].mxu0 }
 0x245   : > { %v4797_v20 = vadd.f32 %v4714_v41, %v6042_v32  ;;  %v3560_v31 = vpop.f32.mrb[25].mxu0  ;;  %4742 = vmatpush3.bf16.msra.mxu1 %v6075_v59  ;;  %v4747_v14 = vpack.c.bf16 %v3709_v15, %v3708_v38 }
 0x246   : > { %v4798_v22 = vadd.f32 %v3560_v31, %v6044_v9  ;;  %v4715_v58 = vpop.f32.mrb[26].mxu0  ;;  %v4743_v44 = vpack.c.bf16 %v3707_v16, %v3706_v49  ;;  %v5165_v49 = vmov 0.0|0.0  }
 0x247   : > { %v3676_v28 = vadd.f32 %v4797_v20, %v6069_v11  ;;  %v4799_v25 = vadd.f32 %v4715_v58, %v6046_v23  ;;  %v3563_v26 = vpop.f32.mrb[27].mxu0 }
 0x248   : > { %v3674_v19 = vadd.f32 %v4798_v22, %v6069_v11  ;;  %v4800_v3 = vadd.f32 %v3563_v26, %v6048_v18  ;;  %4744 = vmatprep.subr.bf16.mxu1 %v4743_v44 }
 0x249   : > { %v3677_v32 = vadd.f32 %v4799_v25, %v6069_v11  ;;  %4746 = vmatpush3.bf16.msra.mxu1 %v6089_v53  ;;  %v3712_v9 = vmax.f32 %v3676_v28, 0.0 }
 0x24a   : > { %v3675_v59 = vadd.f32 %v4800_v3, %v6069_v11  ;;  %4748 = vmatprep.subr.bf16.mxu1 %v4747_v14  ;;  %v3710_v30 = vmax.f32 %v3674_v19, 0.0 }
 0x24b   : > { %v3713_v52 = vmax.f32 %v3677_v32, 0.0 }
 0x24c   : > { %v3711_v5 = vmax.f32 %v3675_v59, 0.0  ;;  %v4718_v10 = vpop.f32.mrb[28].mxu0 }
 0x24d   : > { %v4801_v23 = vadd.f32 %v4718_v10, %v6050_v17  ;;  %v3576_v51 = vpop.f32.mrb[29].mxu0  ;;  %4750 = vmatpush3.bf16.msra.mxu1 %v6086_v63  ;;  %v4755_v62 = vpack.c.bf16 %v3713_v52, %v3712_v9 }
 0x24e   : > { %v4802_v18 = vadd.f32 %v3576_v51, %v6052_v34  ;;  %v4719_v40 = vpop.f32.mrb[30].mxu0  ;;  %v4751_v33 = vpack.c.bf16 %v3711_v5, %v3710_v30 }
 0x24f   : > { %v3680_v53 = vadd.f32 %v4801_v23, %v6069_v11  ;;  %v4803_v37 = vadd.f32 %v4719_v40, %v6054_v54  ;;  %v3579_v61 = vpop.f32.mrb[31].mxu0 }
 0x250   : > { %v3678_v39 = vadd.f32 %v4802_v18, %v6069_v11  ;;  %v4804_v55 = vadd.f32 %v3579_v61, %v6056_v45  ;;  %4752 = vmatprep.subr.bf16.mxu1 %v4751_v33 }
 0x251   : > { %v3681_v17 = vadd.f32 %v4803_v37, %v6069_v11  ;;  %4754 = vmatpush3.bf16.msra.mxu1 %v6101_v47  ;;  %v3716_v34 = vmax.f32 %v3680_v53, 0.0 }
 0x252   : > { %v3679_v63 = vadd.f32 %v4804_v55, %v6069_v11  ;;  %4756 = vmatprep.subr.bf16.mxu1 %v4755_v62  ;;  %v3714_v46 = vmax.f32 %v3678_v39, 0.0 }
 0x253   : > { %v3717_v48 = vmax.f32 %v3681_v17, 0.0 }
 0x254   : > { %v3715_v12 = vmax.f32 %v3679_v63, 0.0  ;;  %v4722_v1 = vpop.f32.mrb[32].mxu0 }
 0x255   : > { %v4805_v54 = vadd.f32 %v4722_v1, %v6058_v0  ;;  %v3592_v8 = vpop.f32.mrb[33].mxu0  ;;  %4758 = vmatpush3.bf16.msra.mxu1 %v6098_v50  ;;  %v4763_v4 = vpack.c.bf16 %v3717_v48, %v3716_v34 }
 0x256   : > { %v4806_v45 = vadd.f32 %v3592_v8, %v6060_v21  ;;  %v4723_v35 = vpop.f32.mrb[34].mxu0  ;;  %v4759_v42 = vpack.c.bf16 %v3715_v12, %v3714_v46 }
 0x257   : > { %v3684_v47 = vadd.f32 %v4805_v54, %v6069_v11  ;;  %v4807_v13 = vadd.f32 %v4723_v35, %v6062_v2  ;;  %v3595_v24 = vpop.f32.mrb[35].mxu0 }
 0x258   : > { %v3682_v6 = vadd.f32 %v4806_v45, %v6069_v11  ;;  %v4808_v57 = vadd.f32 %v3595_v24, %v6064_v36  ;;  %4760 = vmatprep.subr.bf16.mxu1 %v4759_v42  ;;  %v5167_v36 = vmov 0.0  }
 0x259   : > { %v3685_v0 = vadd.f32 %v4807_v13, %v6069_v11  ;;  %4762 = vmatpush3.bf16.msra.mxu1 %v6113_v29  ;;  %v3720_v21 = vmax.f32 %v3684_v47, 0.0 }
 0x25a   : > { %v3683_v50 = vadd.f32 %v4808_v57, %v6069_v11  ;;  %4764 = vmatprep.subr.bf16.mxu1 %v4763_v4  ;;  %v3718_v60 = vmax.f32 %v3682_v6, 0.0 }
 0x25b   : > { %v3721_v56 = vmax.f32 %v3685_v0, 0.0 }
 0x25c   : > { %v3719_v38 = vmax.f32 %v3683_v50, 0.0 }
 0x25d   : > { %v4771_v15 = vpack.c.bf16 %v3721_v56, %v3720_v21  ;;  %4766 = vmatpush3.bf16.msra.mxu1 %v6110_v27 }
 0x25e   : > { %v4768_v2 = vpack.c.bf16 %v3719_v38, %v3718_v60  ;;  %4767 = vmatprep.subr.bf16.mxu1 %v5165_v49 }
 0x260   : > { %3806 = vmatmul.mubr.f32.vlgmr.msra.gmra.mrb[36].mxu1 %v6014_v7 }
 0x261   : > { %4769 = vmatpush3.bf16.msra.mxu1 %v4768_v2  ;;  %4732 = vmatprep.mubr.msk.f32.mxu1 %vm5166_vm8, %v5167_v36 }
 0x262   : > { %4770 = vmatprep.subr.bf16.mxu1 %v5165_v49 }
 0x265   : > { %4772 = vmatpush3.bf16.msra.mxu1 %v4771_v15 }
 0x268   : > { %4733 = vmatmul.mubr.msk.f32.vlgmr.msra.gmra.mrb[38].mxu1 %vm3738_vm9, %v6020_v43 }
 0x333   : > { %v4374_v11 = vpop.f32.mrb[36].mxu1 }
 0x334   : > { %v4375_v29 = vpop.f32.mrb[37].mxu1 }
 0x335   : > { %v4376_v16 = vadd.f32 %v4375_v29, %v4374_v11 }
 0x33b   : > { %v3877_v27 = vpop.f32.mrb[38].mxu1 }
 0x33c   : > { %v3878_v41 = vadd.f32 %v4376_v16, %v3877_v27  ;;  %v4734_v20 = vpop.f32.mrb[39].mxu1 }
 0x33e   : > { %3881 = vst [vmem:[%s193_s21] sm:$0x1] %v3878_v41 }
 0x33f PF: > { %s14_s15 = sadd.s32 1, %s5163_s15  }
 0x340   : > { %p11_p4 = scmp.ge.s32.totalorder %s14_s15, 4  }
 0x342   :  { %13 = sbr.rel (!%p11_p4) target bundleno = 1 (0x1), region = 74 }

// kernel: multitask_foodnet_forward.3
= control target key start
LH: loop header
LB: loop body
LE: loop exit
PB: predicated region body
PF: predicated region fallthrough
CT: control target
= control target key end

     0   :  { %14 = vsyncpa [#allocation3], 0  ;;  %v4699_v6 = vmov 0   ;;  %s6138_s0 = inlined_call_operand.vmem [shape: f32[2,128], index: 0, kind: input, shape index: {}]   ;;  %s6139_s1 = inlined_call_operand.vmem [shape: bf16[128,1024], index: 1, kind: input, shape index: {}]   ;;  %s6140_s2 = inlined_call_operand.vmem [shape: f32[1,1024], index: 2, kind: input, shape index: {}]   ;;  %s6141_s3 = inlined_call_operand.vmem [shape: bf16[1024,640], index: 3, kind: input, shape index: {}]   ;;  %s6142_s4 = inlined_call_operand.vmem [shape: f32[1,640], index: 4, kind: input, shape index: {}]   ;;  %s6143_s5 = inlined_call_operand.vmem [shape: bf16[512,128], index: 5, kind: input, shape index: {}]   ;;  %s6144_s6 = inlined_call_operand.vmem [shape: f32[1,128], index: 6, kind: input, shape index: {}]   ;;  %s6145_s7 = inlined_call_operand.hbm [shape: f32[2,128], index: 7, kind: output, shape index: {0}]   ;;  %s6146_s8 = inlined_call_operand.hbm [shape: f32[2,128], index: 8, kind: output, shape index: {1}]  }
   0x1   :  { %v33_v0 = vld [vmem:[%s6139_s1] sm:$0xff]  ;;  %491 = vmatprep.mubr.bf16.mxu0 %v4699_v6  ;;  %532 = vmatprep.mubr.bf16.mxu1 %v4699_v6  ;;  %v34_v14 = vld [vmem:[%s6139_s1 + $0x8] sm:$0xff]  ;;  %v35_v59 = vld [vmem:[%s6139_s1 + $0x10] sm:$0xff] }
   0x2   :  { %v37_v1 = vld [vmem:[%s6139_s1 + $0x20] sm:$0xff]  ;;  %v38_v15 = vld [vmem:[%s6139_s1 + $0x28] sm:$0xff]  ;;  %v39_v60 = vld [vmem:[%s6139_s1 + $0x30] sm:$0xff] }
   0x3   :  { %v41_v2 = vld [vmem:[%s6139_s1 + $0x40] sm:$0xff]  ;;  %v3592_v3 = vcombine.high %v33_v0, %v37_v1  ;;  %v3591_v4 = vcombine.low %v33_v0, %v37_v1  ;;  %v42_v16 = vld [vmem:[%s6139_s1 + $0x48] sm:$0xff]  ;;  %v3594_v18 = vcombine.high %v34_v14, %v38_v15  ;;  %v3593_v19 = vcombine.low %v34_v14, %v38_v15  ;;  %v55_v14 = vld [vmem:[%s6139_s1 + $0xb0] sm:$0xff] }
   0x4   :  { %v45_v5 = vld [vmem:[%s6139_s1 + $0x60] sm:$0xff]  ;;  %v46_v17 = vld [vmem:[%s6139_s1 + $0x68] sm:$0xff]  ;;  %v3596_v1 = vcombine.high %v35_v59, %v39_v60 }
   0x5   :  { %v3600_v7 = vcombine.high %v41_v2, %v45_v5  ;;  %v49_v8 = vld [vmem:[%s6139_s1 + $0x80] sm:$0xff]  ;;  %459 = vmatprep.subr.bf16.mxu0 %v3592_v3  ;;  %v3599_v10 = vcombine.low %v41_v2, %v45_v5  ;;  %v3602_v20 = vcombine.high %v42_v16, %v46_v17  ;;  %v50_v22 = vld [vmem:[%s6139_s1 + $0x88] sm:$0xff]  ;;  %500 = vmatprep.subr.bf16.mxu1 %v3594_v18  ;;  %v43_v3 = vld [vmem:[%s6139_s1 + $0x50] sm:$0xff] }
   0x6   :  { %v53_v9 = vld [vmem:[%s6139_s1 + $0xa0] sm:$0xff]  ;;  %460 = vmatpush1.bf16.msra.mxu0 %v3591_v4  ;;  %v54_v23 = vld [vmem:[%s6139_s1 + $0xa8] sm:$0xff]  ;;  %501 = vmatpush1.bf16.msra.mxu1 %v3593_v19  ;;  %v3601_v27 = vcombine.low %v42_v16, %v46_v17  ;;  %v47_v4 = vld [vmem:[%s6139_s1 + $0x70] sm:$0xff] }
   0x7   :  { %461 = vmatprep.subr.bf16.mxu0 %v3600_v7  ;;  %v3608_v11 = vcombine.high %v49_v8, %v53_v9  ;;  %v57_v12 = vld [vmem:[%s6139_s1 + $0xc0] sm:$0xff]  ;;  %v3607_v21 = vcombine.low %v49_v8, %v53_v9  ;;  %502 = vmatprep.subr.bf16.mxu1 %v3602_v20  ;;  %v3610_v28 = vcombine.high %v50_v22, %v54_v23  ;;  %v58_v30 = vld [vmem:[%s6139_s1 + $0xc8] sm:$0xff]  ;;  %v36_v8 = vld [vmem:[%s6139_s1 + $0x18] sm:$0xff] }
   0x8   :  { %v61_v13 = vld [vmem:[%s6139_s1 + $0xe0] sm:$0xff]  ;;  %v62_v31 = vld [vmem:[%s6139_s1 + $0xe8] sm:$0xff]  ;;  %v3609_v35 = vcombine.low %v50_v22, %v54_v23  ;;  %v3595_v9 = vcombine.low %v35_v59, %v39_v60  ;;  %v44_v16 = vld [vmem:[%s6139_s1 + $0x58] sm:$0xff]  ;;  %v3603_v17 = vcombine.low %v43_v3, %v47_v4 }
   0x9   :  { %v3616_v24 = vcombine.high %v57_v12, %v61_v13  ;;  %v65_v25 = vld [vmem:[%s6139_s1 + $0x100] sm:$0xff]  ;;  %v3615_v29 = vcombine.low %v57_v12, %v61_v13  ;;  %v3618_v36 = vcombine.high %v58_v30, %v62_v31  ;;  %v66_v38 = vld [vmem:[%s6139_s1 + $0x108] sm:$0xff]  ;;  %v3617_v43 = vcombine.low %v58_v30, %v62_v31  ;;  %v51_v13 = vld [vmem:[%s6139_s1 + $0x90] sm:$0xff] }
   0xa   :  { %462 = vmatpush1.bf16.msra.mxu0 %v3599_v10  ;;  %v69_v26 = vld [vmem:[%s6139_s1 + $0x120] sm:$0xff]  ;;  %503 = vmatpush1.bf16.msra.mxu1 %v3601_v27  ;;  %v70_v39 = vld [vmem:[%s6139_s1 + $0x128] sm:$0xff]  ;;  %v40_v10 = vld [vmem:[%s6139_s1 + $0x38] sm:$0xff]  ;;  %v3612_v19 = vcombine.high %v51_v13, %v55_v14 }
   0xb   :  { %463 = vmatprep.subr.bf16.mxu0 %v3608_v11  ;;  %v3624_v32 = vcombine.high %v65_v25, %v69_v26  ;;  %v73_v33 = vld [vmem:[%s6139_s1 + $0x140] sm:$0xff]  ;;  %504 = vmatprep.subr.bf16.mxu1 %v3610_v28  ;;  %v3623_v37 = vcombine.low %v65_v25, %v69_v26  ;;  %v3626_v44 = vcombine.high %v66_v38, %v70_v39  ;;  %v74_v46 = vld [vmem:[%s6139_s1 + $0x148] sm:$0xff]  ;;  %v48_v18 = vld [vmem:[%s6139_s1 + $0x78] sm:$0xff] }
   0xc   :  { %v77_v34 = vld [vmem:[%s6139_s1 + $0x160] sm:$0xff]  ;;  %v78_v47 = vld [vmem:[%s6139_s1 + $0x168] sm:$0xff]  ;;  %v3625_v51 = vcombine.low %v66_v38, %v70_v39  ;;  %v3604_v11 = vcombine.high %v43_v3, %v47_v4  ;;  %v3598_v15 = vcombine.high %v36_v8, %v40_v10  ;;  %v59_v20 = vld [vmem:[%s6139_s1 + $0xd0] sm:$0xff]  ;;  %v3597_v22 = vcombine.low %v36_v8, %v40_v10 }
   0xd   :  { %v3632_v40 = vcombine.high %v73_v33, %v77_v34  ;;  %v81_v41 = vld [vmem:[%s6139_s1 + $0x180] sm:$0xff]  ;;  %v3631_v45 = vcombine.low %v73_v33, %v77_v34  ;;  %v3634_v52 = vcombine.high %v74_v46, %v78_v47  ;;  %v82_v53 = vld [vmem:[%s6139_s1 + $0x188] sm:$0xff]  ;;  %v3633_v58 = vcombine.low %v74_v46, %v78_v47  ;;  %v56_v26 = vld [vmem:[%s6139_s1 + $0xb8] sm:$0xff] }
   0xe   :  { %464 = vmatpush1.bf16.msra.mxu0 %v3607_v21  ;;  %v85_v42 = vld [vmem:[%s6139_s1 + $0x1a0] sm:$0xff]  ;;  %505 = vmatpush1.bf16.msra.mxu1 %v3609_v35  ;;  %v86_v55 = vld [vmem:[%s6139_s1 + $0x1a8] sm:$0xff]  ;;  %v63_v21 = vld [vmem:[%s6139_s1 + $0xf0] sm:$0xff]  ;;  %v3606_v23 = vcombine.high %v44_v16, %v48_v18  ;;  %v3611_v25 = vcombine.low %v51_v13, %v55_v14  ;;  %v3605_v30 = vcombine.low %v44_v16, %v48_v18 }
   0xf   :  { %465 = vmatprep.subr.bf16.mxu0 %v3616_v24  ;;  %506 = vmatprep.subr.bf16.mxu1 %v3618_v36  ;;  %v3640_v48 = vcombine.high %v81_v41, %v85_v42  ;;  %v89_v49 = vld [vmem:[%s6139_s1 + $0x1c0] sm:$0xff]  ;;  %v3639_v54 = vcombine.low %v81_v41, %v85_v42  ;;  %v3642_v61 = vcombine.high %v82_v53, %v86_v55  ;;  %v90_v62 = vld [vmem:[%s6139_s1 + $0x1c8] sm:$0xff]  ;;  %v52_v24 = vld [vmem:[%s6139_s1 + $0x98] sm:$0xff] }
  0x10   :  { %v93_v50 = vld [vmem:[%s6139_s1 + $0x1e0] sm:$0xff]  ;;  %v94_v0 = vld [vmem:[%s6139_s1 + $0x1e8] sm:$0xff]  ;;  %v3641_v2 = vcombine.low %v82_v53, %v86_v55  ;;  %v3620_v27 = vcombine.high %v59_v20, %v63_v21  ;;  %v67_v28 = vld [vmem:[%s6139_s1 + $0x110] sm:$0xff]  ;;  %v3614_v31 = vcombine.high %v52_v24, %v56_v26  ;;  %v3619_v33 = vcombine.low %v59_v20, %v63_v21 }
  0x11   :  { %v3648_v56 = vcombine.high %v89_v49, %v93_v50  ;;  %v31_v57 = vld [vmem:[%s6138_s0] sm:$0x3]  ;;  %v3647_v63 = vcombine.low %v89_v49, %v93_v50  ;;  %v3650_v7 = vcombine.high %v90_v62, %v94_v0  ;;  %v3649_v12 = vcombine.low %v90_v62, %v94_v0  ;;  %v64_v34 = vld [vmem:[%s6139_s1 + $0xf8] sm:$0xff]  ;;  %v75_v36 = vld [vmem:[%s6139_s1 + $0x150] sm:$0xff] }
  0x12   :  { %466 = vmatpush1.bf16.msra.mxu0 %v3615_v29  ;;  %507 = vmatpush1.bf16.msra.mxu1 %v3617_v43  ;;  %v4860_v5 = vpack.c.bf16 %v31_v57, %v31_v57  ;;  %v71_v29 = vld [vmem:[%s6139_s1 + $0x130] sm:$0xff]  ;;  %v68_v39 = vld [vmem:[%s6139_s1 + $0x118] sm:$0xff]  ;;  %v4179_v4 = vld [vmem:[%s6141_s3 + $0x2c] ss:$20 sps:$4 sm:$0xff]  }
  0x13   :  { %467 = vmatprep.subr.bf16.mxu0 %v3624_v32  ;;  %508 = vmatprep.subr.bf16.mxu1 %v3626_v44  ;;  %v60_v32 = vld [vmem:[%s6139_s1 + $0xd8] sm:$0xff]  ;;  %v3628_v35 = vcombine.high %v67_v28, %v71_v29  ;;  %v83_v43 = vld [vmem:[%s6139_s1 + $0x190] sm:$0xff]  ;;  %v4203_v21 = vld [vmem:[%s6141_s3 + $0xcc] ss:$20 sps:$4 sm:$0xff]  }
  0x14   :  { %v3622_v38 = vcombine.high %v60_v32, %v64_v34  ;;  %v72_v41 = vld [vmem:[%s6139_s1 + $0x138] sm:$0xff]  ;;  %v87_v44 = vld [vmem:[%s6139_s1 + $0x1b0] sm:$0xff] }
  0x15   :  { %v3630_v46 = vcombine.high %v68_v39, %v72_v41  ;;  %v76_v47 = vld [vmem:[%s6139_s1 + $0x158] sm:$0xff]  ;;  %v3644_v50 = vcombine.high %v83_v43, %v87_v44  ;;  %v3629_v53 = vcombine.low %v68_v39, %v72_v41  ;;  %v4185_v10 = vld [vmem:[%s6141_s3 + $0x54] ss:$20 sps:$4 sm:$0xff]   ;;  %v4183_v13 = vld [vmem:[%s6141_s3 + $0x50] ss:$20 sps:$4 sm:$0xff]  }
  0x16   :  { %468 = vmatpush1.bf16.msra.mxu0 %v3623_v37  ;;  %509 = vmatpush1.bf16.msra.mxu1 %v3625_v51  ;;  %v3613_v37 = vcombine.low %v52_v24, %v56_v26  ;;  %v80_v49 = vld [vmem:[%s6139_s1 + $0x178] sm:$0xff]  ;;  %v91_v51 = vld [vmem:[%s6139_s1 + $0x1d0] sm:$0xff] }
  0x17   :  { %469 = vmatprep.subr.bf16.mxu0 %v3632_v40  ;;  %510 = vmatprep.subr.bf16.mxu1 %v3634_v52  ;;  %v3627_v40 = vcombine.low %v67_v28, %v71_v29  ;;  %v95_v52 = vld [vmem:[%s6139_s1 + $0x1f0] sm:$0xff]  ;;  %v84_v55 = vld [vmem:[%s6139_s1 + $0x198] sm:$0xff]  ;;  %v3637_v59 = vcombine.low %v76_v47, %v80_v49 }
  0x18   :  { %v88_v57 = vld [vmem:[%s6139_s1 + $0x1b8] sm:$0xff]  ;;  %v3651_v0 = vcombine.low %v91_v51, %v95_v52  ;;  %v4195_v20 = vld [vmem:[%s6141_s3 + $0xa0] ss:$20 sps:$4 sm:$0xff]   ;;  %v4207_v28 = vld [vmem:[%s6141_s3 + $0xf0] ss:$20 sps:$4 sm:$0xff]  }
  0x19   :  { %v92_v60 = vld [vmem:[%s6139_s1 + $0x1d8] sm:$0xff]  ;;  %v3646_v62 = vcombine.high %v84_v55, %v88_v57 }
  0x1a   :  { %470 = vmatpush1.bf16.msra.mxu0 %v3631_v45  ;;  %511 = vmatpush1.bf16.msra.mxu1 %v3633_v58  ;;  %v3621_v45 = vcombine.low %v60_v32, %v64_v34  ;;  %v3652_v58 = vcombine.high %v91_v51, %v95_v52  ;;  %v4191_v14 = vld [vmem:[%s6141_s3 + $0x7c] ss:$20 sps:$4 sm:$0xff]   ;;  %v4197_v18 = vld [vmem:[%s6141_s3 + $0xa4] ss:$20 sps:$4 sm:$0xff]   ;;  %v4243_v51 = vld [vmem:[%s6141_s3 + $0x1e0] ss:$20 sps:$4 sm:$0xff]  }
  0x1b   :  { %471 = vmatprep.subr.bf16.mxu0 %v3640_v48  ;;  %512 = vmatprep.subr.bf16.mxu1 %v3642_v61  ;;  %v96_v61 = vld [vmem:[%s6139_s1 + $0x1f8] sm:$0xff]  ;;  %v4251_v52 = vld [vmem:[%s6141_s3 + $0x20c] ss:$20 sps:$4 sm:$0xff]  }
  0x1c   :  { %v3654_v3 = vcombine.high %v92_v60, %v96_v61  ;;  %v3653_v8 = vcombine.low %v92_v60, %v96_v61  ;;  %v4188_v16 = vld [vmem:[%s6141_s3 + $0x5c] ss:$20 sps:$4 sm:$0xff]   ;;  %v4213_v32 = vld [vmem:[%s6141_s3 + $0x118] ss:$20 sps:$4 sm:$0xff]  }
  0x1d   :  { %v4201_v24 = vld [vmem:[%s6141_s3 + $0xc8] ss:$20 sps:$4 sm:$0xff]   ;;  %v4210_v34 = vld [vmem:[%s6141_s3 + $0xf8] ss:$20 sps:$4 sm:$0xff]   ;;  %v4255_v60 = vld [vmem:[%s6141_s3 + $0x230] ss:$20 sps:$4 sm:$0xff]  }
  0x1e   :  { %472 = vmatpush1.bf16.msra.mxu0 %v3639_v54  ;;  %513 = vmatpush1.bf16.msra.mxu1 %v3641_v2  ;;  %v3638_v54 = vcombine.high %v76_v47, %v80_v49  ;;  %v4171_v2 = vld [vmem:[%s6141_s3] ss:$20 sps:$4 sm:$0xff]   ;;  %v4198_v26 = vld [vmem:[%s6141_s3 + $0xa8] ss:$20 sps:$4 sm:$0xff]   ;;  %v4237_v47 = vld [vmem:[%s6141_s3 + $0x1b8] ss:$20 sps:$4 sm:$0xff]  }
  0x1f   :  { %473 = vmatprep.subr.bf16.mxu0 %v3648_v56  ;;  %514 = vmatprep.subr.bf16.mxu1 %v3650_v7  ;;  %v3643_v56 = vcombine.low %v83_v43, %v87_v44  ;;  %v4176_v7 = vld [vmem:[%s6141_s3 + $0xc] ss:$20 sps:$4 sm:$0xff]   ;;  %v4215_v29 = vld [vmem:[%s6141_s3 + $0x11c] ss:$20 sps:$4 sm:$0xff]  }
  0x20   :  { %v4225_v39 = vld [vmem:[%s6141_s3 + $0x168] ss:$20 sps:$4 sm:$0xff]   ;;  %v4231_v43 = vld [vmem:[%s6141_s3 + $0x190] ss:$20 sps:$4 sm:$0xff]   ;;  %v4234_v49 = vld [vmem:[%s6141_s3 + $0x198] ss:$20 sps:$4 sm:$0xff]  }
  0x21   :  { %v4222_v41 = vld [vmem:[%s6141_s3 + $0x148] ss:$20 sps:$4 sm:$0xff]  }
  0x22   :  { %474 = vmatpush1.bf16.msra.mxu0 %v3647_v63  ;;  %515 = vmatpush1.bf16.msra.mxu1 %v3649_v12  ;;  %v4173_v63 = vld [vmem:[%s6141_s3 + $0x4] ss:$20 sps:$4 sm:$0xff]   ;;  %v4182_v12 = vld [vmem:[%s6141_s3 + $0x34] ss:$20 sps:$4 sm:$0xff]   ;;  %v4239_v44 = vld [vmem:[%s6141_s3 + $0x1bc] ss:$20 sps:$4 sm:$0xff]  }
  0x23   :  { %541 = vmatprep.subr.bf16.mxu0 %v3596_v1  ;;  %582 = vmatprep.subr.bf16.mxu1 %v3598_v15  ;;  %v3645_v1 = vcombine.low %v84_v55, %v88_v57  ;;  %v4180_v15 = vld [vmem:[%s6141_s3 + $0x30] ss:$20 sps:$4 sm:$0xff]   ;;  %v4246_v55 = vld [vmem:[%s6141_s3 + $0x1e8] ss:$20 sps:$4 sm:$0xff]  }
  0x24   :  { %v4254_v57 = vld [vmem:[%s6141_s3 + $0x214] ss:$20 sps:$4 sm:$0xff]   ;;  %v4260_v61 = vld [vmem:[%s6141_s3 + $0x23c] ss:$20 sps:$4 sm:$0xff]  }
  0x25   :  { %492 = vmatmul.mubr.bf16.vlgmr.msra.gmra.mrb[0].mxu0 %v4860_v5  ;;  %533 = vmatmul.mubr.bf16.vlgmr.msra.gmra.mrb[0].mxu1 %v4860_v5 }
  0x26   :  { %542 = vmatpush1.bf16.msra.mxu0 %v3595_v9  ;;  %573 = vmatprep.mubr.bf16.mxu0 %v4699_v6  ;;  %v4177_v9 = vld [vmem:[%s6141_s3 + $0x28] ss:$20 sps:$4 sm:$0xff]  }
  0x27   :  { %543 = vmatprep.subr.bf16.mxu0 %v3604_v11  ;;  %583 = vmatpush1.bf16.msra.mxu1 %v3597_v22  ;;  %v4174_v11 = vld [vmem:[%s6141_s3 + $0x8] ss:$20 sps:$4 sm:$0xff]   ;;  %v4192_v22 = vld [vmem:[%s6141_s3 + $0x80] ss:$20 sps:$4 sm:$0xff]  }
  0x28   :  { %614 = vmatprep.mubr.bf16.mxu1 %v4699_v6  ;;  %584 = vmatprep.subr.bf16.mxu1 %v3606_v23  ;;  %v79_v6 = vld [vmem:[%s6139_s1 + $0x170] sm:$0xff]  ;;  %v4200_v23 = vld [vmem:[%s6141_s3 + $0xac] ss:$20 sps:$4 sm:$0xff]  }
  0x29   :  { %v3636_v42 = vcombine.high %v75_v36, %v79_v6  ;;  %v3635_v48 = vcombine.low %v75_v36, %v79_v6  ;;  %v4219_v36 = vld [vmem:[%s6141_s3 + $0x140] ss:$20 sps:$4 sm:$0xff]  }
  0x2a   :  { %544 = vmatpush1.bf16.msra.mxu0 %v3603_v17  ;;  %v4189_v17 = vld [vmem:[%s6141_s3 + $0x78] ss:$20 sps:$4 sm:$0xff]  }
  0x2b   :  { %545 = vmatprep.subr.bf16.mxu0 %v3612_v19  ;;  %585 = vmatpush1.bf16.msra.mxu1 %v3605_v30  ;;  %v4186_v19 = vld [vmem:[%s6141_s3 + $0x58] ss:$20 sps:$4 sm:$0xff]   ;;  %v4204_v30 = vld [vmem:[%s6141_s3 + $0xd0] ss:$20 sps:$4 sm:$0xff]  }
  0x2c   :  { %586 = vmatprep.subr.bf16.mxu1 %v3614_v31  ;;  %v4212_v31 = vld [vmem:[%s6141_s3 + $0xfc] ss:$20 sps:$4 sm:$0xff]   ;;  %v4227_v6 = vld [vmem:[%s6141_s3 + $0x16c] ss:$20 sps:$4 sm:$0xff]  }
  0x2e   :  { %546 = vmatpush1.bf16.msra.mxu0 %v3611_v25  ;;  %v4209_v25 = vld [vmem:[%s6141_s3 + $0xf4] ss:$20 sps:$4 sm:$0xff]  }
  0x2f   :  { %547 = vmatprep.subr.bf16.mxu0 %v3620_v27  ;;  %587 = vmatpush1.bf16.msra.mxu1 %v3613_v37  ;;  %v4206_v27 = vld [vmem:[%s6141_s3 + $0xd4] ss:$20 sps:$4 sm:$0xff]  }
  0x30   :  { %588 = vmatprep.subr.bf16.mxu1 %v3622_v38  ;;  %v4216_v37 = vld [vmem:[%s6141_s3 + $0x120] ss:$20 sps:$4 sm:$0xff]  }
  0x31   :  { %v4224_v38 = vld [vmem:[%s6141_s3 + $0x14c] ss:$20 sps:$4 sm:$0xff]  }
  0x32   :  { %548 = vmatpush1.bf16.msra.mxu0 %v3619_v33  ;;  %v4221_v33 = vld [vmem:[%s6141_s3 + $0x144] ss:$20 sps:$4 sm:$0xff]  }
  0x33   :  { %549 = vmatprep.subr.bf16.mxu0 %v3628_v35  ;;  %589 = vmatpush1.bf16.msra.mxu1 %v3621_v45  ;;  %v4218_v35 = vld [vmem:[%s6141_s3 + $0x124] ss:$20 sps:$4 sm:$0xff]  }
  0x34   :  { %590 = vmatprep.subr.bf16.mxu1 %v3630_v46  ;;  %v4228_v45 = vld [vmem:[%s6141_s3 + $0x170] ss:$20 sps:$4 sm:$0xff]  }
  0x35   :  { %v4236_v46 = vld [vmem:[%s6141_s3 + $0x19c] ss:$20 sps:$4 sm:$0xff]  }
  0x36   :  { %550 = vmatpush1.bf16.msra.mxu0 %v3627_v40  ;;  %v4233_v40 = vld [vmem:[%s6141_s3 + $0x194] ss:$20 sps:$4 sm:$0xff]  }
  0x37   :  { %551 = vmatprep.subr.bf16.mxu0 %v3636_v42  ;;  %591 = vmatpush1.bf16.msra.mxu1 %v3629_v53  ;;  %v4230_v42 = vld [vmem:[%s6141_s3 + $0x174] ss:$20 sps:$4 sm:$0xff]  }
  0x38   :  { %592 = vmatprep.subr.bf16.mxu1 %v3638_v54  ;;  %v4240_v53 = vld [vmem:[%s6141_s3 + $0x1c0] ss:$20 sps:$4 sm:$0xff]  }
  0x39   :  { %v4248_v54 = vld [vmem:[%s6141_s3 + $0x1ec] ss:$20 sps:$4 sm:$0xff]  }
  0x3a   :  { %552 = vmatpush1.bf16.msra.mxu0 %v3635_v48  ;;  %v4245_v48 = vld [vmem:[%s6141_s3 + $0x1e4] ss:$20 sps:$4 sm:$0xff]  }
  0x3b   :  { %553 = vmatprep.subr.bf16.mxu0 %v3644_v50  ;;  %593 = vmatpush1.bf16.msra.mxu1 %v3637_v59  ;;  %v4242_v50 = vld [vmem:[%s6141_s3 + $0x1c4] ss:$20 sps:$4 sm:$0xff]  }
  0x3c   :  { %594 = vmatprep.subr.bf16.mxu1 %v3646_v62  ;;  %v4252_v59 = vld [vmem:[%s6141_s3 + $0x210] ss:$20 sps:$4 sm:$0xff]  }
  0x3d   :  { %v4263_v62 = vld [vmem:[%s6141_s3 + $0x25c] ss:$20 sps:$4 sm:$0xff]  }
  0x3e   :  { %554 = vmatpush1.bf16.msra.mxu0 %v3643_v56  ;;  %v4249_v56 = vld [vmem:[%s6141_s3 + $0x208] ss:$20 sps:$4 sm:$0xff]  }
  0x3f   :  { %555 = vmatprep.subr.bf16.mxu0 %v3652_v58  ;;  %595 = vmatpush1.bf16.msra.mxu1 %v3645_v1  ;;  %v4257_v58 = vld [vmem:[%s6141_s3 + $0x234] ss:$20 sps:$4 sm:$0xff]   ;;  %v4266_v1 = vld [vmem:[%s6141_s3 + $0x264] ss:$20 sps:$4 sm:$0xff]  }
  0x40   :  { %596 = vmatprep.subr.bf16.mxu1 %v3654_v3  ;;  %v4264_v3 = vld [vmem:[%s6141_s3 + $0x260] ss:$20 sps:$4 sm:$0xff]  }
  0x42   :  { %556 = vmatpush1.bf16.msra.mxu0 %v3651_v0  ;;  %v4261_v0 = vld [vmem:[%s6141_s3 + $0x258] ss:$20 sps:$4 sm:$0xff]  }
  0x43   :  { %2714 = vmatprep.subr.bf16.mxu0 %v4173_v63  ;;  %597 = vmatpush1.bf16.msra.mxu1 %v3653_v8  ;;  %v4258_v63 = vld [vmem:[%s6141_s3 + $0x238] ss:$20 sps:$4 sm:$0xff]  }
  0x44   :  { %2878 = vmatprep.subr.bf16.mxu1 %v4176_v7 }
  0x45   :  { %574 = vmatmul.mubr.bf16.vlgmr.msra.gmra.mrb[4].mxu0 %v4860_v5 }
  0x46   :  { %2715 = vmatpush1.bf16.msra.mxu0 %v4171_v2  ;;  %615 = vmatmul.mubr.bf16.vlgmr.msra.gmra.mrb[4].mxu1 %v4860_v5  ;;  %v4194_v5 = vld [vmem:[%s6141_s3 + $0x84] ss:$20 sps:$4 sm:$0xff]  }
  0x47   :  { %2716 = vmatprep.subr.bf16.mxu0 %v4179_v4  ;;  %2879 = vmatpush1.bf16.msra.mxu1 %v4174_v11  ;;  %v4269_v2 = vld [vmem:[%s6141_s3 + $0x284] ss:$20 sps:$4 sm:$0xff]   ;;  %v4272_v4 = vld [vmem:[%s6141_s3 + $0x28c] ss:$20 sps:$4 sm:$0xff]  }
  0x48   :  { %2880 = vmatprep.subr.bf16.mxu1 %v4182_v12 }
  0x4a   :  { %2717 = vmatpush1.bf16.msra.mxu0 %v4177_v9 }
  0x4b   :  { %2718 = vmatprep.subr.bf16.mxu0 %v4185_v10  ;;  %2881 = vmatpush1.bf16.msra.mxu1 %v4180_v15 }
  0x4c   :  { %2882 = vmatprep.subr.bf16.mxu1 %v4188_v16 }
  0x4e   :  { %2719 = vmatpush1.bf16.msra.mxu0 %v4183_v13 }
  0x4f   :  { %2720 = vmatprep.subr.bf16.mxu0 %v4191_v14  ;;  %2883 = vmatpush1.bf16.msra.mxu1 %v4186_v19 }
  0x50   :  { %2884 = vmatprep.subr.bf16.mxu1 %v4194_v5 }
  0x52   :  { %2721 = vmatpush1.bf16.msra.mxu0 %v4189_v17 }
  0x53   :  { %2722 = vmatprep.subr.bf16.mxu0 %v4197_v18  ;;  %2885 = vmatpush1.bf16.msra.mxu1 %v4192_v22 }
  0x54   :  { %2886 = vmatprep.subr.bf16.mxu1 %v4200_v23 }
  0x56   :  { %2723 = vmatpush1.bf16.msra.mxu0 %v4195_v20 }
  0x57   :  { %2724 = vmatprep.subr.bf16.mxu0 %v4203_v21  ;;  %2887 = vmatpush1.bf16.msra.mxu1 %v4198_v26 }
  0x58   :  { %2888 = vmatprep.subr.bf16.mxu1 %v4206_v27 }
  0x5a   :  { %2725 = vmatpush1.bf16.msra.mxu0 %v4201_v24 }
  0x5b   :  { %2726 = vmatprep.subr.bf16.mxu0 %v4209_v25  ;;  %2889 = vmatpush1.bf16.msra.mxu1 %v4204_v30 }
  0x5c   :  { %2890 = vmatprep.subr.bf16.mxu1 %v4212_v31 }
  0x5e   :  { %2727 = vmatpush1.bf16.msra.mxu0 %v4207_v28 }
  0x5f   :  { %2728 = vmatprep.subr.bf16.mxu0 %v4215_v29  ;;  %2891 = vmatpush1.bf16.msra.mxu1 %v4210_v34 }
  0x60   :  { %2892 = vmatprep.subr.bf16.mxu1 %v4218_v35 }
  0x62   :  { %2729 = vmatpush1.bf16.msra.mxu0 %v4213_v32 }
  0x63   :  { %2730 = vmatprep.subr.bf16.mxu0 %v4221_v33  ;;  %2893 = vmatpush1.bf16.msra.mxu1 %v4216_v37 }
  0x64   :  { %2894 = vmatprep.subr.bf16.mxu1 %v4224_v38 }
  0x66   :  { %2731 = vmatpush1.bf16.msra.mxu0 %v4219_v36 }
  0x67   :  { %2732 = vmatprep.subr.bf16.mxu0 %v4227_v6  ;;  %2895 = vmatpush1.bf16.msra.mxu1 %v4222_v41 }
  0x68   :  { %2896 = vmatprep.subr.bf16.mxu1 %v4230_v42 }
  0x6a   :  { %2733 = vmatpush1.bf16.msra.mxu0 %v4225_v39 }
  0x6b   :  { %2734 = vmatprep.subr.bf16.mxu0 %v4233_v40  ;;  %2897 = vmatpush1.bf16.msra.mxu1 %v4228_v45 }
  0x6c   :  { %2898 = vmatprep.subr.bf16.mxu1 %v4236_v46 }
  0x6e   :  { %2735 = vmatpush1.bf16.msra.mxu0 %v4231_v43 }
  0x6f   :  { %2736 = vmatprep.subr.bf16.mxu0 %v4239_v44  ;;  %2899 = vmatpush1.bf16.msra.mxu1 %v4234_v49 }
  0x70   :  { %2900 = vmatprep.subr.bf16.mxu1 %v4242_v50 }
  0x72   :  { %2737 = vmatpush1.bf16.msra.mxu0 %v4237_v47 }
  0x73   :  { %2738 = vmatprep.subr.bf16.mxu0 %v4245_v48  ;;  %2901 = vmatpush1.bf16.msra.mxu1 %v4240_v53 }
  0x74   :  { %2902 = vmatprep.subr.bf16.mxu1 %v4248_v54 }
  0x76   :  { %2739 = vmatpush1.bf16.msra.mxu0 %v4243_v51 }
  0x77   :  { %2740 = vmatprep.subr.bf16.mxu0 %v4251_v52  ;;  %2903 = vmatpush1.bf16.msra.mxu1 %v4246_v55 }
  0x78   :  { %2904 = vmatprep.subr.bf16.mxu1 %v4254_v57 }
  0x7a   :  { %2741 = vmatpush1.bf16.msra.mxu0 %v4249_v56 }
  0x7b   :  { %2742 = vmatprep.subr.bf16.mxu0 %v4257_v58  ;;  %2905 = vmatpush1.bf16.msra.mxu1 %v4252_v59 }
  0x7c   :  { %2906 = vmatprep.subr.bf16.mxu1 %v4260_v61 }
  0x7e   :  { %2743 = vmatpush1.bf16.msra.mxu0 %v4255_v60 }
  0x7f   :  { %2744 = vmatprep.subr.bf16.mxu0 %v4263_v62  ;;  %2907 = vmatpush1.bf16.msra.mxu1 %v4258_v63 }
  0x80   :  { %2908 = vmatprep.subr.bf16.mxu1 %v4266_v1 }
  0x82   :  { %2745 = vmatpush1.bf16.msra.mxu0 %v4261_v0 }
  0x83   :  { %2755 = vmatprep.subr.bf16.mxu0 %v4269_v2  ;;  %2909 = vmatpush1.bf16.msra.mxu1 %v4264_v3 }
  0x84   :  { %2919 = vmatprep.subr.bf16.mxu1 %v4272_v4 }
  0x85   :  { %15 = vsyncpa [#allocation5], 0  ;;  %v99_v7 = vlaneseq  ;;  %v5157_v10 = vld [vmem:[%s6140_s2] sm:$0xff]  ;;  %v4270_v25 = vld [vmem:[%s6141_s3 + $0x288] ss:$20 sps:$4 sm:$0xff]  }
  0x86   :  { %v4267_v24 = vld [vmem:[%s6141_s3 + $0x280] ss:$20 sps:$4 sm:$0xff]   ;;  %v4273_v34 = vld [vmem:[%s6141_s3 + $0x2a8] ss:$20 sps:$4 sm:$0xff]   ;;  %v4276_v35 = vld [vmem:[%s6141_s3 + $0x2b0] ss:$20 sps:$4 sm:$0xff]  }
  0x87   :  { %v5151_v8 = vshrl.u32 %v99_v7, 7  ;;  %v4275_v28 = vld [vmem:[%s6141_s3 + $0x2ac] ss:$20 sps:$4 sm:$0xff]   ;;  %v4278_v29 = vld [vmem:[%s6141_s3 + $0x2b4] ss:$20 sps:$4 sm:$0xff]  }
  0x88   :  { %v4281_v6 = vld [vmem:[%s6141_s3 + $0x2d4] ss:$20 sps:$4 sm:$0xff]   ;;  %v4284_v37 = vld [vmem:[%s6141_s3 + $0x2dc] ss:$20 sps:$4 sm:$0xff]   ;;  %v4282_v40 = vld [vmem:[%s6141_s3 + $0x2d8] ss:$20 sps:$4 sm:$0xff]  }
  0x89   :  { %v101_v9 = vsub.s32 0, %v5151_v8  ;;  %v105_v11 = vsub.s32 1, %v5151_v8  ;;  %v113_v15 = vsub.s32 3, %v5151_v8  ;;  %v4279_v39 = vld [vmem:[%s6141_s3 + $0x2d0] ss:$20 sps:$4 sm:$0xff]  }
  0x8a   :  { %v4287_v41 = vld [vmem:[%s6141_s3 + $0x2fc] ss:$20 sps:$4 sm:$0xff]   ;;  %v4290_v42 = vld [vmem:[%s6141_s3 + $0x304] ss:$20 sps:$4 sm:$0xff]   ;;  %v4288_v44 = vld [vmem:[%s6141_s3 + $0x300] ss:$20 sps:$4 sm:$0xff]  }
  0x8b   :  { %v102_v12 = vrot.slane %v5157_v10, %v101_v9  ;;  %v106_v13 = vrot.slane %v5157_v10, %v105_v11  ;;  %v114_v22 = vrot.slane %v5157_v10, %v113_v15  ;;  %v4285_v43 = vld [vmem:[%s6141_s3 + $0x2f8] ss:$20 sps:$4 sm:$0xff]   ;;  %v4291_v47 = vld [vmem:[%s6141_s3 + $0x320] ss:$20 sps:$4 sm:$0xff]   ;;  %v4294_v48 = vld [vmem:[%s6141_s3 + $0x328] ss:$20 sps:$4 sm:$0xff]  }
  0x8c   :  { %v4293_v45 = vld [vmem:[%s6141_s3 + $0x324] ss:$20 sps:$4 sm:$0xff]   ;;  %v4296_v46 = vld [vmem:[%s6141_s3 + $0x32c] ss:$20 sps:$4 sm:$0xff]   ;;  %v4302_v50 = vld [vmem:[%s6141_s3 + $0x354] ss:$20 sps:$4 sm:$0xff]  }
  0x8d   :  { %v4299_v49 = vld [vmem:[%s6141_s3 + $0x34c] ss:$20 sps:$4 sm:$0xff]   ;;  %v4297_v51 = vld [vmem:[%s6141_s3 + $0x348] ss:$20 sps:$4 sm:$0xff]   ;;  %v4300_v52 = vld [vmem:[%s6141_s3 + $0x350] ss:$20 sps:$4 sm:$0xff]  }
  0x8e   :  { %v4305_v53 = vld [vmem:[%s6141_s3 + $0x374] ss:$20 sps:$4 sm:$0xff]   ;;  %v4308_v54 = vld [vmem:[%s6141_s3 + $0x37c] ss:$20 sps:$4 sm:$0xff]   ;;  %v4306_v56 = vld [vmem:[%s6141_s3 + $0x378] ss:$20 sps:$4 sm:$0xff]  }
  0x8f   :  { %v4303_v55 = vld [vmem:[%s6141_s3 + $0x370] ss:$20 sps:$4 sm:$0xff]   ;;  %v4309_v61 = vld [vmem:[%s6141_s3 + $0x398] ss:$20 sps:$4 sm:$0xff]   ;;  %v4312_v62 = vld [vmem:[%s6141_s3 + $0x3a0] ss:$20 sps:$4 sm:$0xff]  }
  0x90   :  { %v4311_v57 = vld [vmem:[%s6141_s3 + $0x39c] ss:$20 sps:$4 sm:$0xff]   ;;  %v4314_v58 = vld [vmem:[%s6141_s3 + $0x3a4] ss:$20 sps:$4 sm:$0xff]   ;;  %v4320_v1 = vld [vmem:[%s6141_s3 + $0x3cc] ss:$20 sps:$4 sm:$0xff]  }
  0x91   :  { %v4317_v0 = vld [vmem:[%s6141_s3 + $0x3c4] ss:$20 sps:$4 sm:$0xff]   ;;  %v4315_v3 = vld [vmem:[%s6141_s3 + $0x3c0] ss:$20 sps:$4 sm:$0xff]   ;;  %v4318_v4 = vld [vmem:[%s6141_s3 + $0x3c8] ss:$20 sps:$4 sm:$0xff]  }
  0xf8   :  { %v493_v14 = vpop.f32.mrb[0].mxu0  ;;  %v5178_v26 = vpop.f32.mrb[0].mxu1 }
  0xf9   :  { %v494_v16 = vadd.f32 %v493_v14, %v102_v12  ;;  %v495_v17 = vpop.f32.mrb[1].mxu0  ;;  %v536_v30 = vpop.f32.mrb[1].mxu1  ;;  %v4326_v14 = vld [vmem:[%s6141_s3 + $0x3f4] ss:$20 sps:$4 sm:$0xff]  }
  0xfa   :  { %v496_v18 = vadd.f32 %v495_v17, %v106_v13  ;;  %v497_v19 = vpop.f32.mrb[2].mxu0  ;;  %v537_v31 = vadd.f32 %v536_v30, %v114_v22  ;;  %v538_v32 = vpop.f32.mrb[2].mxu1  ;;  %v4323_v13 = vld [vmem:[%s6141_s3 + $0x3ec] ss:$20 sps:$4 sm:$0xff]   ;;  %v4327_v22 = vld [vmem:[%s6141_s3 + $0x410] ss:$20 sps:$4 sm:$0xff]  }
  0xfb   :  { %v623_v5 = vmax.f32 %v494_v16, 0.0  ;;  %v498_v20 = vpop.f32.mrb[3].mxu0  ;;  %v539_v33 = vpop.f32.mrb[3].mxu1  ;;  %v4321_v19 = vld [vmem:[%s6141_s3 + $0x3e8] ss:$20 sps:$4 sm:$0xff]  }
  0xfc   :  { %v624_v21 = vmax.f32 %v496_v18, 0.0  ;;  %v626_v36 = vmax.f32 %v537_v31, 0.0  ;;  %v4329_v20 = vld [vmem:[%s6141_s3 + $0x414] ss:$20 sps:$4 sm:$0xff]   ;;  %v4341_v31 = vld [vmem:[%s6141_s3 + $0x464] ss:$20 sps:$4 sm:$0xff]  }
  0xfd   :  { %v5180_v27 = vpack.c.bf16 %v623_v5, %v623_v5  ;;  %v4324_v5 = vld [vmem:[%s6141_s3 + $0x3f0] ss:$20 sps:$4 sm:$0xff]   ;;  %v4336_v30 = vld [vmem:[%s6141_s3 + $0x440] ss:$20 sps:$4 sm:$0xff]   ;;  %v109_v33 = vsub.s32 2, %v5151_v8 }
  0xfe   :  { %v5170_v23 = vpack.c.bf16 %v624_v21, %v624_v21  ;;  %v5204_v38 = vpack.c.bf16 %v626_v36, %v626_v36  ;;  %v4332_v21 = vld [vmem:[%s6141_s3 + $0x41c] ss:$20 sps:$4 sm:$0xff]   ;;  %v4344_v32 = vld [vmem:[%s6141_s3 + $0x46c] ss:$20 sps:$4 sm:$0xff]  }
  0xff   :  { %v4347_v36 = vld [vmem:[%s6141_s3 + $0x48c] ss:$20 sps:$4 sm:$0xff]  }
 0x100   :  { %2746 = vmatprep.mubr.bf16.mxu0 %v5170_v23  ;;  %2910 = vmatprep.mubr.bf16.mxu1 %v5170_v23 }
 0x101   :  { %2747 = vmatmul.mubr.bf16.vlgmr.msra.gmra.mrb[8].mxu0 %v5180_v27  ;;  %2911 = vmatmul.mubr.bf16.vlgmr.msra.gmra.mrb[8].mxu1 %v5180_v27 }
 0x102   :  { %2756 = vmatpush1.bf16.msra.mxu0 %v4267_v24  ;;  %2920 = vmatpush1.bf16.msra.mxu1 %v4270_v25  ;;  %v4330_v24 = vld [vmem:[%s6141_s3 + $0x418] ss:$20 sps:$4 sm:$0xff]   ;;  %v4335_v25 = vld [vmem:[%s6141_s3 + $0x43c] ss:$20 sps:$4 sm:$0xff]  }
 0x103   :  { %2757 = vmatprep.subr.bf16.mxu0 %v4275_v28  ;;  %2921 = vmatprep.subr.bf16.mxu1 %v4278_v29  ;;  %v4338_v28 = vld [vmem:[%s6141_s3 + $0x444] ss:$20 sps:$4 sm:$0xff]  }
 0x104   :  { %2787 = vmatprep.mubr.bf16.mxu0 %v5204_v38  ;;  %2951 = vmatprep.mubr.bf16.mxu1 %v5204_v38  ;;  %v4333_v29 = vld [vmem:[%s6141_s3 + $0x438] ss:$20 sps:$4 sm:$0xff]  }
 0x106   :  { %2758 = vmatpush1.bf16.msra.mxu0 %v4273_v34  ;;  %2922 = vmatpush1.bf16.msra.mxu1 %v4276_v35  ;;  %v4339_v34 = vld [vmem:[%s6141_s3 + $0x460] ss:$20 sps:$4 sm:$0xff]   ;;  %v4342_v35 = vld [vmem:[%s6141_s3 + $0x468] ss:$20 sps:$4 sm:$0xff]  }
 0x107   :  { %2759 = vmatprep.subr.bf16.mxu0 %v4281_v6  ;;  %2923 = vmatprep.subr.bf16.mxu1 %v4284_v37  ;;  %v4350_v6 = vld [vmem:[%s6141_s3 + $0x494] ss:$20 sps:$4 sm:$0xff]   ;;  %v121_v37 = vsub.s32 5, %v5151_v8 }
 0x10a   :  { %2760 = vmatpush1.bf16.msra.mxu0 %v4279_v39  ;;  %2924 = vmatpush1.bf16.msra.mxu1 %v4282_v40  ;;  %v110_v39 = vrot.slane %v5157_v10, %v109_v33  ;;  %v4345_v40 = vld [vmem:[%s6141_s3 + $0x488] ss:$20 sps:$4 sm:$0xff]  }
 0x10b   :  { %2761 = vmatprep.subr.bf16.mxu0 %v4287_v41  ;;  %2925 = vmatprep.subr.bf16.mxu1 %v4290_v42  ;;  %v4348_v41 = vld [vmem:[%s6141_s3 + $0x490] ss:$20 sps:$4 sm:$0xff]   ;;  %v4353_v42 = vld [vmem:[%s6141_s3 + $0x4b4] ss:$20 sps:$4 sm:$0xff]  }
 0x10e   :  { %2762 = vmatpush1.bf16.msra.mxu0 %v4285_v43  ;;  %2926 = vmatpush1.bf16.msra.mxu1 %v4288_v44  ;;  %v4356_v43 = vld [vmem:[%s6141_s3 + $0x4bc] ss:$20 sps:$4 sm:$0xff]   ;;  %v122_v44 = vrot.slane %v5157_v10, %v121_v37  ;;  %v4413_v37 = vld [vmem:[%s6141_s3 + $0x644] ss:$20 sps:$4 sm:$0xff]  }
 0x10f   :  { %2763 = vmatprep.subr.bf16.mxu0 %v4293_v45  ;;  %2927 = vmatprep.subr.bf16.mxu1 %v4296_v46  ;;  %v535_v45 = vadd.f32 %v5178_v26, %v110_v39  ;;  %v4351_v46 = vld [vmem:[%s6141_s3 + $0x4b0] ss:$20 sps:$4 sm:$0xff]   ;;  %v4416_v39 = vld [vmem:[%s6141_s3 + $0x64c] ss:$20 sps:$4 sm:$0xff]  }
 0x110   :  { %v4362_v26 = vld [vmem:[%s6141_s3 + $0x4e4] ss:$20 sps:$4 sm:$0xff]  }
 0x112   :  { %2764 = vmatpush1.bf16.msra.mxu0 %v4291_v47  ;;  %2928 = vmatpush1.bf16.msra.mxu1 %v4294_v48  ;;  %v4354_v47 = vld [vmem:[%s6141_s3 + $0x4b8] ss:$20 sps:$4 sm:$0xff]   ;;  %v4359_v48 = vld [vmem:[%s6141_s3 + $0x4dc] ss:$20 sps:$4 sm:$0xff]  }
 0x113   :  { %2765 = vmatprep.subr.bf16.mxu0 %v4299_v49  ;;  %2929 = vmatprep.subr.bf16.mxu1 %v4302_v50  ;;  %v625_v50 = vmax.f32 %v535_v45, 0.0  ;;  %v4420_v45 = vld [vmem:[%s6141_s3 + $0x670] ss:$20 sps:$4 sm:$0xff]  }
 0x116   :  { %2766 = vmatpush1.bf16.msra.mxu0 %v4297_v51  ;;  %2930 = vmatpush1.bf16.msra.mxu1 %v4300_v52  ;;  %v4357_v51 = vld [vmem:[%s6141_s3 + $0x4d8] ss:$20 sps:$4 sm:$0xff]   ;;  %v4360_v52 = vld [vmem:[%s6141_s3 + $0x4e0] ss:$20 sps:$4 sm:$0xff]  }
 0x117   :  { %2767 = vmatprep.subr.bf16.mxu0 %v4305_v53  ;;  %2931 = vmatprep.subr.bf16.mxu1 %v4308_v54  ;;  %v4365_v53 = vld [vmem:[%s6141_s3 + $0x504] ss:$20 sps:$4 sm:$0xff]   ;;  %v4368_v54 = vld [vmem:[%s6141_s3 + $0x50c] ss:$20 sps:$4 sm:$0xff]  }
 0x118   :  { %v5268_v59 = vpop.f32.mrb[4].mxu0 }
 0x119   :  { %v5270_v60 = vpop.f32.mrb[5].mxu0  ;;  %v5290_v12 = vpop.f32.mrb[4].mxu1 }
 0x11a   :  { %2768 = vmatpush1.bf16.msra.mxu0 %v4303_v55  ;;  %2932 = vmatpush1.bf16.msra.mxu1 %v4306_v56  ;;  %v579_v63 = vpop.f32.mrb[6].mxu0  ;;  %v5298_v16 = vpop.f32.mrb[5].mxu1  ;;  %v578_v49 = vadd.f32 %v5270_v60, %v122_v44  ;;  %v5392_v56 = vpack.c.bf16 %v625_v50, %v625_v50  ;;  %v4371_v60 = vld [vmem:[%s6141_s3 + $0x52c] ss:$20 sps:$4 sm:$0xff]   ;;  %v4417_v44 = vld [vmem:[%s6141_s3 + $0x668] ss:$20 sps:$4 sm:$0xff]  }
 0x11b   :  { %2769 = vmatprep.subr.bf16.mxu0 %v4311_v57  ;;  %2933 = vmatprep.subr.bf16.mxu1 %v4314_v58  ;;  %v580_v2 = vpop.f32.mrb[7].mxu0  ;;  %v620_v17 = vpop.f32.mrb[6].mxu1  ;;  %v4363_v57 = vld [vmem:[%s6141_s3 + $0x500] ss:$20 sps:$4 sm:$0xff]   ;;  %v4366_v58 = vld [vmem:[%s6141_s3 + $0x508] ss:$20 sps:$4 sm:$0xff]  }
 0x11c   :  { %v621_v18 = vpop.f32.mrb[7].mxu1  ;;  %v628_v55 = vmax.f32 %v578_v49, 0.0  ;;  %v4369_v63 = vld [vmem:[%s6141_s3 + $0x528] ss:$20 sps:$4 sm:$0xff]   ;;  %v4381_v17 = vld [vmem:[%s6141_s3 + $0x578] ss:$20 sps:$4 sm:$0xff]  }
 0x11d   :  { %v4380_v2 = vld [vmem:[%s6141_s3 + $0x55c] ss:$20 sps:$4 sm:$0xff]   ;;  %v4384_v18 = vld [vmem:[%s6141_s3 + $0x580] ss:$20 sps:$4 sm:$0xff]   ;;  %v4434_v50 = vld [vmem:[%s6141_s3 + $0x6c4] ss:$20 sps:$4 sm:$0xff]  }
 0x11e   :  { %2770 = vmatpush1.bf16.msra.mxu0 %v4309_v61  ;;  %2934 = vmatpush1.bf16.msra.mxu1 %v4312_v62  ;;  %v4374_v61 = vld [vmem:[%s6141_s3 + $0x534] ss:$20 sps:$4 sm:$0xff]   ;;  %v5406_v62 = vpack.c.bf16 %v628_v55, %v628_v55  ;;  %v4431_v49 = vld [vmem:[%s6141_s3 + $0x6bc] ss:$20 sps:$4 sm:$0xff]   ;;  %v117_v55 = vsub.s32 4, %v5151_v8 }
 0x11f   :  { %2771 = vmatprep.subr.bf16.mxu0 %v4317_v0  ;;  %2935 = vmatprep.subr.bf16.mxu1 %v4320_v1  ;;  %v4372_v0 = vld [vmem:[%s6141_s3 + $0x530] ss:$20 sps:$4 sm:$0xff]   ;;  %v4377_v1 = vld [vmem:[%s6141_s3 + $0x554] ss:$20 sps:$4 sm:$0xff]  }
 0x122   :  { %2772 = vmatpush1.bf16.msra.mxu0 %v4315_v3  ;;  %2936 = vmatpush1.bf16.msra.mxu1 %v4318_v4  ;;  %v4375_v3 = vld [vmem:[%s6141_s3 + $0x550] ss:$20 sps:$4 sm:$0xff]   ;;  %v4378_v4 = vld [vmem:[%s6141_s3 + $0x558] ss:$20 sps:$4 sm:$0xff]  }
 0x123   :  { %2773 = vmatprep.subr.bf16.mxu0 %v4323_v13  ;;  %2937 = vmatprep.subr.bf16.mxu1 %v4326_v14  ;;  %v4383_v13 = vld [vmem:[%s6141_s3 + $0x57c] ss:$20 sps:$4 sm:$0xff]   ;;  %v4386_v14 = vld [vmem:[%s6141_s3 + $0x584] ss:$20 sps:$4 sm:$0xff]  }
 0x126   :  { %2774 = vmatpush1.bf16.msra.mxu0 %v4321_v19  ;;  %2938 = vmatpush1.bf16.msra.mxu1 %v4324_v5  ;;  %v4389_v19 = vld [vmem:[%s6141_s3 + $0x5a4] ss:$20 sps:$4 sm:$0xff]   ;;  %v4392_v5 = vld [vmem:[%s6141_s3 + $0x5ac] ss:$20 sps:$4 sm:$0xff]  }
 0x127   :  { %2775 = vmatprep.subr.bf16.mxu0 %v4329_v20  ;;  %2939 = vmatprep.subr.bf16.mxu1 %v4332_v21  ;;  %v4387_v20 = vld [vmem:[%s6141_s3 + $0x5a0] ss:$20 sps:$4 sm:$0xff]   ;;  %v4390_v21 = vld [vmem:[%s6141_s3 + $0x5a8] ss:$20 sps:$4 sm:$0xff]  }
 0x12a   :  { %2776 = vmatpush1.bf16.msra.mxu0 %v4327_v22  ;;  %2940 = vmatpush1.bf16.msra.mxu1 %v4330_v24  ;;  %v4395_v22 = vld [vmem:[%s6141_s3 + $0x5cc] ss:$20 sps:$4 sm:$0xff]   ;;  %v4398_v24 = vld [vmem:[%s6141_s3 + $0x5d4] ss:$20 sps:$4 sm:$0xff]  }
 0x12b   :  { %2777 = vmatprep.subr.bf16.mxu0 %v4335_v25  ;;  %2941 = vmatprep.subr.bf16.mxu1 %v4338_v28  ;;  %v4393_v25 = vld [vmem:[%s6141_s3 + $0x5c8] ss:$20 sps:$4 sm:$0xff]   ;;  %v4396_v28 = vld [vmem:[%s6141_s3 + $0x5d0] ss:$20 sps:$4 sm:$0xff]  }
 0x12e   :  { %2778 = vmatpush1.bf16.msra.mxu0 %v4333_v29  ;;  %2942 = vmatpush1.bf16.msra.mxu1 %v4336_v30  ;;  %v4401_v29 = vld [vmem:[%s6141_s3 + $0x5f4] ss:$20 sps:$4 sm:$0xff]   ;;  %v4404_v30 = vld [vmem:[%s6141_s3 + $0x5fc] ss:$20 sps:$4 sm:$0xff]  }
 0x12f   :  { %2779 = vmatprep.subr.bf16.mxu0 %v4341_v31  ;;  %2943 = vmatprep.subr.bf16.mxu1 %v4344_v32  ;;  %v4399_v31 = vld [vmem:[%s6141_s3 + $0x5f0] ss:$20 sps:$4 sm:$0xff]   ;;  %v4402_v32 = vld [vmem:[%s6141_s3 + $0x5f8] ss:$20 sps:$4 sm:$0xff]  }
 0x132   :  { %2780 = vmatpush1.bf16.msra.mxu0 %v4339_v34  ;;  %2944 = vmatpush1.bf16.msra.mxu1 %v4342_v35  ;;  %v4407_v34 = vld [vmem:[%s6141_s3 + $0x61c] ss:$20 sps:$4 sm:$0xff]   ;;  %v4410_v35 = vld [vmem:[%s6141_s3 + $0x624] ss:$20 sps:$4 sm:$0xff]  }
 0x133   :  { %2781 = vmatprep.subr.bf16.mxu0 %v4347_v36  ;;  %2945 = vmatprep.subr.bf16.mxu1 %v4350_v6  ;;  %v4405_v36 = vld [vmem:[%s6141_s3 + $0x618] ss:$20 sps:$4 sm:$0xff]   ;;  %v4408_v6 = vld [vmem:[%s6141_s3 + $0x620] ss:$20 sps:$4 sm:$0xff]  }
 0x136   :  { %2782 = vmatpush1.bf16.msra.mxu0 %v4345_v40  ;;  %2946 = vmatpush1.bf16.msra.mxu1 %v4348_v41  ;;  %v4411_v40 = vld [vmem:[%s6141_s3 + $0x640] ss:$20 sps:$4 sm:$0xff]   ;;  %v4414_v41 = vld [vmem:[%s6141_s3 + $0x648] ss:$20 sps:$4 sm:$0xff]  }
 0x137   :  { %2783 = vmatprep.subr.bf16.mxu0 %v4353_v42  ;;  %2947 = vmatprep.subr.bf16.mxu1 %v4356_v43  ;;  %v4419_v42 = vld [vmem:[%s6141_s3 + $0x66c] ss:$20 sps:$4 sm:$0xff]   ;;  %v4422_v43 = vld [vmem:[%s6141_s3 + $0x674] ss:$20 sps:$4 sm:$0xff]  }
 0x13a   :  { %2784 = vmatpush1.bf16.msra.mxu0 %v4351_v46  ;;  %2948 = vmatpush1.bf16.msra.mxu1 %v4354_v47  ;;  %v4425_v46 = vld [vmem:[%s6141_s3 + $0x694] ss:$20 sps:$4 sm:$0xff]   ;;  %v4428_v47 = vld [vmem:[%s6141_s3 + $0x69c] ss:$20 sps:$4 sm:$0xff]  }
 0x13b   :  { %2785 = vmatprep.subr.bf16.mxu0 %v4359_v48  ;;  %2949 = vmatprep.subr.bf16.mxu1 %v4362_v26  ;;  %v4423_v48 = vld [vmem:[%s6141_s3 + $0x690] ss:$20 sps:$4 sm:$0xff]   ;;  %v4426_v26 = vld [vmem:[%s6141_s3 + $0x698] ss:$20 sps:$4 sm:$0xff]  }
 0x13e   :  { %2786 = vmatpush1.bf16.msra.mxu0 %v4357_v51  ;;  %2950 = vmatpush1.bf16.msra.mxu1 %v4360_v52  ;;  %v4429_v51 = vld [vmem:[%s6141_s3 + $0x6b8] ss:$20 sps:$4 sm:$0xff]   ;;  %v4432_v52 = vld [vmem:[%s6141_s3 + $0x6c0] ss:$20 sps:$4 sm:$0xff]  }
 0x13f   :  { %2796 = vmatprep.subr.bf16.mxu0 %v4365_v53  ;;  %2960 = vmatprep.subr.bf16.mxu1 %v4368_v54  ;;  %v4437_v53 = vld [vmem:[%s6141_s3 + $0x6e4] ss:$20 sps:$4 sm:$0xff]   ;;  %v4440_v54 = vld [vmem:[%s6141_s3 + $0x6ec] ss:$20 sps:$4 sm:$0xff]  }
 0x141   :  { %2788 = vmatmul.mubr.bf16.vlgmr.msra.gmra.mrb[8].mxu0 %v5392_v56  ;;  %2952 = vmatmul.mubr.bf16.vlgmr.msra.gmra.mrb[8].mxu1 %v5392_v56 }
 0x142   :  { %2797 = vmatpush1.bf16.msra.mxu0 %v4363_v57  ;;  %2961 = vmatpush1.bf16.msra.mxu1 %v4366_v58  ;;  %v4435_v57 = vld [vmem:[%s6141_s3 + $0x6e0] ss:$20 sps:$4 sm:$0xff]   ;;  %v4438_v58 = vld [vmem:[%s6141_s3 + $0x6e8] ss:$20 sps:$4 sm:$0xff]  }
 0x143   :  { %2798 = vmatprep.subr.bf16.mxu0 %v4371_v60  ;;  %2962 = vmatprep.subr.bf16.mxu1 %v4374_v61  ;;  %v4443_v60 = vld [vmem:[%s6141_s3 + $0x70c] ss:$20 sps:$4 sm:$0xff]   ;;  %v4446_v61 = vld [vmem:[%s6141_s3 + $0x714] ss:$20 sps:$4 sm:$0xff]  }
 0x144   :  { %2828 = vmatprep.mubr.bf16.mxu0 %v5406_v62  ;;  %2992 = vmatprep.mubr.bf16.mxu1 %v5406_v62 }
 0x146   :  { %2799 = vmatpush1.bf16.msra.mxu0 %v4369_v63  ;;  %2963 = vmatpush1.bf16.msra.mxu1 %v4372_v0  ;;  %v129_v63 = vsub.s32 7, %v5151_v8  ;;  %v118_v0 = vrot.slane %v5157_v10, %v117_v55 }
 0x147   :  { %2800 = vmatprep.subr.bf16.mxu0 %v4377_v1  ;;  %2964 = vmatprep.subr.bf16.mxu1 %v4380_v2  ;;  %v4441_v1 = vld [vmem:[%s6141_s3 + $0x708] ss:$20 sps:$4 sm:$0xff]   ;;  %v4444_v2 = vld [vmem:[%s6141_s3 + $0x710] ss:$20 sps:$4 sm:$0xff]  }
 0x14a   :  { %2801 = vmatpush1.bf16.msra.mxu0 %v4375_v3  ;;  %2965 = vmatpush1.bf16.msra.mxu1 %v4378_v4  ;;  %v4449_v3 = vld [vmem:[%s6141_s3 + $0x734] ss:$20 sps:$4 sm:$0xff]   ;;  %v4452_v4 = vld [vmem:[%s6141_s3 + $0x73c] ss:$20 sps:$4 sm:$0xff]  }
 0x14b   :  { %2802 = vmatprep.subr.bf16.mxu0 %v4383_v13  ;;  %2966 = vmatprep.subr.bf16.mxu1 %v4386_v14  ;;  %v130_v13 = vrot.slane %v5157_v10, %v129_v63  ;;  %v576_v14 = vadd.f32 %v5268_v59, %v118_v0  ;;  %v4458_v59 = vld [vmem:[%s6141_s3 + $0x764] ss:$20 sps:$4 sm:$0xff]   ;;  %v4504_v63 = vld [vmem:[%s6141_s3 + $0x8a0] ss:$20 sps:$4 sm:$0xff]  }
 0x14c   :  { %v4509_v0 = vld [vmem:[%s6141_s3 + $0x8c4] ss:$20 sps:$4 sm:$0xff]  }
 0x14e   :  { %2803 = vmatpush1.bf16.msra.mxu0 %v4381_v17  ;;  %2967 = vmatpush1.bf16.msra.mxu1 %v4384_v18  ;;  %v4447_v17 = vld [vmem:[%s6141_s3 + $0x730] ss:$20 sps:$4 sm:$0xff]   ;;  %v4450_v18 = vld [vmem:[%s6141_s3 + $0x738] ss:$20 sps:$4 sm:$0xff]  }
 0x14f   :  { %2804 = vmatprep.subr.bf16.mxu0 %v4389_v19  ;;  %2968 = vmatprep.subr.bf16.mxu1 %v4392_v5  ;;  %v4455_v19 = vld [vmem:[%s6141_s3 + $0x75c] ss:$20 sps:$4 sm:$0xff]   ;;  %v619_v5 = vadd.f32 %v5298_v16, %v130_v13  ;;  %v4464_v16 = vld [vmem:[%s6141_s3 + $0x78c] ss:$20 sps:$4 sm:$0xff]   ;;  %v4518_v13 = vld [vmem:[%s6141_s3 + $0x8f4] ss:$20 sps:$4 sm:$0xff]  }
 0x152   :  { %2805 = vmatpush1.bf16.msra.mxu0 %v4387_v20  ;;  %2969 = vmatpush1.bf16.msra.mxu1 %v4390_v21  ;;  %v627_v20 = vmax.f32 %v576_v14, 0.0  ;;  %v4453_v21 = vld [vmem:[%s6141_s3 + $0x758] ss:$20 sps:$4 sm:$0xff]   ;;  %v4513_v14 = vld [vmem:[%s6141_s3 + $0x8e8] ss:$20 sps:$4 sm:$0xff]  }
 0x153   :  { %2806 = vmatprep.subr.bf16.mxu0 %v4395_v22  ;;  %2970 = vmatprep.subr.bf16.mxu1 %v4398_v24  ;;  %v4456_v22 = vld [vmem:[%s6141_s3 + $0x760] ss:$20 sps:$4 sm:$0xff]   ;;  %v4461_v24 = vld [vmem:[%s6141_s3 + $0x784] ss:$20 sps:$4 sm:$0xff]  }
 0x156   :  { %2807 = vmatpush1.bf16.msra.mxu0 %v4393_v25  ;;  %2971 = vmatpush1.bf16.msra.mxu1 %v4396_v28  ;;  %v630_v25 = vmax.f32 %v619_v5, 0.0  ;;  %v5600_v28 = vpack.c.bf16 %v627_v20, %v627_v20  ;;  %v4522_v5 = vld [vmem:[%s6141_s3 + $0x918] ss:$20 sps:$4 sm:$0xff]   ;;  %v4527_v20 = vld [vmem:[%s6141_s3 + $0x93c] ss:$20 sps:$4 sm:$0xff]  }
 0x157   :  { %2808 = vmatprep.subr.bf16.mxu0 %v4401_v29  ;;  %2972 = vmatprep.subr.bf16.mxu1 %v4404_v30  ;;  %v4459_v29 = vld [vmem:[%s6141_s3 + $0x780] ss:$20 sps:$4 sm:$0xff]   ;;  %v4462_v30 = vld [vmem:[%s6141_s3 + $0x788] ss:$20 sps:$4 sm:$0xff]  }
 0x15a   :  { %2809 = vmatpush1.bf16.msra.mxu0 %v4399_v31  ;;  %2973 = vmatpush1.bf16.msra.mxu1 %v4402_v32  ;;  %v4467_v31 = vld [vmem:[%s6141_s3 + $0x7ac] ss:$20 sps:$4 sm:$0xff]   ;;  %v4470_v32 = vld [vmem:[%s6141_s3 + $0x7b4] ss:$20 sps:$4 sm:$0xff]  }
 0x15b   :  { %2810 = vmatprep.subr.bf16.mxu0 %v4407_v34  ;;  %2974 = vmatprep.subr.bf16.mxu1 %v4410_v35  ;;  %v5614_v34 = vpack.c.bf16 %v630_v25, %v630_v25  ;;  %v4465_v35 = vld [vmem:[%s6141_s3 + $0x7a8] ss:$20 sps:$4 sm:$0xff]   ;;  %v4536_v25 = vld [vmem:[%s6141_s3 + $0x96c] ss:$20 sps:$4 sm:$0xff]  }
 0x15e   :  { %2811 = vmatpush1.bf16.msra.mxu0 %v4405_v36  ;;  %2975 = vmatpush1.bf16.msra.mxu1 %v4408_v6  ;;  %v4468_v36 = vld [vmem:[%s6141_s3 + $0x7b0] ss:$20 sps:$4 sm:$0xff]   ;;  %v4473_v6 = vld [vmem:[%s6141_s3 + $0x7d4] ss:$20 sps:$4 sm:$0xff]  }
 0x15f   :  { %2812 = vmatprep.subr.bf16.mxu0 %v4413_v37  ;;  %2976 = vmatprep.subr.bf16.mxu1 %v4416_v39  ;;  %v4476_v37 = vld [vmem:[%s6141_s3 + $0x7dc] ss:$20 sps:$4 sm:$0xff]  }
 0x160   :  { %v4471_v39 = vld [vmem:[%s6141_s3 + $0x7d0] ss:$20 sps:$4 sm:$0xff]  }
 0x162   :  { %2813 = vmatpush1.bf16.msra.mxu0 %v4411_v40  ;;  %2977 = vmatpush1.bf16.msra.mxu1 %v4414_v41  ;;  %v4474_v40 = vld [vmem:[%s6141_s3 + $0x7d8] ss:$20 sps:$4 sm:$0xff]   ;;  %v4479_v41 = vld [vmem:[%s6141_s3 + $0x7fc] ss:$20 sps:$4 sm:$0xff]  }
 0x163   :  { %2814 = vmatprep.subr.bf16.mxu0 %v4419_v42  ;;  %2978 = vmatprep.subr.bf16.mxu1 %v4422_v43  ;;  %v4482_v42 = vld [vmem:[%s6141_s3 + $0x804] ss:$20 sps:$4 sm:$0xff]  }
 0x164   :  { %v4477_v43 = vld [vmem:[%s6141_s3 + $0x7f8] ss:$20 sps:$4 sm:$0xff]  }
 0x166   :  { %2815 = vmatpush1.bf16.msra.mxu0 %v4417_v44  ;;  %2979 = vmatpush1.bf16.msra.mxu1 %v4420_v45  ;;  %v4480_v44 = vld [vmem:[%s6141_s3 + $0x800] ss:$20 sps:$4 sm:$0xff]   ;;  %v4485_v45 = vld [vmem:[%s6141_s3 + $0x824] ss:$20 sps:$4 sm:$0xff]  }
 0x167   :  { %2816 = vmatprep.subr.bf16.mxu0 %v4425_v46  ;;  %2980 = vmatprep.subr.bf16.mxu1 %v4428_v47  ;;  %v4488_v46 = vld [vmem:[%s6141_s3 + $0x82c] ss:$20 sps:$4 sm:$0xff]  }
 0x168   :  { %v4483_v47 = vld [vmem:[%s6141_s3 + $0x820] ss:$20 sps:$4 sm:$0xff]  }
 0x16a   :  { %2817 = vmatpush1.bf16.msra.mxu0 %v4423_v48  ;;  %2981 = vmatpush1.bf16.msra.mxu1 %v4426_v26  ;;  %v4486_v48 = vld [vmem:[%s6141_s3 + $0x828] ss:$20 sps:$4 sm:$0xff]   ;;  %v4491_v26 = vld [vmem:[%s6141_s3 + $0x84c] ss:$20 sps:$4 sm:$0xff]  }
 0x16b   :  { %2818 = vmatprep.subr.bf16.mxu0 %v4431_v49  ;;  %2982 = vmatprep.subr.bf16.mxu1 %v4434_v50  ;;  %v4494_v49 = vld [vmem:[%s6141_s3 + $0x854] ss:$20 sps:$4 sm:$0xff]  }
 0x16c   :  { %v4489_v50 = vld [vmem:[%s6141_s3 + $0x848] ss:$20 sps:$4 sm:$0xff]  }
 0x16e   :  { %2819 = vmatpush1.bf16.msra.mxu0 %v4429_v51  ;;  %2983 = vmatpush1.bf16.msra.mxu1 %v4432_v52  ;;  %v4492_v51 = vld [vmem:[%s6141_s3 + $0x850] ss:$20 sps:$4 sm:$0xff]   ;;  %v4497_v52 = vld [vmem:[%s6141_s3 + $0x874] ss:$20 sps:$4 sm:$0xff]  }
 0x16f   :  { %2820 = vmatprep.subr.bf16.mxu0 %v4437_v53  ;;  %2984 = vmatprep.subr.bf16.mxu1 %v4440_v54  ;;  %v4500_v53 = vld [vmem:[%s6141_s3 + $0x87c] ss:$20 sps:$4 sm:$0xff]  }
 0x170   :  { %v4495_v54 = vld [vmem:[%s6141_s3 + $0x870] ss:$20 sps:$4 sm:$0xff]  }
 0x172   :  { %2821 = vmatpush1.bf16.msra.mxu0 %v4435_v57  ;;  %2985 = vmatpush1.bf16.msra.mxu1 %v4438_v58  ;;  %v4498_v57 = vld [vmem:[%s6141_s3 + $0x878] ss:$20 sps:$4 sm:$0xff]   ;;  %v4503_v58 = vld [vmem:[%s6141_s3 + $0x89c] ss:$20 sps:$4 sm:$0xff]  }
 0x173   :  { %2822 = vmatprep.subr.bf16.mxu0 %v4443_v60  ;;  %2986 = vmatprep.subr.bf16.mxu1 %v4446_v61  ;;  %v4506_v60 = vld [vmem:[%s6141_s3 + $0x8a4] ss:$20 sps:$4 sm:$0xff]  }
 0x174   :  { %v4501_v61 = vld [vmem:[%s6141_s3 + $0x898] ss:$20 sps:$4 sm:$0xff]  }
 0x176   :  { %2823 = vmatpush1.bf16.msra.mxu0 %v4441_v1  ;;  %2987 = vmatpush1.bf16.msra.mxu1 %v4444_v2  ;;  %v4512_v1 = vld [vmem:[%s6141_s3 + $0x8cc] ss:$20 sps:$4 sm:$0xff]  }
 0x177   :  { %2824 = vmatprep.subr.bf16.mxu0 %v4449_v3  ;;  %2988 = vmatprep.subr.bf16.mxu1 %v4452_v4  ;;  %v4507_v2 = vld [vmem:[%s6141_s3 + $0x8c0] ss:$20 sps:$4 sm:$0xff]   ;;  %v4510_v3 = vld [vmem:[%s6141_s3 + $0x8c8] ss:$20 sps:$4 sm:$0xff]  }
 0x178   :  { %v4515_v4 = vld [vmem:[%s6141_s3 + $0x8ec] ss:$20 sps:$4 sm:$0xff]  }
 0x17a   :  { %2825 = vmatpush1.bf16.msra.mxu0 %v4447_v17  ;;  %2989 = vmatpush1.bf16.msra.mxu1 %v4450_v18  ;;  %v4516_v17 = vld [vmem:[%s6141_s3 + $0x8f0] ss:$20 sps:$4 sm:$0xff]   ;;  %v4521_v18 = vld [vmem:[%s6141_s3 + $0x914] ss:$20 sps:$4 sm:$0xff]  }
 0x17b   :  { %2826 = vmatprep.subr.bf16.mxu0 %v4455_v19  ;;  %2990 = vmatprep.subr.bf16.mxu1 %v4458_v59  ;;  %v4524_v19 = vld [vmem:[%s6141_s3 + $0x91c] ss:$20 sps:$4 sm:$0xff]  }
 0x17c   :  { %v4519_v59 = vld [vmem:[%s6141_s3 + $0x910] ss:$20 sps:$4 sm:$0xff]  }
 0x17e   :  { %2827 = vmatpush1.bf16.msra.mxu0 %v4453_v21  ;;  %2991 = vmatpush1.bf16.msra.mxu1 %v4456_v22  ;;  %v4530_v21 = vld [vmem:[%s6141_s3 + $0x944] ss:$20 sps:$4 sm:$0xff]  }
 0x17f   :  { %2837 = vmatprep.subr.bf16.mxu0 %v4461_v24  ;;  %3001 = vmatprep.subr.bf16.mxu1 %v4464_v16  ;;  %v4525_v22 = vld [vmem:[%s6141_s3 + $0x938] ss:$20 sps:$4 sm:$0xff]   ;;  %v4528_v24 = vld [vmem:[%s6141_s3 + $0x940] ss:$20 sps:$4 sm:$0xff]  }
 0x180   :  { %v4533_v16 = vld [vmem:[%s6141_s3 + $0x964] ss:$20 sps:$4 sm:$0xff]  }
 0x181   :  { %2829 = vmatmul.mubr.bf16.vlgmr.msra.gmra.mrb[8].mxu0 %v5600_v28  ;;  %2993 = vmatmul.mubr.bf16.vlgmr.msra.gmra.mrb[8].mxu1 %v5600_v28 }
 0x182   :  { %2838 = vmatpush1.bf16.msra.mxu0 %v4459_v29  ;;  %3002 = vmatpush1.bf16.msra.mxu1 %v4462_v30  ;;  %v4531_v29 = vld [vmem:[%s6141_s3 + $0x960] ss:$20 sps:$4 sm:$0xff]   ;;  %v4534_v30 = vld [vmem:[%s6141_s3 + $0x968] ss:$20 sps:$4 sm:$0xff]  }
 0x183   :  { %2839 = vmatprep.subr.bf16.mxu0 %v4467_v31  ;;  %3003 = vmatprep.subr.bf16.mxu1 %v4470_v32  ;;  %v125_v31 = vsub.s32 6, %v5151_v8  ;;  %v4539_v32 = vld [vmem:[%s6141_s3 + $0x98c] ss:$20 sps:$4 sm:$0xff]  }
 0x184   :  { %2869 = vmatprep.mubr.bf16.mxu0 %v5614_v34  ;;  %3033 = vmatprep.mubr.bf16.mxu1 %v5614_v34 }
 0x186   :  { %2840 = vmatpush1.bf16.msra.mxu0 %v4465_v35  ;;  %3004 = vmatpush1.bf16.msra.mxu1 %v4468_v36  ;;  %v4542_v35 = vld [vmem:[%s6141_s3 + $0x994] ss:$20 sps:$4 sm:$0xff]  }
 0x187   :  { %2841 = vmatprep.subr.bf16.mxu0 %v4473_v6  ;;  %3005 = vmatprep.subr.bf16.mxu1 %v4476_v37  ;;  %v4537_v36 = vld [vmem:[%s6141_s3 + $0x988] ss:$20 sps:$4 sm:$0xff]   ;;  %v4540_v6 = vld [vmem:[%s6141_s3 + $0x990] ss:$20 sps:$4 sm:$0xff]   ;;  %v126_v37 = vrot.slane %v5157_v10, %v125_v31  ;;  %v4546_v10 = vld [vmem:[%s6141_s3 + $0x9b8] ss:$20 sps:$4 sm:$0xff]  }
 0x188   :  { %v4590_v31 = vld [vmem:[%s6141_s3 + $0x790] ss:$20 sps:$4 sm:$0xff]  }
 0x18a   :  { %2842 = vmatpush1.bf16.msra.mxu0 %v4471_v39  ;;  %3006 = vmatpush1.bf16.msra.mxu1 %v4474_v40  ;;  %v4545_v39 = vld [vmem:[%s6141_s3 + $0x9b4] ss:$20 sps:$4 sm:$0xff]   ;;  %v4548_v40 = vld [vmem:[%s6141_s3 + $0x9bc] ss:$20 sps:$4 sm:$0xff]  }
 0x18b   :  { %2843 = vmatprep.subr.bf16.mxu0 %v4479_v41  ;;  %3007 = vmatprep.subr.bf16.mxu1 %v4482_v42  ;;  %v4543_v41 = vld [vmem:[%s6141_s3 + $0x9b0] ss:$20 sps:$4 sm:$0xff]   ;;  %v617_v42 = vadd.f32 %v5290_v12, %v126_v37  ;;  %v4552_v12 = vld [vmem:[%s6141_s3 + $0x9e0] ss:$20 sps:$4 sm:$0xff]  }
 0x18c   :  { %v4598_v37 = vld [vmem:[%s6141_s3 + $0x7e0] ss:$20 sps:$4 sm:$0xff]  }
 0x18e   :  { %2844 = vmatpush1.bf16.msra.mxu0 %v4477_v43  ;;  %3008 = vmatpush1.bf16.msra.mxu1 %v4480_v44  ;;  %v4551_v43 = vld [vmem:[%s6141_s3 + $0x9dc] ss:$20 sps:$4 sm:$0xff]   ;;  %v4554_v44 = vld [vmem:[%s6141_s3 + $0x9e4] ss:$20 sps:$4 sm:$0xff]  }
 0x18f   :  { %2845 = vmatprep.subr.bf16.mxu0 %v4485_v45  ;;  %3009 = vmatprep.subr.bf16.mxu1 %v4488_v46  ;;  %v4549_v45 = vld [vmem:[%s6141_s3 + $0x9d8] ss:$20 sps:$4 sm:$0xff]   ;;  %v629_v46 = vmax.f32 %v617_v42, 0.0  ;;  %v4604_v42 = vld [vmem:[%s6141_s3 + $0x970] ss:$20 sps:$4 sm:$0xff]  }
 0x192   :  { %2846 = vmatpush1.bf16.msra.mxu0 %v4483_v47  ;;  %3010 = vmatpush1.bf16.msra.mxu1 %v4486_v48  ;;  %v4555_v47 = vld [vmem:[%s6141_s3 + $0x150] ss:$20 sps:$4 sm:$0xff]  }
 0x193   :  { %2847 = vmatprep.subr.bf16.mxu0 %v4491_v26  ;;  %3011 = vmatprep.subr.bf16.mxu1 %v4494_v49  ;;  %v4556_v48 = vld [vmem:[%s6141_s3 + $0x3d0] ss:$20 sps:$4 sm:$0xff]   ;;  %v5806_v49 = vpack.c.bf16 %v629_v46, %v629_v46  ;;  %v4609_v46 = vld [vmem:[%s6141_s3 + $0x5d8] ss:$20 sps:$4 sm:$0xff]  }
 0x194   :  { %v4557_v26 = vld [vmem:[%s6141_s3 + $0x10] ss:$20 sps:$4 sm:$0xff]  }
 0x196   :  { %2848 = vmatpush1.bf16.msra.mxu0 %v4489_v50  ;;  %3012 = vmatpush1.bf16.msra.mxu1 %v4492_v51  ;;  %v4558_v50 = vld [vmem:[%s6141_s3 + $0x290] ss:$20 sps:$4 sm:$0xff]   ;;  %v4559_v51 = vld [vmem:[%s6141_s3 + $0x178] ss:$20 sps:$4 sm:$0xff]  }
 0x197   :  { %2849 = vmatprep.subr.bf16.mxu0 %v4497_v52  ;;  %3013 = vmatprep.subr.bf16.mxu1 %v4500_v53  ;;  %v4560_v52 = vld [vmem:[%s6141_s3 + $0x3f8] ss:$20 sps:$4 sm:$0xff]  }
 0x198   :  { %v4561_v53 = vld [vmem:[%s6141_s3 + $0x38] ss:$20 sps:$4 sm:$0xff]  }
 0x19a   :  { %2850 = vmatpush1.bf16.msra.mxu0 %v4495_v54  ;;  %3014 = vmatpush1.bf16.msra.mxu1 %v4498_v57  ;;  %v4562_v54 = vld [vmem:[%s6141_s3 + $0x2b8] ss:$20 sps:$4 sm:$0xff]   ;;  %v4563_v57 = vld [vmem:[%s6141_s3 + $0x1a0] ss:$20 sps:$4 sm:$0xff]  }
 0x19b   :  { %2851 = vmatprep.subr.bf16.mxu0 %v4503_v58  ;;  %3015 = vmatprep.subr.bf16.mxu1 %v4506_v60  ;;  %v4565_v58 = vld [vmem:[%s6141_s3 + $0x60] ss:$20 sps:$4 sm:$0xff]   ;;  %v4567_v60 = vld [vmem:[%s6141_s3 + $0x1c8] ss:$20 sps:$4 sm:$0xff]  }
 0x19e   :  { %2852 = vmatpush1.bf16.msra.mxu0 %v4501_v61  ;;  %3016 = vmatpush1.bf16.msra.mxu1 %v4504_v63  ;;  %v4568_v61 = vld [vmem:[%s6141_s3 + $0x448] ss:$20 sps:$4 sm:$0xff]  }
 0x19f   :  { %2853 = vmatprep.subr.bf16.mxu0 %v4509_v0  ;;  %3017 = vmatprep.subr.bf16.mxu1 %v4512_v1  ;;  %v4569_v63 = vld [vmem:[%s6141_s3 + $0x88] ss:$20 sps:$4 sm:$0xff]   ;;  %v4571_v1 = vld [vmem:[%s6141_s3 + $0x1f0] ss:$20 sps:$4 sm:$0xff]  }
 0x1a0   :  { %v4570_v0 = vld [vmem:[%s6141_s3 + $0x308] ss:$20 sps:$4 sm:$0xff]  }
 0x1a2   :  { %2854 = vmatpush1.bf16.msra.mxu0 %v4507_v2  ;;  %3018 = vmatpush1.bf16.msra.mxu1 %v4510_v3  ;;  %v4572_v2 = vld [vmem:[%s6141_s3 + $0x470] ss:$20 sps:$4 sm:$0xff]  }
 0x1a3   :  { %2855 = vmatprep.subr.bf16.mxu0 %v4515_v4  ;;  %3019 = vmatprep.subr.bf16.mxu1 %v4518_v13  ;;  %v4573_v3 = vld [vmem:[%s6141_s3 + $0xb0] ss:$20 sps:$4 sm:$0xff]   ;;  %v4575_v13 = vld [vmem:[%s6141_s3 + $0x218] ss:$20 sps:$4 sm:$0xff]  }
 0x1a4   :  { %v4574_v4 = vld [vmem:[%s6141_s3 + $0x330] ss:$20 sps:$4 sm:$0xff]  }
 0x1a6   :  { %2856 = vmatpush1.bf16.msra.mxu0 %v4513_v14  ;;  %3020 = vmatpush1.bf16.msra.mxu1 %v4516_v17  ;;  %v4576_v14 = vld [vmem:[%s6141_s3 + $0x498] ss:$20 sps:$4 sm:$0xff]  }
 0x1a7   :  { %2857 = vmatprep.subr.bf16.mxu0 %v4521_v18  ;;  %3021 = vmatprep.subr.bf16.mxu1 %v4524_v19  ;;  %v4577_v17 = vld [vmem:[%s6141_s3 + $0xd8] ss:$20 sps:$4 sm:$0xff]   ;;  %v4579_v19 = vld [vmem:[%s6141_s3 + $0x240] ss:$20 sps:$4 sm:$0xff]  }
 0x1a8   :  { %v4578_v18 = vld [vmem:[%s6141_s3 + $0x358] ss:$20 sps:$4 sm:$0xff]  }
 0x1aa   :  { %2858 = vmatpush1.bf16.msra.mxu0 %v4519_v59  ;;  %3022 = vmatpush1.bf16.msra.mxu1 %v4522_v5  ;;  %v4580_v59 = vld [vmem:[%s6141_s3 + $0x4c0] ss:$20 sps:$4 sm:$0xff]  }
 0x1ab   :  { %2859 = vmatprep.subr.bf16.mxu0 %v4527_v20  ;;  %3023 = vmatprep.subr.bf16.mxu1 %v4530_v21  ;;  %v4581_v5 = vld [vmem:[%s6141_s3 + $0x100] ss:$20 sps:$4 sm:$0xff]   ;;  %v4583_v21 = vld [vmem:[%s6141_s3 + $0x268] ss:$20 sps:$4 sm:$0xff]  }
 0x1ac   :  { %v4582_v20 = vld [vmem:[%s6141_s3 + $0x380] ss:$20 sps:$4 sm:$0xff]  }
 0x1ae   :  { %2860 = vmatpush1.bf16.msra.mxu0 %v4525_v22  ;;  %3024 = vmatpush1.bf16.msra.mxu1 %v4528_v24  ;;  %v4584_v22 = vld [vmem:[%s6141_s3 + $0x4e8] ss:$20 sps:$4 sm:$0xff]  }
 0x1af   :  { %2861 = vmatprep.subr.bf16.mxu0 %v4533_v16  ;;  %3025 = vmatprep.subr.bf16.mxu1 %v4536_v25  ;;  %v4585_v24 = vld [vmem:[%s6141_s3 + $0x128] ss:$20 sps:$4 sm:$0xff]   ;;  %v4587_v25 = vld [vmem:[%s6141_s3 + $0x650] ss:$20 sps:$4 sm:$0xff]  }
 0x1b0   :  { %v4586_v16 = vld [vmem:[%s6141_s3 + $0x3a8] ss:$20 sps:$4 sm:$0xff]  }
 0x1b2   :  { %2862 = vmatpush1.bf16.msra.mxu0 %v4531_v29  ;;  %3026 = vmatpush1.bf16.msra.mxu1 %v4534_v30  ;;  %v4588_v29 = vld [vmem:[%s6141_s3 + $0x8d0] ss:$20 sps:$4 sm:$0xff]  }
 0x1b3   :  { %2863 = vmatprep.subr.bf16.mxu0 %v4539_v32  ;;  %3027 = vmatprep.subr.bf16.mxu1 %v4542_v35  ;;  %v4589_v30 = vld [vmem:[%s6141_s3 + $0x510] ss:$20 sps:$4 sm:$0xff]   ;;  %v4591_v32 = vld [vmem:[%s6141_s3 + $0x678] ss:$20 sps:$4 sm:$0xff]  }
 0x1b4   :  { %v4592_v35 = vld [vmem:[%s6141_s3 + $0x8f8] ss:$20 sps:$4 sm:$0xff]  }
 0x1b6   :  { %2864 = vmatpush1.bf16.msra.mxu0 %v4537_v36  ;;  %3028 = vmatpush1.bf16.msra.mxu1 %v4540_v6  ;;  %v4593_v36 = vld [vmem:[%s6141_s3 + $0x538] ss:$20 sps:$4 sm:$0xff]  }
 0x1b7   :  { %2865 = vmatprep.subr.bf16.mxu0 %v4545_v39  ;;  %3029 = vmatprep.subr.bf16.mxu1 %v4548_v40  ;;  %v4594_v6 = vld [vmem:[%s6141_s3 + $0x7b8] ss:$20 sps:$4 sm:$0xff]   ;;  %v4600_v39 = vld [vmem:[%s6141_s3 + $0x948] ss:$20 sps:$4 sm:$0xff]  }
 0x1b8   :  { %v4601_v40 = vld [vmem:[%s6141_s3 + $0x588] ss:$20 sps:$4 sm:$0xff]  }
 0x1ba   :  { %2866 = vmatpush1.bf16.msra.mxu0 %v4543_v41  ;;  %3030 = vmatpush1.bf16.msra.mxu1 %v4546_v10  ;;  %v4602_v41 = vld [vmem:[%s6141_s3 + $0x808] ss:$20 sps:$4 sm:$0xff]   ;;  %v4603_v10 = vld [vmem:[%s6141_s3 + $0x6f0] ss:$20 sps:$4 sm:$0xff]  }
 0x1bb   :  { %2867 = vmatprep.subr.bf16.mxu0 %v4551_v43  ;;  %3031 = vmatprep.subr.bf16.mxu1 %v4554_v44  ;;  %v4605_v43 = vld [vmem:[%s6141_s3 + $0x5b0] ss:$20 sps:$4 sm:$0xff]  }
 0x1bc   :  { %v4606_v44 = vld [vmem:[%s6141_s3 + $0x830] ss:$20 sps:$4 sm:$0xff]  }
 0x1be   :  { %2868 = vmatpush1.bf16.msra.mxu0 %v4549_v45  ;;  %3032 = vmatpush1.bf16.msra.mxu1 %v4552_v12  ;;  %v4607_v45 = vld [vmem:[%s6141_s3 + $0x718] ss:$20 sps:$4 sm:$0xff]  }
 0x1bf   :  { %4008 = vmatprep.subr.bf16.mxu0 %v4555_v47  ;;  %4030 = vmatprep.subr.bf16.mxu1 %v4556_v48  ;;  %v4608_v12 = vld [vmem:[%s6141_s3 + $0x998] ss:$20 sps:$4 sm:$0xff]   ;;  %v4611_v48 = vld [vmem:[%s6141_s3 + $0x740] ss:$20 sps:$4 sm:$0xff]  }
 0x1c0   :  { %v4610_v47 = vld [vmem:[%s6141_s3 + $0x858] ss:$20 sps:$4 sm:$0xff]  }
 0x1c1   :  { %2870 = vmatmul.mubr.bf16.vlgmr.msra.gmra.mrb[8].mxu0 %v5806_v49  ;;  %3034 = vmatmul.mubr.bf16.vlgmr.msra.gmra.mrb[8].mxu1 %v5806_v49 }
 0x1c2   :  { %4009 = vmatpush3.bf16.msra.mxu0 %v4557_v26  ;;  %3074 = vmatprep.mubr.bf16.mxu0 %v5170_v23  ;;  %v4564_v23 = vld [vmem:[%s6141_s3 + $0x420] ss:$20 sps:$4 sm:$0xff]  }
 0x1c3   :  { %4031 = vmatpush3.bf16.msra.mxu1 %v4558_v50  ;;  %3114 = vmatprep.mubr.bf16.mxu1 %v5204_v38  ;;  %v4566_v38 = vld [vmem:[%s6141_s3 + $0x2e0] ss:$20 sps:$4 sm:$0xff]  }
 0x1c4   :  { %4010 = vmatprep.subr.bf16.mxu0 %v4559_v51  ;;  %4032 = vmatprep.subr.bf16.mxu1 %v4560_v52  ;;  %v4612_v26 = vld [vmem:[%s6141_s3 + $0x9c0] ss:$20 sps:$4 sm:$0xff]   ;;  %v4615_v52 = vld [vmem:[%s6141_s3 + $0x768] ss:$20 sps:$4 sm:$0xff]  }
 0x1c5   :  { %v4613_v50 = vld [vmem:[%s6141_s3 + $0x600] ss:$20 sps:$4 sm:$0xff]  }
 0x1c6   :  { %4011 = vmatpush3.bf16.msra.mxu0 %v4561_v53  ;;  %v4614_v51 = vld [vmem:[%s6141_s3 + $0x880] ss:$20 sps:$4 sm:$0xff]   ;;  %v4616_v53 = vld [vmem:[%s6141_s3 + $0x9e8] ss:$20 sps:$4 sm:$0xff]  }
 0x1c7   :  { %4033 = vmatpush3.bf16.msra.mxu1 %v4562_v54  ;;  %4012 = vmatprep.subr.bf16.mxu0 %v4563_v57  ;;  %v4617_v54 = vld [vmem:[%s6141_s3 + $0x628] ss:$20 sps:$4 sm:$0xff]  }
 0x1c8   :  { %4034 = vmatprep.subr.bf16.mxu1 %v4564_v23  ;;  %v4618_v57 = vld [vmem:[%s6141_s3 + $0x8a8] ss:$20 sps:$4 sm:$0xff]   ;;  %v4619_v23 = vld [vmem:[%s6143_s5 + $0x40] sm:$0xff]  }
 0x1ca   :  { %4013 = vmatpush3.bf16.msra.mxu0 %v4565_v58  ;;  %v4620_v58 = vld [vmem:[%s6143_s5 + $0xc0] sm:$0xff]  }
 0x1cb   :  { %4035 = vmatpush3.bf16.msra.mxu1 %v4566_v38  ;;  %4014 = vmatprep.subr.bf16.mxu0 %v4567_v60  ;;  %v4621_v38 = vld [vmem:[%s6143_s5] sm:$0xff]  }
 0x1cc   :  { %4036 = vmatprep.subr.bf16.mxu1 %v4568_v61  ;;  %v4622_v60 = vld [vmem:[%s6143_s5 + $0x80] sm:$0xff]   ;;  %v4623_v61 = vld [vmem:[%s6143_s5 + $0x48] sm:$0xff]  }
 0x1ce   :  { %4015 = vmatpush3.bf16.msra.mxu0 %v4569_v63  ;;  %v4624_v63 = vld [vmem:[%s6143_s5 + $0xc8] sm:$0xff]  }
 0x1cf   :  { %4037 = vmatpush3.bf16.msra.mxu1 %v4570_v0  ;;  %4016 = vmatprep.subr.bf16.mxu0 %v4571_v1  ;;  %v4625_v0 = vld [vmem:[%s6143_s5 + $0x8] sm:$0xff]  }
 0x1d0   :  { %4038 = vmatprep.subr.bf16.mxu1 %v4572_v2  ;;  %v4626_v1 = vld [vmem:[%s6143_s5 + $0x88] sm:$0xff]   ;;  %v4627_v2 = vld [vmem:[%s6143_s5 + $0x50] sm:$0xff]  }
 0x1d2   :  { %4017 = vmatpush3.bf16.msra.mxu0 %v4573_v3  ;;  %v4630_v3 = vld [vmem:[%s6143_s5 + $0x90] sm:$0xff]  }
 0x1d3   :  { %4039 = vmatpush3.bf16.msra.mxu1 %v4574_v4  ;;  %4018 = vmatprep.subr.bf16.mxu0 %v4575_v13  ;;  %v4631_v4 = vld [vmem:[%s6143_s5 + $0x58] sm:$0xff]  }
 0x1d4   :  { %4040 = vmatprep.subr.bf16.mxu1 %v4576_v14  ;;  %v4632_v13 = vld [vmem:[%s6143_s5 + $0xd8] sm:$0xff]  }
 0x1d5   :  { %v4633_v14 = vld [vmem:[%s6143_s5 + $0x18] sm:$0xff]  }
 0x1d6   :  { %4019 = vmatpush3.bf16.msra.mxu0 %v4577_v17  ;;  %v4634_v17 = vld [vmem:[%s6143_s5 + $0x98] sm:$0xff]  }
 0x1d7   :  { %4041 = vmatpush3.bf16.msra.mxu1 %v4578_v18  ;;  %4020 = vmatprep.subr.bf16.mxu0 %v4579_v19  ;;  %v4635_v18 = vld [vmem:[%s6143_s5 + $0x60] sm:$0xff]  }
 0x1d8   :  { %4042 = vmatprep.subr.bf16.mxu1 %v4580_v59  ;;  %v4636_v19 = vld [vmem:[%s6143_s5 + $0xe0] sm:$0xff]  }
 0x1d9   :  { %v4637_v59 = vld [vmem:[%s6143_s5 + $0x20] sm:$0xff]  }
 0x1da   :  { %4021 = vmatpush3.bf16.msra.mxu0 %v4581_v5  ;;  %v4638_v5 = vld [vmem:[%s6143_s5 + $0xa0] sm:$0xff]  }
 0x1db   :  { %4043 = vmatpush3.bf16.msra.mxu1 %v4582_v20  ;;  %4022 = vmatprep.subr.bf16.mxu0 %v4583_v21  ;;  %v4639_v20 = vld [vmem:[%s6143_s5 + $0x68] sm:$0xff]  }
 0x1dc   :  { %4044 = vmatprep.subr.bf16.mxu1 %v4584_v22  ;;  %v4640_v21 = vld [vmem:[%s6143_s5 + $0xe8] sm:$0xff]  }
 0x1dd   :  { %v4641_v22 = vld [vmem:[%s6143_s5 + $0x28] sm:$0xff]  }
 0x1de   :  { %4023 = vmatpush3.bf16.msra.mxu0 %v4585_v24  ;;  %v4642_v24 = vld [vmem:[%s6143_s5 + $0xa8] sm:$0xff]  }
 0x1df   :  { %4045 = vmatpush3.bf16.msra.mxu1 %v4586_v16  ;;  %4052 = vmatprep.subr.bf16.mxu0 %v4587_v25  ;;  %v4643_v16 = vld [vmem:[%s6143_s5 + $0x70] sm:$0xff]  }
 0x1e0   :  { %4074 = vmatprep.subr.bf16.mxu1 %v4588_v29  ;;  %v4644_v25 = vld [vmem:[%s6143_s5 + $0xf0] sm:$0xff]  }
 0x1e1   :  { %3075 = vmatmul.mubr.bf16.vlgmr.msra.gmra.mrb[12].mxu0 %v5180_v27  ;;  %v4595_v27 = vld [vmem:[%s6141_s3 + $0x6a0] ss:$20 sps:$4 sm:$0xff]  }
 0x1e2   :  { %3115 = vmatmul.mubr.bf16.vlgmr.msra.gmra.mrb[12].mxu1 %v5392_v56  ;;  %4053 = vmatpush3.bf16.msra.mxu0 %v4589_v30  ;;  %v4596_v56 = vld [vmem:[%s6141_s3 + $0x920] ss:$20 sps:$4 sm:$0xff]  }
 0x1e3   :  { %3154 = vmatprep.mubr.bf16.mxu0 %v5406_v62  ;;  %4075 = vmatpush3.bf16.msra.mxu1 %v4590_v31  ;;  %v4597_v62 = vld [vmem:[%s6141_s3 + $0x560] ss:$20 sps:$4 sm:$0xff]   ;;  %v4647_v31 = vld [vmem:[%s6143_s5 + $0x78] sm:$0xff]  }
 0x1e4   :  { %3194 = vmatprep.mubr.bf16.mxu1 %v5614_v34  ;;  %4054 = vmatprep.subr.bf16.mxu0 %v4591_v32  ;;  %v4599_v34 = vld [vmem:[%s6141_s3 + $0x6c8] ss:$20 sps:$4 sm:$0xff]   ;;  %v4645_v29 = vld [vmem:[%s6143_s5 + $0x30] sm:$0xff]  }
 0x1e5   :  { %4076 = vmatprep.subr.bf16.mxu1 %v4592_v35  ;;  %v4646_v30 = vld [vmem:[%s6143_s5 + $0xb0] sm:$0xff]   ;;  %v4648_v32 = vld [vmem:[%s6143_s5 + $0xf8] sm:$0xff]  }
 0x1e6   :  { %4055 = vmatpush3.bf16.msra.mxu0 %v4593_v36  ;;  %v4649_v35 = vld [vmem:[%s6143_s5 + $0x38] sm:$0xff]  }
 0x1e7   :  { %4077 = vmatpush3.bf16.msra.mxu1 %v4594_v6  ;;  %4056 = vmatprep.subr.bf16.mxu0 %v4595_v27  ;;  %v4650_v36 = vld [vmem:[%s6143_s5 + $0xb8] sm:$0xff]   ;;  %v1023_v6 = vld [vmem:[%s6142_s4] sm:$0x1f]  ;;  %s4700_s4 = smov [#allocation4]  }
 0x1e8   :  { %4078 = vmatprep.subr.bf16.mxu1 %v4596_v56  ;;  %v1028_v27 = vrot.slane %v1023_v6, %v101_v9  ;;  %v1036_v56 = vrot.slane %v1023_v6, %v109_v33 }
 0x1ea   :  { %4057 = vmatpush3.bf16.msra.mxu0 %v4597_v62  ;;  %v1032_v62 = vrot.slane %v1023_v6, %v105_v11 }
 0x1eb   :  { %4079 = vmatpush3.bf16.msra.mxu1 %v4598_v37  ;;  %4058 = vmatprep.subr.bf16.mxu0 %v4599_v34  ;;  %v1040_v37 = vrot.slane %v1023_v6, %v113_v15 }
 0x1ec   :  { %4080 = vmatprep.subr.bf16.mxu1 %v4600_v39 }
 0x1ee   :  { %4059 = vmatpush3.bf16.msra.mxu0 %v4601_v40 }
 0x1ef   :  { %4081 = vmatpush3.bf16.msra.mxu1 %v4602_v41  ;;  %4060 = vmatprep.subr.bf16.mxu0 %v4603_v10 }
 0x1f0   :  { %4082 = vmatprep.subr.bf16.mxu1 %v4604_v42 }
 0x1f2   :  { %4061 = vmatpush3.bf16.msra.mxu0 %v4605_v43 }
 0x1f3   :  { %4083 = vmatpush3.bf16.msra.mxu1 %v4606_v44  ;;  %4062 = vmatprep.subr.bf16.mxu0 %v4607_v45 }
 0x1f4   :  { %4084 = vmatprep.subr.bf16.mxu1 %v4608_v12 }
 0x1f6   :  { %4063 = vmatpush3.bf16.msra.mxu0 %v4609_v46 }
 0x1f7   :  { %4085 = vmatpush3.bf16.msra.mxu1 %v4610_v47  ;;  %4064 = vmatprep.subr.bf16.mxu0 %v4611_v48 }
 0x1f8   :  { %4086 = vmatprep.subr.bf16.mxu1 %v4612_v26 }
 0x1fa   :  { %4065 = vmatpush3.bf16.msra.mxu0 %v4613_v50 }
 0x1fb   :  { %4087 = vmatpush3.bf16.msra.mxu1 %v4614_v51  ;;  %4066 = vmatprep.subr.bf16.mxu0 %v4615_v52 }
 0x1fc   :  { %4088 = vmatprep.subr.bf16.mxu1 %v4616_v53  ;;  %v1044_v53 = vrot.slane %v1023_v6, %v117_v55 }
 0x1fe   :  { %4067 = vmatpush3.bf16.msra.mxu0 %v4617_v54 }
 0x1ff   :  { %4089 = vmatpush3.bf16.msra.mxu1 %v4618_v57  ;;  %4096 = vmatprep.subr.bf16.mxu0 %v4619_v23 }
 0x200   :  { %4118 = vmatprep.subr.bf16.mxu1 %v4620_v58 }
 0x201   :  { %3155 = vmatmul.mubr.bf16.vlgmr.msra.gmra.mrb[16].mxu0 %v5600_v28  ;;  %v4628_v28 = vld [vmem:[%s6143_s5 + $0xd0] sm:$0xff]  }
 0x202   :  { %3195 = vmatmul.mubr.bf16.vlgmr.msra.gmra.mrb[16].mxu1 %v5806_v49  ;;  %4097 = vmatpush3.bf16.msra.mxu0 %v4621_v38  ;;  %v4629_v49 = vld [vmem:[%s6143_s5 + $0x10] sm:$0xff]   ;;  %s3579_s5 = sshll.u32 %s4700_s4, 4  ;;  %s3580_s5 = int_to_ptr.vmem [resolvable:$true] %s3579_s5 }
 0x203   :  { %4119 = vmatpush3.bf16.msra.mxu1 %v4622_v60  ;;  %4098 = vmatprep.subr.bf16.mxu0 %v4623_v61  ;;  %s4651_s30 = scalar_lea.vmem %s3580_s5, 32  ;;  %p4656_p1 = scmp.lt.s32.totalorder %s3580_s5, %s3580_s5 }
 0x204   :  { %4120 = vmatprep.subr.bf16.mxu1 %v4624_v63  ;;  %p4652_p0 = scmp.ne.s32.totalorder %s3580_s5, %s4651_s30  ;;  %p4657_p2 = scmp.lt.s32.totalorder %s4651_s30, %s4651_s30 }
 0x206   :  { %4099 = vmatpush3.bf16.msra.mxu0 %v4625_v0  ;;  %p4658_p3 = por %p4657_p2, %p4656_p1 }
 0x207   :  { %4121 = vmatpush3.bf16.msra.mxu1 %v4626_v1  ;;  %4100 = vmatprep.subr.bf16.mxu0 %v4627_v2 }
 0x208   :  { %4122 = vmatprep.subr.bf16.mxu1 %v4628_v28  ;;  %p4659_p4 = pnand %p4658_p3, %p4652_p0 }
 0x20a   :  { %4101 = vmatpush3.bf16.msra.mxu0 %v4629_v49 }
 0x20b   :  { %4123 = vmatpush3.bf16.msra.mxu1 %v4630_v3  ;;  %4102 = vmatprep.subr.bf16.mxu0 %v4631_v4 }
 0x20c   :  { %4124 = vmatprep.subr.bf16.mxu1 %v4632_v13 }
 0x20e   :  { %4103 = vmatpush3.bf16.msra.mxu0 %v4633_v14 }
 0x20f   :  { %4125 = vmatpush3.bf16.msra.mxu1 %v4634_v17  ;;  %4104 = vmatprep.subr.bf16.mxu0 %v4635_v18 }
 0x210   :  { %4126 = vmatprep.subr.bf16.mxu1 %v4636_v19 }
 0x212   :  { %4105 = vmatpush3.bf16.msra.mxu0 %v4637_v59  ;;  %v3556_v59 = vand.u32 127, %v99_v7 }
 0x213   :  { %4127 = vmatpush3.bf16.msra.mxu1 %v4638_v5  ;;  %4106 = vmatprep.subr.bf16.mxu0 %v4639_v20 }
 0x214   :  { %4128 = vmatprep.subr.bf16.mxu1 %v4640_v21  ;;  %vm3557_vm0 = vcmp.ge.s32.totalorder %v3556_v59, 2 }
 0x216   :  { %4107 = vmatpush3.bf16.msra.mxu0 %v4641_v22 }
 0x217   :  { %4129 = vmatpush3.bf16.msra.mxu1 %v4642_v24  ;;  %4108 = vmatprep.subr.bf16.mxu0 %v4643_v16 }
 0x218   :  { %4130 = vmatprep.subr.bf16.mxu1 %v4644_v25 }
 0x21a   :  { %4109 = vmatpush3.bf16.msra.mxu0 %v4645_v29 }
 0x21b   :  { %4131 = vmatpush3.bf16.msra.mxu1 %v4646_v30  ;;  %4110 = vmatprep.subr.bf16.mxu0 %v4647_v31 }
 0x21c   :  { %4132 = vmatprep.subr.bf16.mxu1 %v4648_v32 }
 0x21e   :  { %4111 = vmatpush3.bf16.msra.mxu0 %v4649_v35 }
 0x21f   :  { %4133 = vmatpush3.bf16.msra.mxu1 %v4650_v36 }
 0x294   :  { %v2871_v34 = vpop.f32.mrb[8].mxu0  ;;  %v3035_v39 = vpop.f32.mrb[8].mxu1 }
 0x295   :  { %v4140_v40 = vadd.f32 %v2871_v34, %v1028_v27  ;;  %v4142_v41 = vadd.f32 %v3035_v39, %v1036_v56  ;;  %v2873_v10 = vpop.f32.mrb[9].mxu0  ;;  %v3037_v42 = vpop.f32.mrb[9].mxu1 }
 0x296   :  { %v4141_v43 = vadd.f32 %v2873_v10, %v1032_v62  ;;  %v4143_v44 = vadd.f32 %v3037_v42, %v1040_v37  ;;  %v2875_v45 = vpop.f32.mrb[10].mxu0  ;;  %v3039_v12 = vpop.f32.mrb[10].mxu1 }
 0x297   :  { %v3202_v9 = vmax.f32 %v4140_v40, 0.0  ;;  %v3204_v46 = vmax.f32 %v4142_v41, 0.0  ;;  %v2876_v47 = vpop.f32.mrb[11].mxu0  ;;  %v3040_v33 = vpop.f32.mrb[11].mxu1 }
 0x298   :  { %v3203_v48 = vmax.f32 %v4141_v43, 0.0  ;;  %v3205_v26 = vmax.f32 %v4143_v44, 0.0 }
 0x299   :  { %v3206_v51 = vpack.c.bf16 %v3202_v9, %v3202_v9  ;;  %v3208_v15 = vpack.c.bf16 %v3204_v46, %v3204_v46 }
 0x29a   :  { %v3207_v11 = vpack.c.bf16 %v3203_v48, %v3203_v48  ;;  %v3209_v50 = vpack.c.bf16 %v3205_v26, %v3205_v26 }
 0x29c   :  { %3505 = vmatprep.mubr.bf16.mxu0 %v3207_v11  ;;  %3545 = vmatprep.mubr.bf16.mxu1 %v3209_v50 }
 0x29d   :  { %3506 = vmatmul.mubr.bf16.vlgmr.msra.gmra.mrb[20].mxu0 %v3206_v51  ;;  %3546 = vmatmul.mubr.bf16.vlgmr.msra.gmra.mrb[20].mxu1 %v3208_v15 }
 0x2b4   :  { %v4024_v52 = vpop.f32.mrb[12].mxu0 }
 0x2b5   :  { %v4046_v54 = vpop.f32.mrb[12].mxu1  ;;  %v4025_v57 = vpop.f32.mrb[13].mxu0 }
 0x2b6   :  { %v4026_v23 = vadd.f32 %v4025_v57, %v4024_v52  ;;  %v4047_v58 = vpop.f32.mrb[13].mxu1  ;;  %v4027_v38 = vpop.f32.mrb[14].mxu0 }
 0x2b7   :  { %v4048_v60 = vadd.f32 %v4047_v58, %v4046_v54  ;;  %v4049_v61 = vpop.f32.mrb[14].mxu1  ;;  %v4028_v63 = vpop.f32.mrb[15].mxu0 }
 0x2b8   :  { %v3077_v0 = vadd.f32 %v4026_v23, %v1044_v53  ;;  %v4050_v1 = vpop.f32.mrb[15].mxu1 }
 0x2ba   :  { %v3117_v2 = vadd.f32 %v4048_v60, %v3077_v0 }
 0x2d4   :  { %v4068_v28 = vpop.f32.mrb[16].mxu0 }
 0x2d5   :  { %v4090_v49 = vpop.f32.mrb[16].mxu1  ;;  %v4069_v3 = vpop.f32.mrb[17].mxu0 }
 0x2d6   :  { %v4070_v4 = vadd.f32 %v4069_v3, %v4068_v28  ;;  %v4091_v13 = vpop.f32.mrb[17].mxu1  ;;  %v4071_v14 = vpop.f32.mrb[18].mxu0 }
 0x2d7   :  { %v4092_v17 = vadd.f32 %v4091_v13, %v4090_v49  ;;  %v4093_v8 = vpop.f32.mrb[18].mxu1  ;;  %v4072_v55 = vpop.f32.mrb[19].mxu0 }
 0x2d8   :  { %v3157_v18 = vadd.f32 %v4070_v4, %v3117_v2  ;;  %v4094_v19 = vpop.f32.mrb[19].mxu1 }
 0x2da   :  { %v3197_v5 = vadd.f32 %v4092_v17, %v3157_v18 }
 0x2dc   :  { %v3554_v20 = vmax.f32 %v3197_v5, 0.0 }
 0x2de   :  { %v3558_v21 = vmin.f32 %v3554_v20, 100.0 }
 0x2e0   :  { %v3561_v22 = vsel %vm3557_vm0, %v3558_v21, %v3554_v20 }
 0x2e1   :  { %3562 = vst [vmem:[#allocation4] sm:$0x3] %v3561_v22 }
 0x2e2   :  { %4662 = shalt.err (!%p4659_p4)
}
 0x2e3   :  { %s4663_s11 = scalar_lea.hbm %s6146_s8, 32 }
 0x2e4   :  { %p4664_p5 = scmp.ne.s32.totalorder %s6146_s8, %s4663_s11  ;;  %p4667_p6 = scmp.lt.u32.totalorder %s4663_s11, %s6146_s8 }
 0x2e6   :  { %p4669_p7 = pnand %p4667_p6, %p4664_p5 }
 0x2e8   :  { %4672 = shalt.err (!%p4669_p7)
}
 0x2e9   :  { %3582 = dma.vmem_to_hbm [thread:$0]  %s3580_s5, 32, %s6146_s8, [#allocation5]   ;;  %v3975_v16 = vld [vmem:[%s6144_s6] ss:$0 sm:$0xff] }
 0x2ea   :  { %s4701_s19 = smov [#allocation2]  }
 0x2eb   :  { %s3569_s20 = sshll.u32 %s4701_s19, 4  ;;  %s3570_s20 = int_to_ptr.vmem [resolvable:$true] %s3569_s20 }
 0x2ec   :  { %s4673_s8 = scalar_lea.vmem %s3570_s20, 32  ;;  %p4678_p9 = scmp.lt.s32.totalorder %s3570_s20, %s3570_s20 }
 0x2ed   :  { %p4674_p8 = scmp.ne.s32.totalorder %s3570_s20, %s4673_s8  ;;  %p4679_p10 = scmp.lt.s32.totalorder %s4673_s8, %s4673_s8 }
 0x2ef   :  { %p4680_p11 = por %p4679_p10, %p4678_p9 }
 0x2f1   :  { %p4681_p12 = pnand %p4680_p11, %p4674_p8 }
 0x370   :  { %v4112_v7 = vpop.f32.mrb[20].mxu0  ;;  %v4134_v24 = vpop.f32.mrb[20].mxu1 }
 0x371   :  { %v4113_v25 = vpop.f32.mrb[21].mxu0  ;;  %v4135_v29 = vpop.f32.mrb[21].mxu1 }
 0x372   :  { %v4114_v30 = vadd.f32 %v4113_v25, %v4112_v7  ;;  %v4136_v31 = vadd.f32 %v4135_v29, %v4134_v24  ;;  %v4115_v32 = vpop.f32.mrb[22].mxu0  ;;  %v4137_v35 = vpop.f32.mrb[22].mxu1 }
 0x373   :  { %v4116_v36 = vpop.f32.mrb[23].mxu0  ;;  %v4138_v6 = vpop.f32.mrb[23].mxu1 }
 0x374   :  { %v3508_v27 = vadd.f32 %v4114_v30, %v3975_v16 }
 0x376   :  { %v3548_v56 = vadd.f32 %v4136_v31, %v3508_v27 }
 0x378   :  { %3553 = vst [vmem:[#allocation2] sm:$0x3] %v3548_v56 }
 0x379   :  { %4684 = shalt.err (!%p4681_p12)
}
 0x37a   :  { %s4685_s22 = scalar_lea.hbm %s6145_s7, 32 }
 0x37b   :  { %p4686_p13 = scmp.ne.s32.totalorder %s6145_s7, %s4685_s22  ;;  %p4689_p0 = scmp.lt.u32.totalorder %s4685_s22, %s6145_s7 }
 0x37d   :  { %p4691_p1 = pnand %p4689_p0, %p4686_p13 }
 0x37f   :  { %4694 = shalt.err (!%p4691_p1)
}
 0x380   :  { %3572 = dma.vmem_to_hbm [thread:$0]  %s3570_s20, 32, %s6145_s7, [#allocation3]  }
 0x381   :  { %4695 = dma.done.wait [#allocation3], 32  }
 0x382   :  { %4696 = vsyncadd [#allocation3], 4294967264 }
 0x383   :  { %4697 = dma.done.wait [#allocation5], 32  }
 0x384   :  { %4698 = vsyncadd [#allocation5], 4294967264 }
 0x385   :  { %3589 = vsyncpa [#allocation3], 1 }
 0x386   :  { %3590 = vsyncpa [#allocation5], 1 }

</bundles_post_ra>
